<compile_context>
chip_gen: v6e
topology: v6e:2x2x1
jax: 0.10.0
libtpu: 0.0.40
codegen_flags: <defaults>
</compile_context>

<pallas_src>
import functools

import jax
import jax.numpy as jnp
from jax import lax
from jax.experimental import pallas as pl
from jax.experimental.pallas import tpu as pltpu

EPS = 1e-5


# ------------------------------ device helper -------------------------------
def _num_tensorcores():
    """TensorCores reachable from one grid ('parallel' axis sharding)."""
    try:
        kind = jax.devices()[0].device_kind.lower()
    except Exception:  # pragma: no cover - no device / weird backend
        return 1
    # v4 / v5p (megacore) and v7x expose 2 TensorCores per chip; v5e/v6e 1.
    return 2 if any(t in kind for t in ("v4", "v5p", "v7", "7x")) else 1


# ----------------------------- kernel helpers ------------------------------
def _sigmoid(x):
    # EUP tanh instead of exp + VALU divide.
    return 0.5 * jnp.tanh(0.5 * x) + 0.5


def _in_relu(v, gamma, beta, out_dtype):
    # v: (C, HW); gamma/beta: (C, 1).  Fused InstanceNorm2d (biased var,
    # one-pass stats in f32) + affine + ReLU, emitted as relu(v*scale+shift).
    # NOTE: one-pass E[x^2]-E[x]^2 is fine at this activation scale; switch to
    # two-pass if activations ever get a large mean relative to their std.
    v32 = v.astype(jnp.float32)
    inv_hw = 1.0 / v.shape[1]
    mu = jnp.sum(v32, axis=1, keepdims=True) * inv_hw             # (C, 1)
    ex2 = jnp.sum(v32 * v32, axis=1, keepdims=True) * inv_hw      # (C, 1)
    var = ex2 - mu * mu
    scale = gamma * lax.rsqrt(var + EPS)                          # EUP rsqrt
    shift = beta - mu * scale
    # If a bundle dump ever shows the XLU saturating (rolls + reductions),
    # these two lane-sums can be moved onto the otherwise-idle MXU by
    # matmul'ing [v; v*v] with a ones((HW, 1)) vector.
    return jnp.maximum(v32 * scale + shift, 0.0).astype(out_dtype)


def _make_taps(w9, mask9, dil, W, HW, roll_sign, adt):
    """Hoisted per-tap fused (weight x mask) tables for a 3x3 depthwise conv.

    w9:    (C, 9)  with w9[c, 3*i + j] == torch_weight[c, 0, i, j].
    mask9: (9, HW) float {0,1}; 1 iff the tap stays inside the HxW image at
           that flattened position (also kills pltpu.roll wraparound).
    Returns (center_col (C,1), [8 x (C,HW) weight*mask tables], [8 shifts]).
    Built once per grid step, outside the batch loop.
    """
    wm, shifts = [], []
    for i in range(3):
        for j in range(3):
            k = 3 * i + j
            if k == 4:
                continue
            s = (i - 1) * dil * W + (j - 1) * dil       # source offset p + s
            shifts.append((roll_sign * s) % HW)         # static python int
            wm.append((w9[:, k:k + 1] * mask9[k:k + 1, :]).astype(adt))
    return w9[:, 4:5].astype(adt), wm, shifts


def _dwconv3x3_fused(v, w_center, wm_taps, shifts):
    """Channel-wise 3x3 conv using hoisted weight*mask tables.

    v: (C, HW).  Inner tap = one mul + one add; shifts are static lane
    rotations on the XLU.  Center tap needs no shift / mask.
    """
    out = w_center * v
    for wm, shift in zip(wm_taps, shifts):
        out = out + wm * pltpu.roll(v, shift, 1)
    return out


# --------------------------------- kernel ----------------------------------
def dem_kernel(x_ref, w1_ref, g1_ref, b1_ref, wloc_ref, wsur_ref,
               m1_ref, md_ref, g2_ref, b2_ref, wdw_ref,
               f1wt_ref, f1b_ref, f2w_ref, f2b_ref,
               out_ref, *, W, HW, dil, n, b_blk, roll_sign, act_dtype):
    adt = act_dtype

    # Small weights loaded once per grid step, reused over the batch block.
    w1 = w1_ref[...]                                   # (n, Cin)
    g1, b1 = g1_ref[...], b1_ref[...]                  # (n, 1)
    g2, b2 = g2_ref[...], b2_ref[...]                  # (2n, 1)
    f1wt, f1b = f1wt_ref[...], f1b_ref[...]            # (2n, hid), (1, hid)
    f2w, f2b = f2w_ref[...], f2b_ref[...]              # (2n, hid), (2n, 1)

    # Hoisted fused (weight x mask) tap tables -- built once per grid step.
    wc_loc, wm_loc, sh_loc = _make_taps(wloc_ref[...], m1_ref[...], 1,
                                        W, HW, roll_sign, adt)
    wc_sur, wm_sur, sh_sur = _make_taps(wsur_ref[...], md_ref[...], dil,
                                        W, HW, roll_sign, adt)
    wc_dw, wm_dw, sh_dw = _make_taps(wdw_ref[...], m1_ref[...], 1,
                                     W, HW, roll_sign, adt)

    def body(b, carry):
        x = x_ref[b]                                   # (2n, HW) f32

        # conv1x1 + InstanceNorm + ReLU (MXU matmul, lane-dense).
        # Default MXU precision is fine at Cin=32; bump to HIGHEST if Cin
        # grows and accuracy matters.  (Batching the matmul across the block
        # as (Cin, b_blk*HW) is a further small win if Cin/n grow.)
        y = jnp.dot(w1, x, preferred_element_type=jnp.float32)    # (n, HW)
        y = _in_relu(y, g1, b1, adt)

        # F_loc / F_sur : channel-wise (dilated) 3x3 convs on the branch.
        loc = _dwconv3x3_fused(y, wc_loc, wm_loc, sh_loc)          # (n, HW)
        sur = _dwconv3x3_fused(y, wc_sur, wm_sur, sh_sur)          # (n, HW)

        # Merge the two halves once (cheap sublane concat), then run a single
        # gate / InstanceNorm / 3x3 conv / SE path over the full (2n, HW).
        gate = _sigmoid(jnp.concatenate([loc, sur], axis=0))       # (2n, HW)
        j = x.astype(adt) * gate
        j = _in_relu(j, g2, b2, adt)
        j = _dwconv3x3_fused(j, wc_dw, wm_dw, sh_dw)               # (2n, HW)

        # F_glo : squeeze-excite (global avg pool -> fc -> relu -> fc ->
        # sigmoid), broadcasts + tiny reductions, no tiny matmuls.
        p = jnp.mean(j.astype(jnp.float32), axis=1, keepdims=True)  # (2n, 1)
        h = jnp.maximum(jnp.sum(f1wt * p, axis=0, keepdims=True) + f1b, 0.0)
        s = _sigmoid(jnp.sum(f2w * h, axis=1, keepdims=True) + f2b)  # (2n, 1)

        # residual (add=True), done in f32; one lane-dense full-block store.
        out = x + (j * s.astype(adt)).astype(jnp.float32)
        out_ref[b] = out.astype(out_ref.dtype)
        return carry

    # fori_loop (not a Python unroll) bounds per-sample live ranges so the
    # larger batch block does not spill the 64-entry vreg file.
    lax.fori_loop(0, b_blk, body, 0)


# ------------------------------ host wrapper --------------------------------
def _build_masks(H, W, d):
    # (9, HW) lane-dense boundary masks for a 3x3 depthwise conv, dilation d.
    # NOTE: if the spatial axis is ever tiled (halo tiling) or the batch is
    # folded into the lane axis, rebuild these to also cover tile boundaries.
    p = jnp.arange(H * W)
    row = p // W
    col = p % W
    rows = []
    for i in range(3):
        for j in range(3):
            dy, dx = (i - 1) * d, (j - 1) * d
            rows.append((row + dy >= 0) & (row + dy < H)
                        & (col + dx >= 0) & (col + dx < W))
    return jnp.stack(rows, axis=0).astype(jnp.float32)           # (9, HW)


def dem_forward(x_nchw, params, dilation_rate, batch_block=None,
                roll_sign=-1, act_dtype=jnp.float32):
    """roll_sign=-1: pltpu.roll follows the jnp.roll convention
    (out[i] = x[i - shift]); override only if that ever changes.
    act_dtype=jnp.bfloat16 is a VALU/XLU/vreg win on v6e/v7x (keep f32 on
    v5e -- no bf16 VPU/EUP there)."""
    N, C, H, W = x_nchw.shape
    HW = H * W
    n = params["w1"].shape[0]
    nout = 2 * n
    assert C == nout, "DEM gating/residual requires nIn == nOut"

    # Batch blocking: whole batch in one grid step on 1-TC chips (per-step
    # overhead dominates at this size); keep the grid a multiple of the
    # TensorCore count on 2-TC chips so the "parallel" axis fills the chip.
    if batch_block is None:
        batch_block = max(1, N // _num_tensorcores())
    b_blk = max(1, min(batch_block, N))
    while N % b_blk:
        b_blk -= 1

    # glue: NCHW -> (N, C, HW) is a pure reshape (channels on sublanes,
    # flattened spatial on lanes).
    x_flat = x_nchw.reshape(N, C, HW)
    mask1 = _build_masks(H, W, 1)
    maskd = _build_masks(H, W, dilation_rate)

    weights = [params["w1"], params["g1"], params["b1"],
               params["wloc"], params["wsur"], mask1, maskd,
               params["g2"], params["b2"], params["wdw"],
               params["f1wt"], params["f1b"], params["f2w"], params["f2b"]]

    def full_spec(a):
        nd = a.ndim
        return pl.BlockSpec(a.shape, lambda g, _n=nd: (0,) * _n)

    # Advisory cost estimate so XLA can schedule surrounding ops sensibly.
    flops = int(N * (2 * n * C * HW            # 1x1 conv
                     + 2 * 9 * 4 * n * HW      # three depthwise 3x3 convs
                     + 30 * nout * HW))        # elementwise / IN / gating
    transcendentals = int(N * (nout * HW + 4 * nout))
    bytes_accessed = int((2 * x_flat.size
                          + sum(int(w.size) for w in weights)) * 4)
    cost = pl.CostEstimate(flops=flops, transcendentals=transcendentals,
                           bytes_accessed=bytes_accessed)

    kernel = functools.partial(dem_kernel, W=W, HW=HW, dil=dilation_rate,
                               n=n, b_blk=b_blk, roll_sign=roll_sign,
                               act_dtype=act_dtype)
    return pl.pallas_call(
        kernel,
        out_shape=jax.ShapeDtypeStruct((N, nout, HW), x_nchw.dtype),
        grid_spec=pltpu.PrefetchScalarGridSpec(
            num_scalar_prefetch=0,
            grid=(N // b_blk,),
            in_specs=[pl.BlockSpec((b_blk, C, HW), lambda g: (g, 0, 0))]
                     + [full_spec(w) for w in weights],
            out_specs=pl.BlockSpec((b_blk, nout, HW), lambda g: (g, 0, 0)),
        ),
        compiler_params=pltpu.CompilerParams(
            dimension_semantics=("parallel",)),
        cost_estimate=cost,
    )(x_flat, *weights)


# ------------------------- deterministic parameters -------------------------
def init_params(key, nIn, nOut, reduction=16):
    n = nOut // 2
    hid = max(1, (2 * n) // reduction)
    ks = jax.random.split(key, 8)
    sc = 0.1
    return dict(
        w1=jax.random.normal(ks[0], (n, nIn), jnp.float32) * sc,       # conv1x1 (out,in)
        g1=jnp.ones((n, 1), jnp.float32), b1=jnp.zeros((n, 1), jnp.float32),
        wloc=jax.random.normal(ks[1], (n, 9), jnp.float32) * sc,       # depthwise taps
        wsur=jax.random.normal(ks[2], (n, 9), jnp.float32) * sc,
        g2=jnp.ones((2 * n, 1), jnp.float32), b2=jnp.zeros((2 * n, 1), jnp.float32),
        wdw=jax.random.normal(ks[3], (2 * n, 9), jnp.float32) * sc,
        f1wt=jax.random.normal(ks[4], (2 * n, hid), jnp.float32) * sc,  # fc1.weight.T
        f1b=jax.random.normal(ks[5], (1, hid), jnp.float32) * sc,       # fc1.bias
        f2w=jax.random.normal(ks[6], (2 * n, hid), jnp.float32) * sc,   # fc2.weight
        f2b=jax.random.normal(ks[7], (2 * n, 1), jnp.float32) * sc,     # fc2.bias
    )


# ----------------------------- pure-JAX reference ---------------------------
def _in_relu_ref(v, gamma, beta):
    mu = jnp.mean(v, axis=(2, 3), keepdims=True)
    var = jnp.mean((v - mu) ** 2, axis=(2, 3), keepdims=True)
    vhat = (v - mu) * lax.rsqrt(var + EPS)
    return jnp.maximum(vhat * gamma.reshape(1, -1, 1, 1)
                       + beta.reshape(1, -1, 1, 1), 0.0)


def dem_reference(x, params, dilation_rate):
    N, C, H, W = x.shape
    n = params["w1"].shape[0]
    dn = ("NCHW", "OIHW", "NCHW")
    hi = lax.Precision.HIGHEST

    w1 = params["w1"].reshape(n, C, 1, 1)
    y = lax.conv_general_dilated(x, w1, (1, 1), "VALID",
                                 dimension_numbers=dn, precision=hi)
    y = _in_relu_ref(y, params["g1"][:, 0], params["b1"][:, 0])

    def dw(v, w9, d):
        Cv = v.shape[1]
        w = w9.reshape(Cv, 1, 3, 3)
        return lax.conv_general_dilated(v, w, (1, 1), [(d, d), (d, d)],
                                        rhs_dilation=(d, d),
                                        dimension_numbers=dn,
                                        feature_group_count=Cv, precision=hi)

    loc = dw(y, params["wloc"], 1)
    sur = dw(y, params["wsur"], dilation_rate)
    joi = jax.nn.sigmoid(jnp.concatenate([loc, sur], axis=1))
    joi = x * joi
    joi = _in_relu_ref(joi, params["g2"][:, 0], params["b2"][:, 0])
    joi = dw(joi, params["wdw"], 1)

    pooled = jnp.mean(joi, axis=(2, 3))                           # (N, 2n)
    h = jnp.maximum(pooled @ params["f1wt"] + params["f1b"][0], 0.0)
    s = jax.nn.sigmoid(h @ params["f2w"].T + params["f2b"][:, 0])
    out = joi * s[:, :, None, None]
    return x + out


# ----------------------------------- main -----------------------------------
if __name__ == "__main__":
    # nIn == nOut == 32 (n = 16, hidden = 2); 4 samples.
    N, C, H, W = 4, 32, 16, 16
    dilation_rate, reduction = 3, 16

    key = jax.random.PRNGKey(0)
    kx, kp = jax.random.split(key)
    x = jax.random.normal(kx, (N, C, H, W), jnp.float32)
    params = init_params(kp, C, C, reduction)

    # batch_block=None -> whole batch per grid step on v5e/v6e, N/2 on 2-TC
    # chips.  act_dtype stays f32 here so the strict tolerance check below is
    # meaningful; pass act_dtype=jnp.bfloat16 on v6e/v7x for the perf variant.
    out_flat = jax.block_until_ready(dem_forward(x, params, dilation_rate))

    # compare against a pure-JAX NCHW reference
    out_nchw = out_flat.reshape(N, C, H, W)
    ref = dem_reference(x, params, dilation_rate)
    if not jnp.allclose(out_nchw, ref, atol=5e-3, rtol=5e-3):
        raise AssertionError(
            f"kernel/reference mismatch, max abs err "
            f"{float(jnp.max(jnp.abs(out_nchw - ref)))}")
    print("KERNEL_OK")
</pallas_src>

<mosaic_0001>
module attributes {stable_mosaic.version = 11 : i64} {
  func.func @dem_kernel(%arg0: i32, %arg1: memref<4x32x256xf32, #tpu.memory_space<vmem>>, %arg2: memref<16x32xf32, #tpu.memory_space<vmem>>, %arg3: memref<16x1xf32, #tpu.memory_space<vmem>>, %arg4: memref<16x1xf32, #tpu.memory_space<vmem>>, %arg5: memref<16x9xf32, #tpu.memory_space<vmem>>, %arg6: memref<16x9xf32, #tpu.memory_space<vmem>>, %arg7: memref<9x256xf32, #tpu.memory_space<vmem>>, %arg8: memref<9x256xf32, #tpu.memory_space<vmem>>, %arg9: memref<32x1xf32, #tpu.memory_space<vmem>>, %arg10: memref<32x1xf32, #tpu.memory_space<vmem>>, %arg11: memref<32x9xf32, #tpu.memory_space<vmem>>, %arg12: memref<32x2xf32, #tpu.memory_space<vmem>>, %arg13: memref<1x2xf32, #tpu.memory_space<vmem>>, %arg14: memref<32x2xf32, #tpu.memory_space<vmem>>, %arg15: memref<32x1xf32, #tpu.memory_space<vmem>>, %arg16: memref<4x32x256xf32, #tpu.memory_space<vmem>>) attributes {dimension_semantics = [#tpu.dimension_semantics<parallel>], iteration_bounds = array<i64: 1>, scalar_prefetch = 0 : i64, scratch_operands = 0 : i64, tpu.core_type = #tpu.core_type<tc>, window_params = [{transform_indices = @transform_0, window_bounds = array<i64: 4, 32, 256>}, {pipeline_mode = #tpu.pipeline_mode<synchronous>, transform_indices = @transform_1, window_bounds = array<i64: 16, 32>}, {pipeline_mode = #tpu.pipeline_mode<synchronous>, transform_indices = @transform_2, window_bounds = array<i64: 16, 1>}, {pipeline_mode = #tpu.pipeline_mode<synchronous>, transform_indices = @transform_3, window_bounds = array<i64: 16, 1>}, {pipeline_mode = #tpu.pipeline_mode<synchronous>, transform_indices = @transform_4, window_bounds = array<i64: 16, 9>}, {pipeline_mode = #tpu.pipeline_mode<synchronous>, transform_indices = @transform_5, window_bounds = array<i64: 16, 9>}, {pipeline_mode = #tpu.pipeline_mode<synchronous>, transform_indices = @transform_6, window_bounds = array<i64: 9, 256>}, {pipeline_mode = #tpu.pipeline_mode<synchronous>, transform_indices = @transform_7, window_bounds = array<i64: 9, 256>}, {pipeline_mode = #tpu.pipeline_mode<synchronous>, transform_indices = @transform_8, window_bounds = array<i64: 32, 1>}, {pipeline_mode = #tpu.pipeline_mode<synchronous>, transform_indices = @transform_9, window_bounds = array<i64: 32, 1>}, {pipeline_mode = #tpu.pipeline_mode<synchronous>, transform_indices = @transform_10, window_bounds = array<i64: 32, 9>}, {pipeline_mode = #tpu.pipeline_mode<synchronous>, transform_indices = @transform_11, window_bounds = array<i64: 32, 2>}, {pipeline_mode = #tpu.pipeline_mode<synchronous>, transform_indices = @transform_12, window_bounds = array<i64: 1, 2>}, {pipeline_mode = #tpu.pipeline_mode<synchronous>, transform_indices = @transform_13, window_bounds = array<i64: 32, 2>}, {pipeline_mode = #tpu.pipeline_mode<synchronous>, transform_indices = @transform_14, window_bounds = array<i64: 32, 1>}, {transform_indices = @transform_15, window_bounds = array<i64: 4, 32, 256>}]} {
    %c0 = arith.constant 0 : index
    %c0_0 = arith.constant 0 : index
    %0 = vector.load %arg2[%c0, %c0_0] : memref<16x32xf32, #tpu.memory_space<vmem>>, vector<16x32xf32>
    %c0_1 = arith.constant 0 : index
    %c0_2 = arith.constant 0 : index
    %1 = vector.load %arg3[%c0_1, %c0_2] : memref<16x1xf32, #tpu.memory_space<vmem>>, vector<16x1xf32>
    %c0_3 = arith.constant 0 : index
    %c0_4 = arith.constant 0 : index
    %2 = vector.load %arg4[%c0_3, %c0_4] : memref<16x1xf32, #tpu.memory_space<vmem>>, vector<16x1xf32>
    %c0_5 = arith.constant 0 : index
    %c0_6 = arith.constant 0 : index
    %3 = vector.load %arg9[%c0_5, %c0_6] : memref<32x1xf32, #tpu.memory_space<vmem>>, vector<32x1xf32>
    %c0_7 = arith.constant 0 : index
    %c0_8 = arith.constant 0 : index
    %4 = vector.load %arg10[%c0_7, %c0_8] : memref<32x1xf32, #tpu.memory_space<vmem>>, vector<32x1xf32>
    %c0_9 = arith.constant 0 : index
    %c0_10 = arith.constant 0 : index
    %5 = vector.load %arg12[%c0_9, %c0_10] : memref<32x2xf32, #tpu.memory_space<vmem>>, vector<32x2xf32>
    %c0_11 = arith.constant 0 : index
    %c0_12 = arith.constant 0 : index
    %6 = vector.load %arg13[%c0_11, %c0_12] : memref<1x2xf32, #tpu.memory_space<vmem>>, vector<1x2xf32>
    %c0_13 = arith.constant 0 : index
    %c0_14 = arith.constant 0 : index
    %7 = vector.load %arg14[%c0_13, %c0_14] : memref<32x2xf32, #tpu.memory_space<vmem>>, vector<32x2xf32>
    %c0_15 = arith.constant 0 : index
    %c0_16 = arith.constant 0 : index
    %8 = vector.load %arg15[%c0_15, %c0_16] : memref<32x1xf32, #tpu.memory_space<vmem>>, vector<32x1xf32>
    %c0_17 = arith.constant 0 : index
    %c0_18 = arith.constant 0 : index
    %9 = vector.load %arg5[%c0_17, %c0_18] : memref<16x9xf32, #tpu.memory_space<vmem>>, vector<16x9xf32>
    %c0_19 = arith.constant 0 : index
    %c0_20 = arith.constant 0 : index
    %10 = vector.load %arg7[%c0_19, %c0_20] : memref<9x256xf32, #tpu.memory_space<vmem>>, vector<9x256xf32>
    %11 = vector.extract_strided_slice %9 {offsets = [0, 0], sizes = [16, 1], strides = [1, 1]} : vector<16x9xf32> to vector<16x1xf32>
    %12 = vector.extract_strided_slice %10 {offsets = [0, 0], sizes = [1, 256], strides = [1, 1]} : vector<9x256xf32> to vector<1x256xf32>
    %13 = vector.broadcast %11 : vector<16x1xf32> to vector<16x256xf32>
    %14 = vector.broadcast %12 : vector<1x256xf32> to vector<16x256xf32>
    %15 = arith.mulf %13, %14 : vector<16x256xf32>
    %16 = vector.extract_strided_slice %9 {offsets = [0, 1], sizes = [16, 1], strides = [1, 1]} : vector<16x9xf32> to vector<16x1xf32>
    %17 = vector.extract_strided_slice %10 {offsets = [1, 0], sizes = [1, 256], strides = [1, 1]} : vector<9x256xf32> to vector<1x256xf32>
    %18 = vector.broadcast %16 : vector<16x1xf32> to vector<16x256xf32>
    %19 = vector.broadcast %17 : vector<1x256xf32> to vector<16x256xf32>
    %20 = arith.mulf %18, %19 : vector<16x256xf32>
    %21 = vector.extract_strided_slice %9 {offsets = [0, 2], sizes = [16, 1], strides = [1, 1]} : vector<16x9xf32> to vector<16x1xf32>
    %22 = vector.extract_strided_slice %10 {offsets = [2, 0], sizes = [1, 256], strides = [1, 1]} : vector<9x256xf32> to vector<1x256xf32>
    %23 = vector.broadcast %21 : vector<16x1xf32> to vector<16x256xf32>
    %24 = vector.broadcast %22 : vector<1x256xf32> to vector<16x256xf32>
    %25 = arith.mulf %23, %24 : vector<16x256xf32>
    %26 = vector.extract_strided_slice %9 {offsets = [0, 3], sizes = [16, 1], strides = [1, 1]} : vector<16x9xf32> to vector<16x1xf32>
    %27 = vector.extract_strided_slice %10 {offsets = [3, 0], sizes = [1, 256], strides = [1, 1]} : vector<9x256xf32> to vector<1x256xf32>
    %28 = vector.broadcast %26 : vector<16x1xf32> to vector<16x256xf32>
    %29 = vector.broadcast %27 : vector<1x256xf32> to vector<16x256xf32>
    %30 = arith.mulf %28, %29 : vector<16x256xf32>
    %31 = vector.extract_strided_slice %9 {offsets = [0, 5], sizes = [16, 1], strides = [1, 1]} : vector<16x9xf32> to vector<16x1xf32>
    %32 = vector.extract_strided_slice %10 {offsets = [5, 0], sizes = [1, 256], strides = [1, 1]} : vector<9x256xf32> to vector<1x256xf32>
    %33 = vector.broadcast %31 : vector<16x1xf32> to vector<16x256xf32>
    %34 = vector.broadcast %32 : vector<1x256xf32> to vector<16x256xf32>
    %35 = arith.mulf %33, %34 : vector<16x256xf32>
    %36 = vector.extract_strided_slice %9 {offsets = [0, 6], sizes = [16, 1], strides = [1, 1]} : vector<16x9xf32> to vector<16x1xf32>
    %37 = vector.extract_strided_slice %10 {offsets = [6, 0], sizes = [1, 256], strides = [1, 1]} : vector<9x256xf32> to vector<1x256xf32>
    %38 = vector.broadcast %36 : vector<16x1xf32> to vector<16x256xf32>
    %39 = vector.broadcast %37 : vector<1x256xf32> to vector<16x256xf32>
    %40 = arith.mulf %38, %39 : vector<16x256xf32>
    %41 = vector.extract_strided_slice %9 {offsets = [0, 7], sizes = [16, 1], strides = [1, 1]} : vector<16x9xf32> to vector<16x1xf32>
    %42 = vector.extract_strided_slice %10 {offsets = [7, 0], sizes = [1, 256], strides = [1, 1]} : vector<9x256xf32> to vector<1x256xf32>
    %43 = vector.broadcast %41 : vector<16x1xf32> to vector<16x256xf32>
    %44 = vector.broadcast %42 : vector<1x256xf32> to vector<16x256xf32>
    %45 = arith.mulf %43, %44 : vector<16x256xf32>
    %46 = vector.extract_strided_slice %9 {offsets = [0, 8], sizes = [16, 1], strides = [1, 1]} : vector<16x9xf32> to vector<16x1xf32>
    %47 = vector.extract_strided_slice %10 {offsets = [8, 0], sizes = [1, 256], strides = [1, 1]} : vector<9x256xf32> to vector<1x256xf32>
    %48 = vector.broadcast %46 : vector<16x1xf32> to vector<16x256xf32>
    %49 = vector.broadcast %47 : vector<1x256xf32> to vector<16x256xf32>
    %50 = arith.mulf %48, %49 : vector<16x256xf32>
    %51 = vector.extract_strided_slice %9 {offsets = [0, 4], sizes = [16, 1], strides = [1, 1]} : vector<16x9xf32> to vector<16x1xf32>
    %c0_21 = arith.constant 0 : index
    %c0_22 = arith.constant 0 : index
    %52 = vector.load %arg6[%c0_21, %c0_22] : memref<16x9xf32, #tpu.memory_space<vmem>>, vector<16x9xf32>
    %c0_23 = arith.constant 0 : index
    %c0_24 = arith.constant 0 : index
    %53 = vector.load %arg8[%c0_23, %c0_24] : memref<9x256xf32, #tpu.memory_space<vmem>>, vector<9x256xf32>
    %54 = vector.extract_strided_slice %52 {offsets = [0, 0], sizes = [16, 1], strides = [1, 1]} : vector<16x9xf32> to vector<16x1xf32>
    %55 = vector.extract_strided_slice %53 {offsets = [0, 0], sizes = [1, 256], strides = [1, 1]} : vector<9x256xf32> to vector<1x256xf32>
    %56 = vector.broadcast %54 : vector<16x1xf32> to vector<16x256xf32>
    %57 = vector.broadcast %55 : vector<1x256xf32> to vector<16x256xf32>
    %58 = arith.mulf %56, %57 : vector<16x256xf32>
    %59 = vector.extract_strided_slice %52 {offsets = [0, 1], sizes = [16, 1], strides = [1, 1]} : vector<16x9xf32> to vector<16x1xf32>
    %60 = vector.extract_strided_slice %53 {offsets = [1, 0], sizes = [1, 256], strides = [1, 1]} : vector<9x256xf32> to vector<1x256xf32>
    %61 = vector.broadcast %59 : vector<16x1xf32> to vector<16x256xf32>
    %62 = vector.broadcast %60 : vector<1x256xf32> to vector<16x256xf32>
    %63 = arith.mulf %61, %62 : vector<16x256xf32>
    %64 = vector.extract_strided_slice %52 {offsets = [0, 2], sizes = [16, 1], strides = [1, 1]} : vector<16x9xf32> to vector<16x1xf32>
    %65 = vector.extract_strided_slice %53 {offsets = [2, 0], sizes = [1, 256], strides = [1, 1]} : vector<9x256xf32> to vector<1x256xf32>
    %66 = vector.broadcast %64 : vector<16x1xf32> to vector<16x256xf32>
    %67 = vector.broadcast %65 : vector<1x256xf32> to vector<16x256xf32>
    %68 = arith.mulf %66, %67 : vector<16x256xf32>
    %69 = vector.extract_strided_slice %52 {offsets = [0, 3], sizes = [16, 1], strides = [1, 1]} : vector<16x9xf32> to vector<16x1xf32>
    %70 = vector.extract_strided_slice %53 {offsets = [3, 0], sizes = [1, 256], strides = [1, 1]} : vector<9x256xf32> to vector<1x256xf32>
    %71 = vector.broadcast %69 : vector<16x1xf32> to vector<16x256xf32>
    %72 = vector.broadcast %70 : vector<1x256xf32> to vector<16x256xf32>
    %73 = arith.mulf %71, %72 : vector<16x256xf32>
    %74 = vector.extract_strided_slice %52 {offsets = [0, 5], sizes = [16, 1], strides = [1, 1]} : vector<16x9xf32> to vector<16x1xf32>
    %75 = vector.extract_strided_slice %53 {offsets = [5, 0], sizes = [1, 256], strides = [1, 1]} : vector<9x256xf32> to vector<1x256xf32>
    %76 = vector.broadcast %74 : vector<16x1xf32> to vector<16x256xf32>
    %77 = vector.broadcast %75 : vector<1x256xf32> to vector<16x256xf32>
    %78 = arith.mulf %76, %77 : vector<16x256xf32>
    %79 = vector.extract_strided_slice %52 {offsets = [0, 6], sizes = [16, 1], strides = [1, 1]} : vector<16x9xf32> to vector<16x1xf32>
    %80 = vector.extract_strided_slice %53 {offsets = [6, 0], sizes = [1, 256], strides = [1, 1]} : vector<9x256xf32> to vector<1x256xf32>
    %81 = vector.broadcast %79 : vector<16x1xf32> to vector<16x256xf32>
    %82 = vector.broadcast %80 : vector<1x256xf32> to vector<16x256xf32>
    %83 = arith.mulf %81, %82 : vector<16x256xf32>
    %84 = vector.extract_strided_slice %52 {offsets = [0, 7], sizes = [16, 1], strides = [1, 1]} : vector<16x9xf32> to vector<16x1xf32>
    %85 = vector.extract_strided_slice %53 {offsets = [7, 0], sizes = [1, 256], strides = [1, 1]} : vector<9x256xf32> to vector<1x256xf32>
    %86 = vector.broadcast %84 : vector<16x1xf32> to vector<16x256xf32>
    %87 = vector.broadcast %85 : vector<1x256xf32> to vector<16x256xf32>
    %88 = arith.mulf %86, %87 : vector<16x256xf32>
    %89 = vector.extract_strided_slice %52 {offsets = [0, 8], sizes = [16, 1], strides = [1, 1]} : vector<16x9xf32> to vector<16x1xf32>
    %90 = vector.extract_strided_slice %53 {offsets = [8, 0], sizes = [1, 256], strides = [1, 1]} : vector<9x256xf32> to vector<1x256xf32>
    %91 = vector.broadcast %89 : vector<16x1xf32> to vector<16x256xf32>
    %92 = vector.broadcast %90 : vector<1x256xf32> to vector<16x256xf32>
    %93 = arith.mulf %91, %92 : vector<16x256xf32>
    %94 = vector.extract_strided_slice %52 {offsets = [0, 4], sizes = [16, 1], strides = [1, 1]} : vector<16x9xf32> to vector<16x1xf32>
    %c0_25 = arith.constant 0 : index
    %c0_26 = arith.constant 0 : index
    %95 = vector.load %arg11[%c0_25, %c0_26] : memref<32x9xf32, #tpu.memory_space<vmem>>, vector<32x9xf32>
    %c0_27 = arith.constant 0 : index
    %c0_28 = arith.constant 0 : index
    %96 = vector.load %arg7[%c0_27, %c0_28] : memref<9x256xf32, #tpu.memory_space<vmem>>, vector<9x256xf32>
    %97 = vector.extract_strided_slice %95 {offsets = [0, 0], sizes = [32, 1], strides = [1, 1]} : vector<32x9xf32> to vector<32x1xf32>
    %98 = vector.extract_strided_slice %96 {offsets = [0, 0], sizes = [1, 256], strides = [1, 1]} : vector<9x256xf32> to vector<1x256xf32>
    %99 = vector.broadcast %97 : vector<32x1xf32> to vector<32x256xf32>
    %100 = vector.broadcast %98 : vector<1x256xf32> to vector<32x256xf32>
    %101 = arith.mulf %99, %100 : vector<32x256xf32>
    %102 = vector.extract_strided_slice %95 {offsets = [0, 1], sizes = [32, 1], strides = [1, 1]} : vector<32x9xf32> to vector<32x1xf32>
    %103 = vector.extract_strided_slice %96 {offsets = [1, 0], sizes = [1, 256], strides = [1, 1]} : vector<9x256xf32> to vector<1x256xf32>
    %104 = vector.broadcast %102 : vector<32x1xf32> to vector<32x256xf32>
    %105 = vector.broadcast %103 : vector<1x256xf32> to vector<32x256xf32>
    %106 = arith.mulf %104, %105 : vector<32x256xf32>
    %107 = vector.extract_strided_slice %95 {offsets = [0, 2], sizes = [32, 1], strides = [1, 1]} : vector<32x9xf32> to vector<32x1xf32>
    %108 = vector.extract_strided_slice %96 {offsets = [2, 0], sizes = [1, 256], strides = [1, 1]} : vector<9x256xf32> to vector<1x256xf32>
    %109 = vector.broadcast %107 : vector<32x1xf32> to vector<32x256xf32>
    %110 = vector.broadcast %108 : vector<1x256xf32> to vector<32x256xf32>
    %111 = arith.mulf %109, %110 : vector<32x256xf32>
    %112 = vector.extract_strided_slice %95 {offsets = [0, 3], sizes = [32, 1], strides = [1, 1]} : vector<32x9xf32> to vector<32x1xf32>
    %113 = vector.extract_strided_slice %96 {offsets = [3, 0], sizes = [1, 256], strides = [1, 1]} : vector<9x256xf32> to vector<1x256xf32>
    %114 = vector.broadcast %112 : vector<32x1xf32> to vector<32x256xf32>
    %115 = vector.broadcast %113 : vector<1x256xf32> to vector<32x256xf32>
    %116 = arith.mulf %114, %115 : vector<32x256xf32>
    %117 = vector.extract_strided_slice %95 {offsets = [0, 5], sizes = [32, 1], strides = [1, 1]} : vector<32x9xf32> to vector<32x1xf32>
    %118 = vector.extract_strided_slice %96 {offsets = [5, 0], sizes = [1, 256], strides = [1, 1]} : vector<9x256xf32> to vector<1x256xf32>
    %119 = vector.broadcast %117 : vector<32x1xf32> to vector<32x256xf32>
    %120 = vector.broadcast %118 : vector<1x256xf32> to vector<32x256xf32>
    %121 = arith.mulf %119, %120 : vector<32x256xf32>
    %122 = vector.extract_strided_slice %95 {offsets = [0, 6], sizes = [32, 1], strides = [1, 1]} : vector<32x9xf32> to vector<32x1xf32>
    %123 = vector.extract_strided_slice %96 {offsets = [6, 0], sizes = [1, 256], strides = [1, 1]} : vector<9x256xf32> to vector<1x256xf32>
    %124 = vector.broadcast %122 : vector<32x1xf32> to vector<32x256xf32>
    %125 = vector.broadcast %123 : vector<1x256xf32> to vector<32x256xf32>
    %126 = arith.mulf %124, %125 : vector<32x256xf32>
    %127 = vector.extract_strided_slice %95 {offsets = [0, 7], sizes = [32, 1], strides = [1, 1]} : vector<32x9xf32> to vector<32x1xf32>
    %128 = vector.extract_strided_slice %96 {offsets = [7, 0], sizes = [1, 256], strides = [1, 1]} : vector<9x256xf32> to vector<1x256xf32>
    %129 = vector.broadcast %127 : vector<32x1xf32> to vector<32x256xf32>
    %130 = vector.broadcast %128 : vector<1x256xf32> to vector<32x256xf32>
    %131 = arith.mulf %129, %130 : vector<32x256xf32>
    %132 = vector.extract_strided_slice %95 {offsets = [0, 8], sizes = [32, 1], strides = [1, 1]} : vector<32x9xf32> to vector<32x1xf32>
    %133 = vector.extract_strided_slice %96 {offsets = [8, 0], sizes = [1, 256], strides = [1, 1]} : vector<9x256xf32> to vector<1x256xf32>
    %134 = vector.broadcast %132 : vector<32x1xf32> to vector<32x256xf32>
    %135 = vector.broadcast %133 : vector<1x256xf32> to vector<32x256xf32>
    %136 = arith.mulf %134, %135 : vector<32x256xf32>
    %137 = vector.extract_strided_slice %95 {offsets = [0, 4], sizes = [32, 1], strides = [1, 1]} : vector<32x9xf32> to vector<32x1xf32>
    %c0_i32 = arith.constant 0 : i32
    %c4_i32 = arith.constant 4 : i32
    %138 = arith.addi %c0_i32, %c4_i32 : i32
    %c1_i32 = arith.constant 1 : i32
    scf.for %arg17 = %c0_i32 to %138 step %c1_i32  : i32 {
      %139 = arith.index_cast %arg17 : i32 to index
      %c0_30 = arith.constant 0 : index
      %c0_31 = arith.constant 0 : index
      %140 = vector.load %arg1[%139, %c0_30, %c0_31] : memref<4x32x256xf32, #tpu.memory_space<vmem>>, vector<1x32x256xf32>
      %141 = vector.shape_cast %140 : vector<1x32x256xf32> to vector<32x256xf32>
      %cst = arith.constant dense<0.000000e+00> : vector<16x256xf32>
      %142 = tpu.matmul %0, %141, %cst {dimension_numbers = #tpu.dot_dimension_numbers<[1], [0], [0], [1], [0, 0, 1, 1], [], []>} : vector<16x32xf32>, vector<32x256xf32>, vector<16x256xf32> -> vector<16x256xf32>
      %cst_32 = arith.constant dense<0.000000e+00> : vector<16xf32>
      %143 = vector.multi_reduction <add>, %142, %cst_32 [1] : vector<16x256xf32> to vector<16xf32>
      %144 = vector.shape_cast %143 : vector<16xf32> to vector<16x1xf32>
      %cst_33 = arith.constant 3.906250e-03 : f32
      %145 = vector.broadcast %cst_33 : f32 to vector<16x1xf32>
      %146 = arith.mulf %144, %145 : vector<16x1xf32>
      %147 = arith.mulf %142, %142 : vector<16x256xf32>
      %cst_34 = arith.constant dense<0.000000e+00> : vector<16xf32>
      %148 = vector.multi_reduction <add>, %147, %cst_34 [1] : vector<16x256xf32> to vector<16xf32>
      %149 = vector.shape_cast %148 : vector<16xf32> to vector<16x1xf32>
      %cst_35 = arith.constant 3.906250e-03 : f32
      %150 = vector.broadcast %cst_35 : f32 to vector<16x1xf32>
      %151 = arith.mulf %149, %150 : vector<16x1xf32>
      %152 = arith.mulf %146, %146 : vector<16x1xf32>
      %153 = arith.subf %151, %152 : vector<16x1xf32>
      %cst_36 = arith.constant 9.99999974E-6 : f32
      %154 = vector.broadcast %cst_36 : f32 to vector<16x1xf32>
      %155 = arith.addf %153, %154 : vector<16x1xf32>
      %156 = math.rsqrt %155 : vector<16x1xf32>
      %157 = arith.mulf %1, %156 : vector<16x1xf32>
      %158 = arith.mulf %146, %157 : vector<16x1xf32>
      %159 = arith.subf %2, %158 : vector<16x1xf32>
      %160 = vector.broadcast %157 : vector<16x1xf32> to vector<16x256xf32>
      %161 = arith.mulf %142, %160 : vector<16x256xf32>
      %162 = vector.broadcast %159 : vector<16x1xf32> to vector<16x256xf32>
      %163 = arith.addf %161, %162 : vector<16x256xf32>
      %cst_37 = arith.constant 0.000000e+00 : f32
      %164 = vector.broadcast %cst_37 : f32 to vector<16x256xf32>
      %165 = arith.maximumf %163, %164 : vector<16x256xf32>
      %166 = vector.broadcast %51 : vector<16x1xf32> to vector<16x256xf32>
      %167 = arith.mulf %166, %165 : vector<16x256xf32>
      %c17_i32 = arith.constant 17 : i32
      %168 = tpu.dynamic_rotate %165 by %c17_i32 dim 1 : vector<16x256xf32>, i32 -> vector<16x256xf32>
      %169 = arith.mulf %15, %168 : vector<16x256xf32>
      %170 = arith.addf %167, %169 : vector<16x256xf32>
      %c16_i32 = arith.constant 16 : i32
      %171 = tpu.dynamic_rotate %165 by %c16_i32 dim 1 : vector<16x256xf32>, i32 -> vector<16x256xf32>
      %172 = arith.mulf %20, %171 : vector<16x256xf32>
      %173 = arith.addf %170, %172 : vector<16x256xf32>
      %c15_i32 = arith.constant 15 : i32
      %174 = tpu.dynamic_rotate %165 by %c15_i32 dim 1 : vector<16x256xf32>, i32 -> vector<16x256xf32>
      %175 = arith.mulf %25, %174 : vector<16x256xf32>
      %176 = arith.addf %173, %175 : vector<16x256xf32>
      %c1_i32_38 = arith.constant 1 : i32
      %177 = tpu.dynamic_rotate %165 by %c1_i32_38 dim 1 : vector<16x256xf32>, i32 -> vector<16x256xf32>
      %178 = arith.mulf %30, %177 : vector<16x256xf32>
      %179 = arith.addf %176, %178 : vector<16x256xf32>
      %c255_i32 = arith.constant 255 : i32
      %180 = tpu.dynamic_rotate %165 by %c255_i32 dim 1 : vector<16x256xf32>, i32 -> vector<16x256xf32>
      %181 = arith.mulf %35, %180 : vector<16x256xf32>
      %182 = arith.addf %179, %181 : vector<16x256xf32>
      %c241_i32 = arith.constant 241 : i32
      %183 = tpu.dynamic_rotate %165 by %c241_i32 dim 1 : vector<16x256xf32>, i32 -> vector<16x256xf32>
      %184 = arith.mulf %40, %183 : vector<16x256xf32>
      %185 = arith.addf %182, %184 : vector<16x256xf32>
      %c240_i32 = arith.constant 240 : i32
      %186 = tpu.dynamic_rotate %165 by %c240_i32 dim 1 : vector<16x256xf32>, i32 -> vector<16x256xf32>
      %187 = arith.mulf %45, %186 : vector<16x256xf32>
      %188 = arith.addf %185, %187 : vector<16x256xf32>
      %c239_i32 = arith.constant 239 : i32
      %189 = tpu.dynamic_rotate %165 by %c239_i32 dim 1 : vector<16x256xf32>, i32 -> vector<16x256xf32>
      %190 = arith.mulf %50, %189 : vector<16x256xf32>
      %191 = arith.addf %188, %190 : vector<16x256xf32>
      %192 = vector.broadcast %94 : vector<16x1xf32> to vector<16x256xf32>
      %193 = arith.mulf %192, %165 : vector<16x256xf32>
      %c51_i32 = arith.constant 51 : i32
      %194 = tpu.dynamic_rotate %165 by %c51_i32 dim 1 : vector<16x256xf32>, i32 -> vector<16x256xf32>
      %195 = arith.mulf %58, %194 : vector<16x256xf32>
      %196 = arith.addf %193, %195 : vector<16x256xf32>
      %c48_i32 = arith.constant 48 : i32
      %197 = tpu.dynamic_rotate %165 by %c48_i32 dim 1 : vector<16x256xf32>, i32 -> vector<16x256xf32>
      %198 = arith.mulf %63, %197 : vector<16x256xf32>
      %199 = arith.addf %196, %198 : vector<16x256xf32>
      %c45_i32 = arith.constant 45 : i32
      %200 = tpu.dynamic_rotate %165 by %c45_i32 dim 1 : vector<16x256xf32>, i32 -> vector<16x256xf32>
      %201 = arith.mulf %68, %200 : vector<16x256xf32>
      %202 = arith.addf %199, %201 : vector<16x256xf32>
      %c3_i32 = arith.constant 3 : i32
      %203 = tpu.dynamic_rotate %165 by %c3_i32 dim 1 : vector<16x256xf32>, i32 -> vector<16x256xf32>
      %204 = arith.mulf %73, %203 : vector<16x256xf32>
      %205 = arith.addf %202, %204 : vector<16x256xf32>
      %c253_i32 = arith.constant 253 : i32
      %206 = tpu.dynamic_rotate %165 by %c253_i32 dim 1 : vector<16x256xf32>, i32 -> vector<16x256xf32>
      %207 = arith.mulf %78, %206 : vector<16x256xf32>
      %208 = arith.addf %205, %207 : vector<16x256xf32>
      %c211_i32 = arith.constant 211 : i32
      %209 = tpu.dynamic_rotate %165 by %c211_i32 dim 1 : vector<16x256xf32>, i32 -> vector<16x256xf32>
      %210 = arith.mulf %83, %209 : vector<16x256xf32>
      %211 = arith.addf %208, %210 : vector<16x256xf32>
      %c208_i32 = arith.constant 208 : i32
      %212 = tpu.dynamic_rotate %165 by %c208_i32 dim 1 : vector<16x256xf32>, i32 -> vector<16x256xf32>
      %213 = arith.mulf %88, %212 : vector<16x256xf32>
      %214 = arith.addf %211, %213 : vector<16x256xf32>
      %c205_i32 = arith.constant 205 : i32
      %215 = tpu.dynamic_rotate %165 by %c205_i32 dim 1 : vector<16x256xf32>, i32 -> vector<16x256xf32>
      %216 = arith.mulf %93, %215 : vector<16x256xf32>
      %217 = arith.addf %214, %216 : vector<16x256xf32>
      %218 = tpu.concatenate %191, %217 in 0 : vector<16x256xf32>, vector<16x256xf32> -> vector<32x256xf32>
      %cst_39 = arith.constant 5.000000e-01 : f32
      %219 = vector.broadcast %cst_39 : f32 to vector<32x256xf32>
      %220 = arith.mulf %219, %218 : vector<32x256xf32>
      %221 = math.tanh %220 : vector<32x256xf32>
      %cst_40 = arith.constant 5.000000e-01 : f32
      %222 = vector.broadcast %cst_40 : f32 to vector<32x256xf32>
      %223 = arith.mulf %222, %221 : vector<32x256xf32>
      %cst_41 = arith.constant 5.000000e-01 : f32
      %224 = vector.broadcast %cst_41 : f32 to vector<32x256xf32>
      %225 = arith.addf %223, %224 : vector<32x256xf32>
      %226 = arith.mulf %141, %225 : vector<32x256xf32>
      %cst_42 = arith.constant dense<0.000000e+00> : vector<32xf32>
      %227 = vector.multi_reduction <add>, %226, %cst_42 [1] : vector<32x256xf32> to vector<32xf32>
      %228 = vector.shape_cast %227 : vector<32xf32> to vector<32x1xf32>
      %cst_43 = arith.constant 3.906250e-03 : f32
      %229 = vector.broadcast %cst_43 : f32 to vector<32x1xf32>
      %230 = arith.mulf %228, %229 : vector<32x1xf32>
      %231 = arith.mulf %226, %226 : vector<32x256xf32>
      %cst_44 = arith.constant dense<0.000000e+00> : vector<32xf32>
      %232 = vector.multi_reduction <add>, %231, %cst_44 [1] : vector<32x256xf32> to vector<32xf32>
      %233 = vector.shape_cast %232 : vector<32xf32> to vector<32x1xf32>
      %cst_45 = arith.constant 3.906250e-03 : f32
      %234 = vector.broadcast %cst_45 : f32 to vector<32x1xf32>
      %235 = arith.mulf %233, %234 : vector<32x1xf32>
      %236 = arith.mulf %230, %230 : vector<32x1xf32>
      %237 = arith.subf %235, %236 : vector<32x1xf32>
      %cst_46 = arith.constant 9.99999974E-6 : f32
      %238 = vector.broadcast %cst_46 : f32 to vector<32x1xf32>
      %239 = arith.addf %237, %238 : vector<32x1xf32>
      %240 = math.rsqrt %239 : vector<32x1xf32>
      %241 = arith.mulf %3, %240 : vector<32x1xf32>
      %242 = arith.mulf %230, %241 : vector<32x1xf32>
      %243 = arith.subf %4, %242 : vector<32x1xf32>
      %244 = vector.broadcast %241 : vector<32x1xf32> to vector<32x256xf32>
      %245 = arith.mulf %226, %244 : vector<32x256xf32>
      %246 = vector.broadcast %243 : vector<32x1xf32> to vector<32x256xf32>
      %247 = arith.addf %245, %246 : vector<32x256xf32>
      %cst_47 = arith.constant 0.000000e+00 : f32
      %248 = vector.broadcast %cst_47 : f32 to vector<32x256xf32>
      %249 = arith.maximumf %247, %248 : vector<32x256xf32>
      %250 = vector.broadcast %137 : vector<32x1xf32> to vector<32x256xf32>
      %251 = arith.mulf %250, %249 : vector<32x256xf32>
      %c17_i32_48 = arith.constant 17 : i32
      %252 = tpu.dynamic_rotate %249 by %c17_i32_48 dim 1 : vector<32x256xf32>, i32 -> vector<32x256xf32>
      %253 = arith.mulf %101, %252 : vector<32x256xf32>
      %254 = arith.addf %251, %253 : vector<32x256xf32>
      %c16_i32_49 = arith.constant 16 : i32
      %255 = tpu.dynamic_rotate %249 by %c16_i32_49 dim 1 : vector<32x256xf32>, i32 -> vector<32x256xf32>
      %256 = arith.mulf %106, %255 : vector<32x256xf32>
      %257 = arith.addf %254, %256 : vector<32x256xf32>
      %c15_i32_50 = arith.constant 15 : i32
      %258 = tpu.dynamic_rotate %249 by %c15_i32_50 dim 1 : vector<32x256xf32>, i32 -> vector<32x256xf32>
      %259 = arith.mulf %111, %258 : vector<32x256xf32>
      %260 = arith.addf %257, %259 : vector<32x256xf32>
      %c1_i32_51 = arith.constant 1 : i32
      %261 = tpu.dynamic_rotate %249 by %c1_i32_51 dim 1 : vector<32x256xf32>, i32 -> vector<32x256xf32>
      %262 = arith.mulf %116, %261 : vector<32x256xf32>
      %263 = arith.addf %260, %262 : vector<32x256xf32>
      %c255_i32_52 = arith.constant 255 : i32
      %264 = tpu.dynamic_rotate %249 by %c255_i32_52 dim 1 : vector<32x256xf32>, i32 -> vector<32x256xf32>
      %265 = arith.mulf %121, %264 : vector<32x256xf32>
      %266 = arith.addf %263, %265 : vector<32x256xf32>
      %c241_i32_53 = arith.constant 241 : i32
      %267 = tpu.dynamic_rotate %249 by %c241_i32_53 dim 1 : vector<32x256xf32>, i32 -> vector<32x256xf32>
      %268 = arith.mulf %126, %267 : vector<32x256xf32>
      %269 = arith.addf %266, %268 : vector<32x256xf32>
      %c240_i32_54 = arith.constant 240 : i32
      %270 = tpu.dynamic_rotate %249 by %c240_i32_54 dim 1 : vector<32x256xf32>, i32 -> vector<32x256xf32>
      %271 = arith.mulf %131, %270 : vector<32x256xf32>
      %272 = arith.addf %269, %271 : vector<32x256xf32>
      %c239_i32_55 = arith.constant 239 : i32
      %273 = tpu.dynamic_rotate %249 by %c239_i32_55 dim 1 : vector<32x256xf32>, i32 -> vector<32x256xf32>
      %274 = arith.mulf %136, %273 : vector<32x256xf32>
      %275 = arith.addf %272, %274 : vector<32x256xf32>
      %cst_56 = arith.constant dense<0.000000e+00> : vector<32xf32>
      %276 = vector.multi_reduction <add>, %275, %cst_56 [1] : vector<32x256xf32> to vector<32xf32>
      %277 = vector.shape_cast %276 : vector<32xf32> to vector<32x1xf32>
      %cst_57 = arith.constant 2.560000e+02 : f32
      %278 = vector.broadcast %cst_57 : f32 to vector<32x1xf32>
      %279 = arith.divf %277, %278 : vector<32x1xf32>
      %280 = vector.broadcast %279 : vector<32x1xf32> to vector<32x2xf32>
      %281 = arith.mulf %5, %280 : vector<32x2xf32>
      %cst_58 = arith.constant dense<0.000000e+00> : vector<2xf32>
      %282 = vector.multi_reduction <add>, %281, %cst_58 [0] : vector<32x2xf32> to vector<2xf32>
      %283 = vector.shape_cast %282 : vector<2xf32> to vector<1x2xf32>
      %284 = arith.addf %283, %6 : vector<1x2xf32>
      %cst_59 = arith.constant 0.000000e+00 : f32
      %285 = vector.broadcast %cst_59 : f32 to vector<1x2xf32>
      %286 = arith.maximumf %284, %285 : vector<1x2xf32>
      %287 = vector.broadcast %286 : vector<1x2xf32> to vector<32x2xf32>
      %288 = arith.mulf %7, %287 : vector<32x2xf32>
      %cst_60 = arith.constant dense<0.000000e+00> : vector<32xf32>
      %289 = vector.multi_reduction <add>, %288, %cst_60 [1] : vector<32x2xf32> to vector<32xf32>
      %290 = vector.shape_cast %289 : vector<32xf32> to vector<32x1xf32>
      %291 = arith.addf %290, %8 : vector<32x1xf32>
      %cst_61 = arith.constant 5.000000e-01 : f32
      %292 = vector.broadcast %cst_61 : f32 to vector<32x1xf32>
      %293 = arith.mulf %292, %291 : vector<32x1xf32>
      %294 = math.tanh %293 : vector<32x1xf32>
      %cst_62 = arith.constant 5.000000e-01 : f32
      %295 = vector.broadcast %cst_62 : f32 to vector<32x1xf32>
      %296 = arith.mulf %295, %294 : vector<32x1xf32>
      %cst_63 = arith.constant 5.000000e-01 : f32
      %297 = vector.broadcast %cst_63 : f32 to vector<32x1xf32>
      %298 = arith.addf %296, %297 : vector<32x1xf32>
      %299 = vector.broadcast %298 : vector<32x1xf32> to vector<32x256xf32>
      %300 = arith.mulf %275, %299 : vector<32x256xf32>
      %301 = arith.addf %141, %300 : vector<32x256xf32>
      %302 = arith.index_cast %arg17 : i32 to index
      %c0_64 = arith.constant 0 : index
      %c0_65 = arith.constant 0 : index
      %303 = vector.load %arg16[%302, %c0_64, %c0_65] : memref<4x32x256xf32, #tpu.memory_space<vmem>>, vector<1x32x256xf32>
      %304 = vector.shape_cast %303 : vector<1x32x256xf32> to vector<32x256xf32>
      %305 = vector.shape_cast %301 : vector<32x256xf32> to vector<1x32x256xf32>
      tpu.vector_store %arg16[%302, %c0_64, %c0_65], %305 {strides = array<i32>} : memref<4x32x256xf32, #tpu.memory_space<vmem>>, vector<1x32x256xf32>,
    }
    %c4_i32_29 = arith.constant 4 : i32
    return
  }
  func.func @transform_0(%arg0: i32) -> (i32, i32, i32) {
    %c0_i32 = arith.constant 0 : i32
    %c0_i32_0 = arith.constant 0 : i32
    %c0_i32_1 = arith.constant 0 : i32
    return %arg0, %c0_i32, %c0_i32_0 : i32, i32, i32
  }
  func.func @transform_1(%arg0: i32) -> (i32, i32) {
    %c0_i32 = arith.constant 0 : i32
    %c0_i32_0 = arith.constant 0 : i32
    %c0_i32_1 = arith.constant 0 : i32
    return %c0_i32, %c0_i32_0 : i32, i32
  }
  func.func @transform_2(%arg0: i32) -> (i32, i32) {
    %c0_i32 = arith.constant 0 : i32
    %c0_i32_0 = arith.constant 0 : i32
    %c0_i32_1 = arith.constant 0 : i32
    return %c0_i32, %c0_i32_0 : i32, i32
  }
  func.func @transform_3(%arg0: i32) -> (i32, i32) {
    %c0_i32 = arith.constant 0 : i32
    %c0_i32_0 = arith.constant 0 : i32
    %c0_i32_1 = arith.constant 0 : i32
    return %c0_i32, %c0_i32_0 : i32, i32
  }
  func.func @transform_4(%arg0: i32) -> (i32, i32) {
    %c0_i32 = arith.constant 0 : i32
    %c0_i32_0 = arith.constant 0 : i32
    %c0_i32_1 = arith.constant 0 : i32
    return %c0_i32, %c0_i32_0 : i32, i32
  }
  func.func @transform_5(%arg0: i32) -> (i32, i32) {
    %c0_i32 = arith.constant 0 : i32
    %c0_i32_0 = arith.constant 0 : i32
    %c0_i32_1 = arith.constant 0 : i32
    return %c0_i32, %c0_i32_0 : i32, i32
  }
  func.func @transform_6(%arg0: i32) -> (i32, i32) {
    %c0_i32 = arith.constant 0 : i32
    %c0_i32_0 = arith.constant 0 : i32
    %c0_i32_1 = arith.constant 0 : i32
    return %c0_i32, %c0_i32_0 : i32, i32
  }
  func.func @transform_7(%arg0: i32) -> (i32, i32) {
    %c0_i32 = arith.constant 0 : i32
    %c0_i32_0 = arith.constant 0 : i32
    %c0_i32_1 = arith.constant 0 : i32
    return %c0_i32, %c0_i32_0 : i32, i32
  }
  func.func @transform_8(%arg0: i32) -> (i32, i32) {
    %c0_i32 = arith.constant 0 : i32
    %c0_i32_0 = arith.constant 0 : i32
    %c0_i32_1 = arith.constant 0 : i32
    return %c0_i32, %c0_i32_0 : i32, i32
  }
  func.func @transform_9(%arg0: i32) -> (i32, i32) {
    %c0_i32 = arith.constant 0 : i32
    %c0_i32_0 = arith.constant 0 : i32
    %c0_i32_1 = arith.constant 0 : i32
    return %c0_i32, %c0_i32_0 : i32, i32
  }
  func.func @transform_10(%arg0: i32) -> (i32, i32) {
    %c0_i32 = arith.constant 0 : i32
    %c0_i32_0 = arith.constant 0 : i32
    %c0_i32_1 = arith.constant 0 : i32
    return %c0_i32, %c0_i32_0 : i32, i32
  }
  func.func @transform_11(%arg0: i32) -> (i32, i32) {
    %c0_i32 = arith.constant 0 : i32
    %c0_i32_0 = arith.constant 0 : i32
    %c0_i32_1 = arith.constant 0 : i32
    return %c0_i32, %c0_i32_0 : i32, i32
  }
  func.func @transform_12(%arg0: i32) -> (i32, i32) {
    %c0_i32 = arith.constant 0 : i32
    %c0_i32_0 = arith.constant 0 : i32
    %c0_i32_1 = arith.constant 0 : i32
    return %c0_i32, %c0_i32_0 : i32, i32
  }
  func.func @transform_13(%arg0: i32) -> (i32, i32) {
    %c0_i32 = arith.constant 0 : i32
    %c0_i32_0 = arith.constant 0 : i32
    %c0_i32_1 = arith.constant 0 : i32
    return %c0_i32, %c0_i32_0 : i32, i32
  }
  func.func @transform_14(%arg0: i32) -> (i32, i32) {
    %c0_i32 = arith.constant 0 : i32
    %c0_i32_0 = arith.constant 0 : i32
    %c0_i32_1 = arith.constant 0 : i32
    return %c0_i32, %c0_i32_0 : i32, i32
  }
  func.func @transform_15(%arg0: i32) -> (i32, i32, i32) {
    %c0_i32 = arith.constant 0 : i32
    %c0_i32_0 = arith.constant 0 : i32
    %c0_i32_1 = arith.constant 0 : i32
    return %arg0, %c0_i32, %c0_i32_0 : i32, i32, i32
  }
}

</mosaic_0001>

<bundles_post_ra>
// kernel: tpu_custom_call.1
= control target key start
LH: loop header
LB: loop body
LE: loop exit
PB: predicated region body
PF: predicated region fallthrough
CT: control target
= control target key end

     0   :  { %20 = vsyncpa [#allocation3], 0  ;;  %s4062_s0 = inlined_call_operand.hbm [shape: f32[4,32,256], index: 0, kind: input, shape index: {}]   ;;  %s4063_s1 = inlined_call_operand.vmem [shape: f32[16,32], index: 1, kind: input, shape index: {}]   ;;  %s4064_s2 = inlined_call_operand.vmem [shape: f32[16,1], index: 2, kind: input, shape index: {}]   ;;  %s4065_s3 = inlined_call_operand.vmem [shape: f32[16,1], index: 3, kind: input, shape index: {}]   ;;  %s4066_s4 = inlined_call_operand.vmem [shape: f32[16,9], index: 4, kind: input, shape index: {}]   ;;  %s4067_s5 = inlined_call_operand.vmem [shape: f32[16,9], index: 5, kind: input, shape index: {}]   ;;  %s4068_s6 = inlined_call_operand.vmem [shape: f32[9,256], index: 6, kind: input, shape index: {}]   ;;  %s4069_s7 = inlined_call_operand.vmem [shape: f32[9,256], index: 7, kind: input, shape index: {}]   ;;  %s4070_s8 = inlined_call_operand.vmem [shape: f32[32,1], index: 8, kind: input, shape index: {}]   ;;  %s4071_s9 = inlined_call_operand.vmem [shape: f32[32,1], index: 9, kind: input, shape index: {}]   ;;  %s4072_s10 = inlined_call_operand.vmem [shape: f32[32,9], index: 10, kind: input, shape index: {}]   ;;  %s4073_s11 = inlined_call_operand.vmem [shape: f32[32,2], index: 11, kind: input, shape index: {}]   ;;  %s4074_s12 = inlined_call_operand.vmem [shape: f32[1,2], index: 12, kind: input, shape index: {}]   ;;  %s4075_s13 = inlined_call_operand.vmem [shape: f32[32,2], index: 13, kind: input, shape index: {}]   ;;  %s4076_s14 = inlined_call_operand.vmem [shape: f32[32,1], index: 14, kind: input, shape index: {}]   ;;  %s4077_s15 = inlined_call_operand.hbm [shape: f32[4,32,256], index: 15, kind: output, shape index: {}]  }
   0x1   :  { %21 = vsyncpa [#allocation4], 0  ;;  %s2017_s18 = smov [#allocation2]  }
   0x2   :  { %s27_s19 = sshll.u32 %s2017_s18, 4  ;;  %s28_s19 = int_to_ptr.vmem [resolvable:$true] %s27_s19 }
   0x3   :  { %s1973_s20 = scalar_lea.vmem %s28_s19, 4096  ;;  %p1978_p1 = scmp.lt.s32.totalorder %s28_s19, %s28_s19 }
   0x4   :  { %p1974_p0 = scmp.ne.s32.totalorder %s28_s19, %s1973_s20  ;;  %p1979_p2 = scmp.lt.s32.totalorder %s1973_s20, %s1973_s20 }
   0x6   :  { %p1980_p3 = por %p1979_p2, %p1978_p1 }
   0x8   :  { %p1981_p4 = pnand %p1980_p3, %p1974_p0 }
   0xa   :  { %1984 = shalt.err (!%p1981_p4)
}
   0xb   :  { %s2018_s21 = smov 256   ;;  %s2019_s22 = smov 16  }
   0xc   :  { %33 = dma.hbm_to_vmem [thread:$0]  %s4062_s0, 4096, %s28_s19, [#allocation3], %s2018_s21, %s2018_s21, %s2019_s22  }
   0xd   :  { %2009 = dma.done.wait [#allocation3], 4096  }
   0xe   :  { %2010 = vsyncadd [#allocation3], 4294963200  ;;  %v2020_v0 = vmov 1   ;;  %v2021_v1 = vmov 0   ;;  %v2139_v2 = vld [vmem:[%s4063_s1] sm:$0xff]  ;;  %v2144_v3 = vld [vmem:[%s4063_s1 + $0x8] sm:$0xff]  ;;  %v4078_v43 = vlaneseq }
   0xf   :  { %1881 = vset.pattern.permute.xlu1 %v2020_v0  ;;  %1880 = vset.pattern.permute.xlu0 %v2021_v1  ;;  %4114 = vst [vmem:[#allocation8_spill] sm:$0xff] %v2139_v2  ;;  %4115 = vst [vmem:[#allocation9_spill] sm:$0xff] %v2144_v3  ;;  %v2149_v4 = vld [vmem:[%s4064_s2] sm:$0xff]  ;;  %v2154_v5 = vld [vmem:[%s4064_s2 + $0x8] sm:$0xff]  ;;  %v2022_v32 = vmov 2   ;;  %v2023_v34 = vmov 3  }
  0x10   :  { %4116 = vst [vmem:[#allocation10_spill] sm:$0xff] %v2149_v4  ;;  %4117 = vst [vmem:[#allocation11_spill] sm:$0xff] %v2154_v5  ;;  %v2159_v6 = vld [vmem:[%s4065_s3] sm:$0xff]  ;;  %v2164_v7 = vld [vmem:[%s4065_s3 + $0x8] sm:$0xff]  ;;  %v4082_v36 = vmov 5   ;;  %v4081_v38 = vmov 6  }
  0x11   :  { %4118 = vst [vmem:[#allocation12_spill] sm:$0xff] %v2159_v6  ;;  %4119 = vst [vmem:[#allocation13_spill] sm:$0xff] %v2164_v7  ;;  %v2169_v8 = vld [vmem:[%s4070_s8] sm:$0xff]  ;;  %v2174_v9 = vld [vmem:[%s4070_s8 + $0x8] sm:$0xff]  ;;  %v4080_v40 = vmov 7   ;;  %v4079_v42 = vmov 8  }
  0x12   :  { %4120 = vst [vmem:[#allocation14_spill] sm:$0xff] %v2169_v8  ;;  %4121 = vst [vmem:[#allocation15_spill] sm:$0xff] %v2174_v9  ;;  %v2179_v10 = vld [vmem:[%s4070_s8 + $0x10] sm:$0xff]  ;;  %v2184_v11 = vld [vmem:[%s4070_s8 + $0x18] sm:$0xff]  ;;  %v2383_v44 = vshrl.u32 %v4078_v43, 7  ;;  %v4169_v9 = vmov 6  }
  0x13   :  { %4122 = vst [vmem:[#allocation16_spill] sm:$0xff] %v2179_v10  ;;  %4123 = vst [vmem:[#allocation17_spill] sm:$0xff] %v2184_v11  ;;  %v2189_v12 = vld [vmem:[%s4071_s9] sm:$0xff]  ;;  %v2194_v13 = vld [vmem:[%s4071_s9 + $0x8] sm:$0xff] }
  0x14   :  { %4124 = vst [vmem:[#allocation18_spill] sm:$0xff] %v2189_v12  ;;  %4125 = vst [vmem:[#allocation19_spill] sm:$0xff] %v2194_v13  ;;  %v2199_v14 = vld [vmem:[%s4071_s9 + $0x10] sm:$0xff]  ;;  %v2204_v15 = vld [vmem:[%s4071_s9 + $0x18] sm:$0xff]  ;;  %v130_v45 = vsub.s32 1, %v2383_v44  ;;  %v2398_v48 = vsub.s32 0, %v2383_v44 }
  0x15   :  { %4126 = vst [vmem:[#allocation20_spill] sm:$0xff] %v2199_v14  ;;  %4127 = vst [vmem:[#allocation21_spill] sm:$0xff] %v2204_v15  ;;  %v2209_v16 = vld [vmem:[%s4073_s11] sm:$0xff]  ;;  %v2214_v17 = vld [vmem:[%s4073_s11 + $0x8] sm:$0xff]  ;;  %v2430_v59 = vsub.s32 2, %v2383_v44 }
  0x16   :  { %4128 = vst [vmem:[#allocation22_spill] sm:$0xff] %v2209_v16  ;;  %4129 = vst [vmem:[#allocation23_spill] sm:$0xff] %v2214_v17  ;;  %v2219_v18 = vld [vmem:[%s4073_s11 + $0x10] sm:$0xff]  ;;  %v2224_v19 = vld [vmem:[%s4073_s11 + $0x18] sm:$0xff] }
  0x17   :  { %4130 = vst [vmem:[#allocation24_spill] sm:$0xff] %v2219_v18  ;;  %4131 = vst [vmem:[#allocation25_spill] sm:$0xff] %v2224_v19  ;;  %v2229_v20 = vld [vmem:[%s4074_s12] sm:$0x1]  ;;  %v2239_v22 = vld [vmem:[%s4075_s13 + $0x8] sm:$0xff] }
  0x18   :  { %4132 = vst [vmem:[#allocation26_spill] sm:$0xff] %v2229_v20  ;;  %v2234_v21 = vld [vmem:[%s4075_s13] sm:$0xff]  ;;  %4134 = vst [vmem:[#allocation28_spill] sm:$0xff] %v2239_v22  ;;  %v2244_v23 = vld [vmem:[%s4075_s13 + $0x10] sm:$0xff] }
  0x19   :  { %4133 = vst [vmem:[#allocation27_spill] sm:$0xff] %v2234_v21  ;;  %4135 = vst [vmem:[#allocation29_spill] sm:$0xff] %v2244_v23  ;;  %v2249_v24 = vld [vmem:[%s4075_s13 + $0x18] sm:$0xff]  ;;  %v2254_v25 = vld [vmem:[%s4076_s14] sm:$0xff]  ;;  %v2497_v23 = vsub.s32 5, %v2383_v44 }
  0x1a   :  { %4136 = vst [vmem:[#allocation30_spill] sm:$0xff] %v2249_v24  ;;  %4137 = vst [vmem:[#allocation31_spill] sm:$0xff] %v2254_v25  ;;  %v2259_v26 = vld [vmem:[%s4076_s14 + $0x8] sm:$0xff]  ;;  %v2264_v27 = vld [vmem:[%s4076_s14 + $0x10] sm:$0xff] }
  0x1b   :  { %4138 = vst [vmem:[#allocation32_spill] sm:$0xff] %v2259_v26  ;;  %4139 = vst [vmem:[#allocation33_spill] sm:$0xff] %v2264_v27  ;;  %v2269_v28 = vld [vmem:[%s4076_s14 + $0x18] sm:$0xff]  ;;  %v2274_v29 = vld [vmem:[%s4066_s4] sm:$0xff] }
  0x1c   :  { %4140 = vst [vmem:[#allocation34_spill] sm:$0xff] %v2269_v28  ;;  %4141 = vst [vmem:[#allocation35_spill] sm:$0xff] %v2274_v29  ;;  %121 = vperm.xlu1 %1881, %v2274_v29   ;;  %100 = vperm.xlu0 %1880, %v2274_v29   ;;  %v2281_v30 = vld [vmem:[%s4066_s4 + $0x8] sm:$0xff]  ;;  %v2288_v31 = vld [vmem:[%s4067_s5] sm:$0xff] }
  0x1d   :  { %4142 = vst [vmem:[#allocation36_spill] sm:$0xff] %v2281_v30  ;;  %4143 = vst [vmem:[#allocation37_spill] sm:$0xff] %v2288_v31  ;;  %v2296_v33 = vld [vmem:[%s4072_s10 + $0x10] sm:$0xff]  ;;  %v2304_v35 = vld [vmem:[%s4067_s5 + $0x8] sm:$0xff] }
  0x1e   :  { %4144 = vst [vmem:[#allocation38_spill] sm:$0xff] %v2296_v33  ;;  %4145 = vst [vmem:[#allocation39_spill] sm:$0xff] %v2304_v35  ;;  %v2312_v37 = vld [vmem:[%s4072_s10 + $0x8] sm:$0xff]  ;;  %v2324_v39 = vld [vmem:[%s4072_s10] sm:$0xff] }
  0x1f   :  { %4146 = vst [vmem:[#allocation40_spill] sm:$0xff] %v2312_v37  ;;  %4147 = vst [vmem:[#allocation41_spill] sm:$0xff] %v2324_v39  ;;  %v2332_v41 = vld [vmem:[%s4072_s10 + $0x18] sm:$0xff]  ;;  %v2390_v46 = vld [vmem:[%s4068_s6] sm:$0xff] }
  0x20   :  { %125 = vperm.xlu1 %1881, %v2281_v30   ;;  %105 = vperm.xlu0 %1880, %v2281_v30   ;;  %4148 = vst [vmem:[#allocation42_spill] sm:$0xff] %v2332_v41  ;;  %v2395_v47 = vld [vmem:[%s4068_s6 + $0x8] sm:$0xff]  ;;  %4149 = vst [vmem:[#allocation43_spill] sm:$0xff] %v2398_v48  ;;  %v2402_v49 = vrot.slane %v2390_v46, %v130_v45  ;;  %v2409_v51 = vrot.slane %v2390_v46, %v2398_v48  ;;  %v2435_v61 = vld [vmem:[%s4069_s7] sm:$0xff] }
  0x21   :  { %v2405_v50 = vrot.slane %v2395_v47, %v130_v45  ;;  %v2413_v52 = vrot.slane %v2395_v47, %v2398_v48  ;;  %v2440_v62 = vld [vmem:[%s4069_s7 + $0x8] sm:$0xff]  ;;  %v2461_v43 = vrot.slane %v2395_v47, %v2430_v59  ;;  %v2514_v20 = vrot.slane %v2390_v46, %v2497_v23 }
  0x22   :  { %v2518_v19 = vrot.slane %v2395_v47, %v2497_v23  ;;  %v2524_v18 = vrot.slane %v2440_v62, %v130_v45 }
  0x24   :  { %1882 = vset.pattern.permute.xlu1 %v2022_v32  ;;  %268 = vperm.xlu0 %1880, %v2288_v31  }
  0x25   :  { %145 = vperm.xlu1 %1882, %v2281_v30  }
  0x28   :  { %444 = vperm.xlu0 %1880, %v2296_v33  }
  0x29   :  { %1883 = vset.pattern.permute.xlu1 %v2023_v34 }
  0x2a   :  { %161 = vperm.xlu1 %1883, %v2274_v29  }
  0x2c   :  { %1897 = vset.pattern.permute.xlu0 %v2020_v0 }
  0x2d   :  { %293 = vperm.xlu0 %1897, %v2304_v35  }
  0x2e   :  { %1884 = vset.pattern.permute.xlu1 %v4082_v36 }
  0x2f   :  { %181 = vperm.xlu1 %1884, %v2274_v29  }
  0x31   :  { %465 = vperm.xlu0 %1897, %v2312_v37  }
  0x33   :  { %185 = vperm.xlu1 %1884, %v2281_v30  }
  0x35   :  { %1899 = vset.pattern.permute.xlu0 %v2022_v32 }
  0x36   :  { %141 = vperm.xlu0 %1899, %v2274_v29  }
  0x37   :  { %1885 = vset.pattern.permute.xlu1 %v4081_v38 }
  0x38   :  { %205 = vperm.xlu1 %1885, %v2281_v30  }
  0x3a   :  { %485 = vperm.xlu0 %1899, %v2324_v39  }
  0x3c   :  { %1886 = vset.pattern.permute.xlu1 %v4080_v40 }
  0x3d   :  { %221 = vperm.xlu1 %1886, %v2274_v29  }
  0x3e   :  { %497 = vperm.xlu0 %1899, %v2332_v41  }
  0x41   :  { %1887 = vset.pattern.permute.xlu1 %v4079_v42 }
  0x42   :  { %241 = vperm.xlu1 %1887, %v2274_v29   ;;  %1901 = vset.pattern.permute.xlu0 %v2023_v34 }
  0x43   :  { %165 = vperm.xlu0 %1901, %v2281_v30  }
  0x46   :  { %245 = vperm.xlu1 %1887, %v2281_v30  }
  0x47   :  { %329 = vperm.xlu0 %1901, %v2288_v31  }
  0x4a   :  { %1888 = vset.pattern.permute.xlu1 %v2021_v1 }
  0x4b   :  { %273 = vperm.xlu1 %1888, %v2304_v35   ;;  %513 = vperm.xlu0 %1901, %v2312_v37  }
  0x4f   :  { %1889 = vset.pattern.permute.xlu1 %v2020_v0  ;;  %1903 = vset.pattern.permute.xlu0 %v4082_v36 }
  0x50   :  { %289 = vperm.xlu1 %1889, %v2288_v31   ;;  %353 = vperm.xlu0 %1903, %v2304_v35  }
  0x54   :  { %1890 = vset.pattern.permute.xlu1 %v2022_v32  ;;  %533 = vperm.xlu0 %1903, %v2324_v39  }
  0x55   :  { %309 = vperm.xlu1 %1890, %v2288_v31  }
  0x58   :  { %545 = vperm.xlu0 %1903, %v2332_v41  }
  0x59   :  { %313 = vperm.xlu1 %1890, %v2304_v35  }
  0x5c   :  { %1905 = vset.pattern.permute.xlu0 %v4081_v38 }
  0x5d   :  { %1891 = vset.pattern.permute.xlu1 %v2023_v34  ;;  %201 = vperm.xlu0 %1905, %v2274_v29  }
  0x5e   :  { %333 = vperm.xlu1 %1891, %v2304_v35  }
  0x61   :  { %561 = vperm.xlu0 %1905, %v2312_v37  }
  0x62   :  { %1892 = vset.pattern.permute.xlu1 %v4082_v36 }
  0x63   :  { %349 = vperm.xlu1 %1892, %v2288_v31  }
  0x65   :  { %1907 = vset.pattern.permute.xlu0 %v4080_v40 }
  0x66   :  { %225 = vperm.xlu0 %1907, %v2281_v30  }
  0x67   :  { %1893 = vset.pattern.permute.xlu1 %v4081_v38 }
  0x68   :  { %369 = vperm.xlu1 %1893, %v2288_v31  }
  0x6a   :  { %389 = vperm.xlu0 %1907, %v2288_v31  }
  0x6c   :  { %373 = vperm.xlu1 %1893, %v2304_v35  }
  0x6e   :  { %581 = vperm.xlu0 %1907, %v2324_v39  }
  0x70   :  { %1894 = vset.pattern.permute.xlu1 %v4080_v40 }
  0x71   :  { %393 = vperm.xlu1 %1894, %v2304_v35  }
  0x72   :  { %593 = vperm.xlu0 %1907, %v2332_v41  }
  0x75   :  { %1895 = vset.pattern.permute.xlu1 %v4079_v42 }
  0x76   :  { %409 = vperm.xlu1 %1895, %v2288_v31   ;;  %1909 = vset.pattern.permute.xlu0 %v4079_v42  ;;  %v2469_v42 = vrot.slane %v2435_v61, %v2398_v48 }
  0x77   :  { %413 = vperm.xlu0 %1909, %v2304_v35  }
  0x7a   :  { %1896 = vset.pattern.permute.xlu1 %v2021_v1 }
  0x7b   :  { %434 = vperm.xlu1 %1896, %v2324_v39   ;;  %609 = vperm.xlu0 %1909, %v2312_v37  }
  0x7f   :  { %439 = vperm.xlu1 %1896, %v2312_v37  }
  0x83   :  { %449 = vperm.xlu1 %1896, %v2332_v41  }
  0x87   :  { %1898 = vset.pattern.permute.xlu1 %v2020_v0 }
  0x88   :  { %461 = vperm.xlu1 %1898, %v2324_v39  }
  0x8c   :  { %469 = vperm.xlu1 %1898, %v2296_v33  }
  0x90   :  { %473 = vperm.xlu1 %1898, %v2332_v41  }
  0x94   :  { %1900 = vset.pattern.permute.xlu1 %v2022_v32 }
  0x95   :  { %489 = vperm.xlu1 %1900, %v2312_v37  }
  0x97   :  { %v122_v53 = vpop.permute.xlu1 %121  ;;  %v101_v54 = vpop.permute.xlu0 %100 }
  0x98   :  { %v2417_v55 = vmul.f32 %v2402_v49, %v122_v53  ;;  %v2420_v56 = vmul.f32 %v2405_v50, %v122_v53  ;;  %v2423_v57 = vmul.f32 %v2409_v51, %v101_v54  ;;  %v2426_v58 = vmul.f32 %v2413_v52, %v101_v54 }
  0x99   :  { %493 = vperm.xlu1 %1900, %v2296_v33   ;;  %v2457_v54 = vrot.slane %v2390_v46, %v2430_v59 }
  0x9a   :  { %4150 = vst [vmem:[#allocation44_spill] sm:$0xff] %v2417_v55 }
  0x9b   :  { %v126_v60 = vpop.permute.xlu1 %125  ;;  %v106_v63 = vpop.permute.xlu0 %105 }
  0x9c   :  { %v2443_v0 = vmul.f32 %v2402_v49, %v126_v60  ;;  %v2446_v1 = vmul.f32 %v2405_v50, %v126_v60  ;;  %v2449_v32 = vmul.f32 %v2409_v51, %v106_v63  ;;  %v2452_v53 = vmul.f32 %v2413_v52, %v106_v63 }
  0x9d   :  { %1902 = vset.pattern.permute.xlu1 %v2023_v34  ;;  %v2465_v60 = vsub.s32 3, %v2383_v44  ;;  %v2473_v34 = vrot.slane %v2440_v62, %v2398_v48 }
  0x9e   :  { %4151 = vst [vmem:[#allocation45_spill] sm:$0xff] %v2443_v0  ;;  %4152 = vst [vmem:[#allocation46_spill] sm:$0xff] %v2446_v1  ;;  %509 = vperm.xlu1 %1902, %v2324_v39  }
  0x9f   :  { %4153 = vst [vmem:[#allocation47_spill] sm:$0xff] %v2449_v32  ;;  %v269_v63 = vpop.permute.xlu0 %268  ;;  %v2490_v25 = vrot.slane %v2390_v46, %v2465_v60  ;;  %v2494_v26 = vrot.slane %v2395_v47, %v2465_v60 }
  0xa0   :  { %v146_v40 = vpop.permute.xlu1 %145  ;;  %v2476_v38 = vmul.f32 %v2469_v42, %v269_v63  ;;  %v2479_v36 = vmul.f32 %v2473_v34, %v269_v63 }
  0xa1   :  { %v2482_v27 = vmul.f32 %v2457_v54, %v146_v40  ;;  %v2485_v28 = vmul.f32 %v2461_v43, %v146_v40 }
  0xa2   :  { %4154 = vst [vmem:[#allocation48_spill] sm:$0xff] %v2476_v38  ;;  %4155 = vst [vmem:[#allocation49_spill] sm:$0xff] %v2479_v36  ;;  %517 = vperm.xlu1 %1902, %v2296_v33   ;;  %v339_v38 = vrot.slane %v2435_v61, %v2465_v60 }
  0xa3   :  { %4156 = vst [vmem:[#allocation50_spill] sm:$0xff] %v2482_v27  ;;  %4157 = vst [vmem:[#allocation51_spill] sm:$0xff] %v2485_v28  ;;  %v445_v63 = vpop.permute.xlu0 %444 }
  0xa4   :  { %v2500_v24 = vmul.f32 %v445_v63, %v2409_v51  ;;  %v2503_v40 = vmul.f32 %v445_v63, %v2413_v52  ;;  %v2521_v63 = vrot.slane %v2435_v61, %v130_v45  ;;  %v2541_v45 = vsub.s32 6, %v2383_v44 }
  0xa5   :  { %v162_v21 = vpop.permute.xlu1 %161 }
  0xa6   :  { %4158 = vst [vmem:[#allocation52_spill] sm:$0xff] %v2500_v24  ;;  %4159 = vst [vmem:[#allocation53_spill] sm:$0xff] %v2503_v40  ;;  %v2506_v22 = vmul.f32 %v2490_v25, %v162_v21  ;;  %v2509_v48 = vmul.f32 %v2494_v26, %v162_v21  ;;  %521 = vperm.xlu1 %1902, %v2332_v41   ;;  %v4162_v40 = vmov 5   ;;  %v2562_v8 = vrot.slane %v2395_v47, %v2541_v45 }
  0xa8   :  { %v294_v16 = vpop.permute.xlu0 %293 }
  0xa9   :  { %v2527_v21 = vmul.f32 %v2521_v63, %v294_v16  ;;  %v2530_v17 = vmul.f32 %v2524_v18, %v294_v16 }
  0xaa   :  { %1904 = vset.pattern.permute.xlu1 %v4162_v40  ;;  %v182_v24 = vpop.permute.xlu1 %181 }
  0xab   :  { %4160 = vst [vmem:[#allocation54_spill] sm:$0xff] %v2527_v21  ;;  %4161 = vst [vmem:[#allocation55_spill] sm:$0xff] %v2530_v17  ;;  %v2534_v15 = vmul.f32 %v2514_v20, %v182_v24  ;;  %v2537_v14 = vmul.f32 %v2518_v19, %v182_v24  ;;  %537 = vperm.xlu1 %1904, %v2312_v37   ;;  %v2558_v24 = vrot.slane %v2390_v46, %v2541_v45 }
  0xac   :  { %v466_v13 = vpop.permute.xlu0 %465 }
  0xad   :  { %4163 = vst [vmem:[#allocation56_spill] sm:$0xff] %v2537_v14  ;;  %v2544_v12 = vmul.f32 %v466_v13, %v2402_v49  ;;  %v2547_v16 = vmul.f32 %v466_v13, %v2405_v50  ;;  %v2565_v13 = vsub.s32 7, %v2383_v44 }
  0xae   :  { %v186_v40 = vpop.permute.xlu1 %185 }
  0xaf   :  { %4164 = vst [vmem:[#allocation57_spill] sm:$0xff] %v2544_v12  ;;  %4165 = vst [vmem:[#allocation58_spill] sm:$0xff] %v2547_v16  ;;  %v2550_v11 = vmul.f32 %v2514_v20, %v186_v40  ;;  %v2553_v10 = vmul.f32 %v2518_v19, %v186_v40  ;;  %541 = vperm.xlu1 %1904, %v2296_v33   ;;  %v2583_v44 = vrot.slane %v2390_v46, %v2565_v13 }
  0xb1   :  { %4166 = vst [vmem:[#allocation59_spill] sm:$0xff] %v2550_v11  ;;  %4167 = vst [vmem:[#allocation60_spill] sm:$0xff] %v2553_v10  ;;  %v142_v16 = vpop.permute.xlu0 %141  ;;  %v2587_v11 = vrot.slane %v2395_v47, %v2565_v13 }
  0xb2   :  { %v2568_v12 = vmul.f32 %v2457_v54, %v142_v16  ;;  %v2571_v40 = vmul.f32 %v2461_v43, %v142_v16 }
  0xb3   :  { %1906 = vset.pattern.permute.xlu1 %v4169_v9  ;;  %v206_v17 = vpop.permute.xlu1 %205 }
  0xb4   :  { %4168 = vst [vmem:[#allocation61_spill] sm:$0xff] %v2568_v12  ;;  %v2575_v21 = vmul.f32 %v2558_v24, %v206_v17  ;;  %v2578_v10 = vmul.f32 %v2562_v8, %v206_v17  ;;  %557 = vperm.xlu1 %1906, %v2324_v39  }
  0xb5   :  { %v486_v16 = vpop.permute.xlu0 %485 }
  0xb6   :  { %4170 = vst [vmem:[#allocation62_spill] sm:$0xff] %v2575_v21  ;;  %4171 = vst [vmem:[#allocation63_spill] sm:$0xff] %v2578_v10  ;;  %v2590_v9 = vmul.f32 %v486_v16, %v2457_v54  ;;  %v2593_v28 = vmul.f32 %v486_v16, %v2461_v43  ;;  %v2611_v16 = vld [vmem:[%s4068_s6 + $0x10] ss:$0 sm:$0xff] }
  0xb8   :  { %4172 = vst [vmem:[#allocation64_spill] sm:$0xff] %v2590_v9  ;;  %4173 = vst [vmem:[#allocation65_spill] sm:$0xff] %v2593_v28  ;;  %565 = vperm.xlu1 %1906, %v2296_v33   ;;  %v222_v17 = vpop.permute.xlu1 %221  ;;  %v2616_v28 = vld [vmem:[%s4068_s6 + $0x18] ss:$0 sm:$0xff] }
  0xb9   :  { %v2597_v10 = vmul.f32 %v2583_v44, %v222_v17  ;;  %v2600_v46 = vmul.f32 %v2587_v11, %v222_v17  ;;  %v498_v21 = vpop.permute.xlu0 %497 }
  0xba   :  { %v2603_v47 = vmul.f32 %v498_v21, %v2457_v54  ;;  %v2606_v27 = vmul.f32 %v498_v21, %v2461_v43 }
  0xbb   :  { %4174 = vst [vmem:[#allocation66_spill] sm:$0xff] %v2597_v10  ;;  %4175 = vst [vmem:[#allocation67_spill] sm:$0xff] %v2600_v46  ;;  %v4182_v46 = vmov 7  }
  0xbc   :  { %4176 = vst [vmem:[#allocation68_spill] sm:$0xff] %v2603_v47  ;;  %4177 = vst [vmem:[#allocation69_spill] sm:$0xff] %v2606_v27  ;;  %569 = vperm.xlu1 %1906, %v2332_v41  }
  0xbd   :  { %v242_v17 = vpop.permute.xlu1 %241 }
  0xbe   :  { %v2620_v9 = vmul.f32 %v2611_v16, %v242_v17  ;;  %v2623_v47 = vmul.f32 %v2616_v28, %v242_v17  ;;  %v166_v21 = vpop.permute.xlu0 %165 }
  0xbf   :  { %v2626_v27 = vmul.f32 %v2490_v25, %v166_v21  ;;  %v2629_v36 = vmul.f32 %v2494_v26, %v166_v21 }
  0xc0   :  { %4178 = vst [vmem:[#allocation70_spill] sm:$0xff] %v2620_v9  ;;  %4179 = vst [vmem:[#allocation71_spill] sm:$0xff] %v2623_v47  ;;  %1908 = vset.pattern.permute.xlu1 %v4182_v46  ;;  %v343_v9 = vrot.slane %v2440_v62, %v2465_v60 }
  0xc1   :  { %4180 = vst [vmem:[#allocation72_spill] sm:$0xff] %v2626_v27  ;;  %4181 = vst [vmem:[#allocation73_spill] sm:$0xff] %v2629_v36  ;;  %585 = vperm.xlu1 %1908, %v2312_v37   ;;  %v246_v10 = vpop.permute.xlu1 %245 }
  0xc2   :  { %v2638_v17 = vmul.f32 %v2611_v16, %v246_v10  ;;  %v2641_v47 = vmul.f32 %v2616_v28, %v246_v10  ;;  %v330_v27 = vpop.permute.xlu0 %329 }
  0xc3   :  { %v2643_v21 = vmul.f32 %v339_v38, %v330_v27  ;;  %v2645_v36 = vmul.f32 %v343_v9, %v330_v27  ;;  %v359_v27 = vrot.slane %v2435_v61, %v2497_v23 }
  0xc4   :  { %4183 = vst [vmem:[#allocation74_spill] sm:$0xff] %v2638_v17  ;;  %4184 = vst [vmem:[#allocation75_spill] sm:$0xff] %v2641_v47  ;;  %v4190_v47 = vmov 8  }
  0xc5   :  { %4185 = vst [vmem:[#allocation76_spill] sm:$0xff] %v2643_v21  ;;  %4186 = vst [vmem:[#allocation77_spill] sm:$0xff] %v2645_v36  ;;  %589 = vperm.xlu1 %1908, %v2296_v33  }
  0xc6   :  { %v274_v46 = vpop.permute.xlu1 %273  ;;  %v514_v37 = vpop.permute.xlu0 %513 }
  0xc7   :  { %v2649_v14 = vmul.f32 %v2469_v42, %v274_v46  ;;  %v2652_v60 = vmul.f32 %v2473_v34, %v274_v46  ;;  %v2655_v17 = vmul.f32 %v514_v37, %v2490_v25  ;;  %v2658_v10 = vmul.f32 %v514_v37, %v2494_v26 }
  0xc8   :  { %v363_v42 = vrot.slane %v2440_v62, %v2497_v23 }
  0xc9   :  { %4187 = vst [vmem:[#allocation78_spill] sm:$0xff] %v2649_v14  ;;  %4188 = vst [vmem:[#allocation79_spill] sm:$0xff] %v2655_v17  ;;  %1910 = vset.pattern.permute.xlu1 %v4190_v47  ;;  %v319_v47 = vrot.slane %v2435_v61, %v2430_v59  ;;  %v323_v17 = vrot.slane %v2440_v62, %v2430_v59 }
  0xca   :  { %4189 = vst [vmem:[#allocation80_spill] sm:$0xff] %v2658_v10  ;;  %605 = vperm.xlu1 %1910, %v2324_v39  }
  0xcb   :  { %v290_v36 = vpop.permute.xlu1 %289  ;;  %v354_v21 = vpop.permute.xlu0 %353 }
  0xcc   :  { %v2667_v34 = vmul.f32 %v2521_v63, %v290_v36  ;;  %v2670_v46 = vmul.f32 %v2524_v18, %v290_v36  ;;  %v2672_v37 = vmul.f32 %v359_v27, %v354_v21  ;;  %v2674_v10 = vmul.f32 %v363_v42, %v354_v21 }
  0xce   :  { %4191 = vst [vmem:[#allocation81_spill] sm:$0xff] %v2670_v46  ;;  %4192 = vst [vmem:[#allocation82_spill] sm:$0xff] %v2672_v37  ;;  %613 = vperm.xlu1 %1910, %v2296_v33  }
  0xcf   :  { %4193 = vst [vmem:[#allocation83_spill] sm:$0xff] %v2674_v10  ;;  %v534_v23 = vpop.permute.xlu0 %533 }
  0xd0   :  { %v310_v39 = vpop.permute.xlu1 %309  ;;  %v2682_v63 = vmul.f32 %v534_v23, %v2514_v20  ;;  %v2685_v18 = vmul.f32 %v534_v23, %v2518_v19 }
  0xd1   :  { %v2687_v36 = vmul.f32 %v319_v47, %v310_v39  ;;  %v2689_v21 = vmul.f32 %v323_v17, %v310_v39 }
  0xd2   :  { %4194 = vst [vmem:[#allocation84_spill] sm:$0xff] %v2682_v63  ;;  %4195 = vst [vmem:[#allocation85_spill] sm:$0xff] %v2685_v18  ;;  %617 = vperm.xlu1 %1910, %v2332_v41  }
  0xd3   :  { %4196 = vst [vmem:[#allocation86_spill] sm:$0xff] %v2687_v36  ;;  %4197 = vst [vmem:[#allocation87_spill] sm:$0xff] %v2689_v21  ;;  %v546_v10 = vpop.permute.xlu0 %545 }
  0xd4   :  { %v314_v37 = vpop.permute.xlu1 %313  ;;  %v2693_v59 = vmul.f32 %v546_v10, %v2514_v20  ;;  %v2696_v33 = vmul.f32 %v546_v10, %v2518_v19 }
  0xd5   :  { %v2698_v46 = vmul.f32 %v319_v47, %v314_v37  ;;  %v2700_v63 = vmul.f32 %v323_v17, %v314_v37 }
  0xd6   :  { %4198 = vst [vmem:[#allocation88_spill] sm:$0xff] %v2693_v59  ;;  %4199 = vst [vmem:[#allocation89_spill] sm:$0xff] %v2696_v33 }
  0xd7   :  { %4200 = vst [vmem:[#allocation90_spill] sm:$0xff] %v2698_v46  ;;  %4201 = vst [vmem:[#allocation91_spill] sm:$0xff] %v2700_v63 }
  0xd8   :  { %v202_v23 = vpop.permute.xlu0 %201 }
  0xd9   :  { %v334_v18 = vpop.permute.xlu1 %333  ;;  %v2703_v36 = vmul.f32 %v2558_v24, %v202_v23  ;;  %v2706_v39 = vmul.f32 %v2562_v8, %v202_v23  ;;  %v379_v23 = vrot.slane %v2435_v61, %v2541_v45 }
  0xda   :  { %v2708_v41 = vmul.f32 %v339_v38, %v334_v18  ;;  %v2710_v21 = vmul.f32 %v343_v9, %v334_v18  ;;  %v383_v38 = vrot.slane %v2440_v62, %v2541_v45 }
  0xdc   :  { %4202 = vst [vmem:[#allocation92_spill] sm:$0xff] %v2708_v41  ;;  %4203 = vst [vmem:[#allocation93_spill] sm:$0xff] %v2710_v21  ;;  %v562_v59 = vpop.permute.xlu0 %561 }
  0xdd   :  { %v2713_v10 = vmul.f32 %v562_v59, %v2558_v24  ;;  %v2716_v47 = vmul.f32 %v562_v59, %v2562_v8 }
  0xde   :  { %v350_v17 = vpop.permute.xlu1 %349 }
  0xdf   :  { %4204 = vst [vmem:[#allocation94_spill] sm:$0xff] %v2713_v10  ;;  %4205 = vst [vmem:[#allocation95_spill] sm:$0xff] %v2716_v47  ;;  %v2718_v37 = vmul.f32 %v359_v27, %v350_v17  ;;  %v2720_v33 = vmul.f32 %v363_v42, %v350_v17  ;;  %v399_v42 = vrot.slane %v2435_v61, %v2565_v13 }
  0xe0   :  { %v403_v17 = vrot.slane %v2440_v62, %v2565_v13 }
  0xe1   :  { %4206 = vst [vmem:[#allocation96_spill] sm:$0xff] %v2718_v37  ;;  %4207 = vst [vmem:[#allocation97_spill] sm:$0xff] %v2720_v33  ;;  %v226_v9 = vpop.permute.xlu0 %225 }
  0xe2   :  { %v2727_v18 = vmul.f32 %v2583_v44, %v226_v9  ;;  %v2730_v10 = vmul.f32 %v2587_v11, %v226_v9 }
  0xe3   :  { %v370_v59 = vpop.permute.xlu1 %369 }
  0xe4   :  { %4208 = vst [vmem:[#allocation98_spill] sm:$0xff] %v2727_v18  ;;  %4209 = vst [vmem:[#allocation99_spill] sm:$0xff] %v2730_v10  ;;  %v2732_v47 = vmul.f32 %v379_v23, %v370_v59  ;;  %v2734_v27 = vmul.f32 %v383_v38, %v370_v59 }
  0xe5   :  { %v390_v33 = vpop.permute.xlu0 %389 }
  0xe6   :  { %4210 = vst [vmem:[#allocation100_spill] sm:$0xff] %v2732_v47  ;;  %4211 = vst [vmem:[#allocation101_spill] sm:$0xff] %v2734_v27  ;;  %v2740_v45 = vmul.f32 %v399_v42, %v390_v33  ;;  %v2742_v37 = vmul.f32 %v403_v17, %v390_v33 }
  0xe7   :  { %v374_v21 = vpop.permute.xlu1 %373 }
  0xe8   :  { %4212 = vst [vmem:[#allocation102_spill] sm:$0xff] %v2740_v45  ;;  %4213 = vst [vmem:[#allocation103_spill] sm:$0xff] %v2742_v37  ;;  %v2744_v41 = vmul.f32 %v379_v23, %v374_v21  ;;  %v2746_v9 = vmul.f32 %v383_v38, %v374_v21  ;;  %v1824_v21 = vld [vmem:[%s4069_s7 + $0x10] ss:$0 sm:$0xff] }
  0xe9   :  { %v582_v63 = vpop.permute.xlu0 %581 }
  0xea   :  { %4214 = vst [vmem:[#allocation104_spill] sm:$0xff] %v2744_v41  ;;  %4215 = vst [vmem:[#allocation105_spill] sm:$0xff] %v2746_v9  ;;  %v2749_v59 = vmul.f32 %v582_v63, %v2583_v44  ;;  %v2752_v27 = vmul.f32 %v582_v63, %v2587_v11  ;;  %v1825_v63 = vld [vmem:[%s4069_s7 + $0x18] ss:$0 sm:$0xff]  ;;  %s2910_s7 = smov 0  }
  0xec   :  { %4216 = vst [vmem:[#allocation106_spill] sm:$0xff] %v2749_v59  ;;  %4217 = vst [vmem:[#allocation107_spill] sm:$0xff] %v2752_v27  ;;  %v394_v61 = vpop.permute.xlu1 %393 }
  0xed   :  { %v2754_v47 = vmul.f32 %v399_v42, %v394_v61  ;;  %v2756_v62 = vmul.f32 %v403_v17, %v394_v61  ;;  %v594_v13 = vpop.permute.xlu0 %593 }
  0xee   :  { %v2759_v33 = vmul.f32 %v594_v13, %v2583_v44  ;;  %v2762_v23 = vmul.f32 %v594_v13, %v2587_v11 }
  0xef   :  { %4218 = vst [vmem:[#allocation108_spill] sm:$0xff] %v2754_v47  ;;  %4219 = vst [vmem:[#allocation109_spill] sm:$0xff] %v2756_v62 }
  0xf0   :  { %4220 = vst [vmem:[#allocation110_spill] sm:$0xff] %v2759_v33  ;;  %4221 = vst [vmem:[#allocation111_spill] sm:$0xff] %v2762_v23 }
  0xf1   :  { %v410_v38 = vpop.permute.xlu1 %409 }
  0xf2   :  { %v2770_v42 = vmul.f32 %v1824_v21, %v410_v38  ;;  %v2772_v17 = vmul.f32 %v1825_v63, %v410_v38  ;;  %v414_v61 = vpop.permute.xlu0 %413 }
  0xf3   :  { %v2774_v27 = vmul.f32 %v1824_v21, %v414_v61  ;;  %v2776_v33 = vmul.f32 %v1825_v63, %v414_v61 }
  0xf4   :  { %4222 = vst [vmem:[#allocation112_spill] sm:$0xff] %v2770_v42  ;;  %4223 = vst [vmem:[#allocation113_spill] sm:$0xff] %v2772_v17 }
  0xf5   :  { %4224 = vst [vmem:[#allocation114_spill] sm:$0xff] %v2774_v27  ;;  %4225 = vst [vmem:[#allocation115_spill] sm:$0xff] %v2776_v33 }
  0xf6   :  { %v435_v13 = vpop.permute.xlu1 %434  ;;  %v610_v23 = vpop.permute.xlu0 %609 }
  0xf7   :  { %v2779_v59 = vmul.f32 %v435_v13, %v2409_v51  ;;  %v2782_v62 = vmul.f32 %v435_v13, %v2413_v52  ;;  %v2785_v47 = vmul.f32 %v2611_v16, %v610_v23  ;;  %v2788_v42 = vmul.f32 %v2616_v28, %v610_v23 }
  0xf9   :  { %4226 = vst [vmem:[#allocation116_spill] sm:$0xff] %v2779_v59  ;;  %4227 = vst [vmem:[#allocation117_spill] sm:$0xff] %v2782_v62 }
  0xfa   :  { %4228 = vst [vmem:[#allocation118_spill] sm:$0xff] %v2785_v47  ;;  %4229 = vst [vmem:[#allocation119_spill] sm:$0xff] %v2788_v42  ;;  %v440_v38 = vpop.permute.xlu1 %439 }
  0xfb   :  { %v2791_v21 = vmul.f32 %v440_v38, %v2409_v51  ;;  %v2794_v63 = vmul.f32 %v440_v38, %v2413_v52 }
  0xfd   :  { %4230 = vst [vmem:[#allocation120_spill] sm:$0xff] %v2791_v21  ;;  %4231 = vst [vmem:[#allocation121_spill] sm:$0xff] %v2794_v63 }
  0xfe   :  { %v450_v61 = vpop.permute.xlu1 %449 }
  0xff   :  { %v2797_v33 = vmul.f32 %v450_v61, %v2409_v51  ;;  %v2800_v13 = vmul.f32 %v450_v61, %v2413_v52 }
 0x101   :  { %4232 = vst [vmem:[#allocation122_spill] sm:$0xff] %v2797_v33  ;;  %4233 = vst [vmem:[#allocation123_spill] sm:$0xff] %v2800_v13 }
 0x103   :  { %v462_v62 = vpop.permute.xlu1 %461 }
 0x104   :  { %v2803_v47 = vmul.f32 %v462_v62, %v2402_v49  ;;  %v2806_v23 = vmul.f32 %v462_v62, %v2405_v50 }
 0x106   :  { %4234 = vst [vmem:[#allocation124_spill] sm:$0xff] %v2803_v47  ;;  %4235 = vst [vmem:[#allocation125_spill] sm:$0xff] %v2806_v23 }
 0x107   :  { %v470_v42 = vpop.permute.xlu1 %469 }
 0x108   :  { %v2809_v21 = vmul.f32 %v470_v42, %v2402_v49  ;;  %v2812_v38 = vmul.f32 %v470_v42, %v2405_v50 }
 0x10a   :  { %4236 = vst [vmem:[#allocation126_spill] sm:$0xff] %v2809_v21  ;;  %4237 = vst [vmem:[#allocation127_spill] sm:$0xff] %v2812_v38 }
 0x10b   :  { %v474_v63 = vpop.permute.xlu1 %473 }
 0x10c   :  { %v2815_v51 = vmul.f32 %v474_v63, %v2402_v49  ;;  %v2818_v52 = vmul.f32 %v474_v63, %v2405_v50 }
 0x10e   :  { %4238 = vst [vmem:[#allocation128_spill] sm:$0xff] %v2815_v51  ;;  %4239 = vst [vmem:[#allocation129_spill] sm:$0xff] %v2818_v52 }
 0x110   :  { %v490_v61 = vpop.permute.xlu1 %489 }
 0x111   :  { %v2821_v13 = vmul.f32 %v490_v61, %v2457_v54  ;;  %v2824_v62 = vmul.f32 %v490_v61, %v2461_v43 }
 0x113   :  { %4240 = vst [vmem:[#allocation130_spill] sm:$0xff] %v2821_v13  ;;  %4241 = vst [vmem:[#allocation131_spill] sm:$0xff] %v2824_v62 }
 0x114   :  { %v494_v33 = vpop.permute.xlu1 %493 }
 0x115   :  { %v2827_v21 = vmul.f32 %v494_v33, %v2457_v54  ;;  %v2830_v42 = vmul.f32 %v494_v33, %v2461_v43 }
 0x117   :  { %4242 = vst [vmem:[#allocation132_spill] sm:$0xff] %v2827_v21  ;;  %4243 = vst [vmem:[#allocation133_spill] sm:$0xff] %v2830_v42 }
 0x119   :  { %v510_v38 = vpop.permute.xlu1 %509 }
 0x11a   :  { %v2833_v49 = vmul.f32 %v510_v38, %v2490_v25  ;;  %v2836_v50 = vmul.f32 %v510_v38, %v2494_v26 }
 0x11c   :  { %4244 = vst [vmem:[#allocation134_spill] sm:$0xff] %v2833_v49  ;;  %4245 = vst [vmem:[#allocation135_spill] sm:$0xff] %v2836_v50 }
 0x11d   :  { %v518_v63 = vpop.permute.xlu1 %517 }
 0x11e   :  { %v2839_v52 = vmul.f32 %v518_v63, %v2490_v25  ;;  %v2842_v61 = vmul.f32 %v518_v63, %v2494_v26 }
 0x120   :  { %4246 = vst [vmem:[#allocation136_spill] sm:$0xff] %v2839_v52  ;;  %4247 = vst [vmem:[#allocation137_spill] sm:$0xff] %v2842_v61 }
 0x121   :  { %v522_v51 = vpop.permute.xlu1 %521 }
 0x122   :  { %v2845_v54 = vmul.f32 %v522_v51, %v2490_v25  ;;  %v2848_v43 = vmul.f32 %v522_v51, %v2494_v26 }
 0x124   :  { %4248 = vst [vmem:[#allocation138_spill] sm:$0xff] %v2845_v54  ;;  %4249 = vst [vmem:[#allocation139_spill] sm:$0xff] %v2848_v43 }
 0x126   :  { %v538_v33 = vpop.permute.xlu1 %537 }
 0x127   :  { %v2851_v49 = vmul.f32 %v538_v33, %v2514_v20  ;;  %v2854_v38 = vmul.f32 %v538_v33, %v2518_v19 }
 0x129   :  { %4250 = vst [vmem:[#allocation140_spill] sm:$0xff] %v2851_v49  ;;  %4251 = vst [vmem:[#allocation141_spill] sm:$0xff] %v2854_v38 }
 0x12a   :  { %v542_v50 = vpop.permute.xlu1 %541 }
 0x12b   :  { %v2857_v52 = vmul.f32 %v542_v50, %v2514_v20  ;;  %v2860_v63 = vmul.f32 %v542_v50, %v2518_v19 }
 0x12d   :  { %4252 = vst [vmem:[#allocation142_spill] sm:$0xff] %v2857_v52  ;;  %4253 = vst [vmem:[#allocation143_spill] sm:$0xff] %v2860_v63 }
 0x12f   :  { %v558_v61 = vpop.permute.xlu1 %557 }
 0x130   :  { %v2863_v25 = vmul.f32 %v558_v61, %v2558_v24  ;;  %v2866_v26 = vmul.f32 %v558_v61, %v2562_v8 }
 0x132   :  { %4254 = vst [vmem:[#allocation144_spill] sm:$0xff] %v2863_v25  ;;  %4255 = vst [vmem:[#allocation145_spill] sm:$0xff] %v2866_v26 }
 0x133   :  { %v566_v51 = vpop.permute.xlu1 %565 }
 0x134   :  { %v2869_v43 = vmul.f32 %v566_v51, %v2558_v24  ;;  %v2872_v33 = vmul.f32 %v566_v51, %v2562_v8 }
 0x136   :  { %4256 = vst [vmem:[#allocation146_spill] sm:$0xff] %v2869_v43  ;;  %4257 = vst [vmem:[#allocation147_spill] sm:$0xff] %v2872_v33 }
 0x137   :  { %v570_v54 = vpop.permute.xlu1 %569 }
 0x138   :  { %v2875_v20 = vmul.f32 %v570_v54, %v2558_v24  ;;  %v2878_v19 = vmul.f32 %v570_v54, %v2562_v8 }
 0x13a   :  { %4258 = vst [vmem:[#allocation148_spill] sm:$0xff] %v2875_v20  ;;  %4259 = vst [vmem:[#allocation149_spill] sm:$0xff] %v2878_v19 }
 0x13c   :  { %v586_v50 = vpop.permute.xlu1 %585 }
 0x13d   :  { %v2881_v63 = vmul.f32 %v586_v50, %v2583_v44  ;;  %v2884_v61 = vmul.f32 %v586_v50, %v2587_v11 }
 0x13f   :  { %4260 = vst [vmem:[#allocation150_spill] sm:$0xff] %v2881_v63  ;;  %4261 = vst [vmem:[#allocation151_spill] sm:$0xff] %v2884_v61 }
 0x140   :  { %v590_v52 = vpop.permute.xlu1 %589 }
 0x141   :  { %v2887_v43 = vmul.f32 %v590_v52, %v2583_v44  ;;  %v2890_v51 = vmul.f32 %v590_v52, %v2587_v11 }
 0x143   :  { %4262 = vst [vmem:[#allocation152_spill] sm:$0xff] %v2887_v43  ;;  %4263 = vst [vmem:[#allocation153_spill] sm:$0xff] %v2890_v51 }
 0x145   :  { %v606_v33 = vpop.permute.xlu1 %605 }
 0x146   :  { %v2893_v24 = vmul.f32 %v2611_v16, %v606_v33  ;;  %v2896_v8 = vmul.f32 %v2616_v28, %v606_v33 }
 0x148   :  { %4264 = vst [vmem:[#allocation154_spill] sm:$0xff] %v2893_v24  ;;  %4265 = vst [vmem:[#allocation155_spill] sm:$0xff] %v2896_v8 }
 0x149   :  { %v614_v54 = vpop.permute.xlu1 %613 }
 0x14a   :  { %v2899_v19 = vmul.f32 %v2611_v16, %v614_v54  ;;  %v2902_v50 = vmul.f32 %v2616_v28, %v614_v54 }
 0x14c   :  { %4266 = vst [vmem:[#allocation156_spill] sm:$0xff] %v2899_v19  ;;  %4267 = vst [vmem:[#allocation157_spill] sm:$0xff] %v2902_v50 }
 0x14d   :  { %v618_v20 = vpop.permute.xlu1 %617 }
 0x14e   :  { %v2905_v44 = vmul.f32 %v2611_v16, %v618_v20  ;;  %v2908_v11 = vmul.f32 %v2616_v28, %v618_v20 }
 0x150   :  { %4268 = vst [vmem:[#allocation158_spill] sm:$0xff] %v2905_v44  ;;  %4269 = vst [vmem:[#allocation159_spill] sm:$0xff] %v2908_v11 }
 0x151 LB: > { %v2028_v52 = vmov 0.0   ;;  %s1831_s9 = sshll.u32 %s2015_s7, 6  ;;  %v4088_v33 = vmov 4   ;;  %v4270_v29 = vld [vmem:[#allocation35_spill] sm:$0xff]  ;;  %vm645_vm0 = vcmask 261120   ;;  %v4277_v2 = vld [vmem:[#allocation8_spill] sm:$0xff]  ;;  %v4296_v10 = vlaneseq  ;;  %s2015_s7 = sphi %s2910_s7, %s633_s7  }
 0x152   : > { %716 = vmatprep.mubr.f32.mxu0 %v2028_v52  ;;  %722 = vmatprep.mubr.f32.mxu1 %v2028_v52  ;;  %s2921_s27 = scalar_lea.vmem [#allocation2], %s1831_s9  ;;  %v4278_v3 = vld [vmem:[#allocation9_spill] sm:$0xff]  ;;  %v4279_v30 = vld [vmem:[#allocation36_spill] sm:$0xff]  ;;  %v4281_v35 = vld [vmem:[#allocation39_spill] sm:$0xff]  ;;  %s2031_s28 = smov 17  }
 0x153   : > { %1911 = vset.pattern.permute.xlu1 %v4088_v33  ;;  %1912 = vset.pattern.permute.xlu0 %v4088_v33  ;;  %v644_v28 = vld [vmem:[%s2921_s27 + $0x38] sm:$0xff]  ;;  %v643_v16 = vld [vmem:[%s2921_s27 + $0x30] sm:$0xff]  ;;  %v2926_v20 = vld [vmem:[%s2921_s27 + $0x28] sm:$0xff]  ;;  %s2032_s4 = smov 16   ;;  %s2033_s3 = smov 51   ;;  %v3147_v18 = vand.u32 127, %v4296_v10 }
 0x154   : > { %796 = vperm.xlu1 %1911, %v4270_v29   ;;  %4271 = vst [vmem:[#allocation160_spill] sm:$0xff] %v2926_v20  ;;  %676 = vmatprep.subr.mxu0 %v644_v28  ;;  %v2929_v54 = vld [vmem:[%s2921_s27 + $0x20] sm:$0xff]  ;;  %v2932_v52 = vld [vmem:[%s2921_s27 + $0x18] sm:$0xff]  ;;  %v2937_v33 = vld [vmem:[%s2921_s27 + $0x10] sm:$0xff]  ;;  %s2034_s29 = smov 15   ;;  %s2035_s0 = smov 48  }
 0x155   : > { %1833 = vmatprep.subr.mxu1 %v644_v28  ;;  %4272 = vst [vmem:[#allocation161_spill] sm:$0xff] %v2929_v54  ;;  %677 = vmatpush1.msra.mxu0 %v643_v16  ;;  %4273 = vst [vmem:[#allocation162_spill] sm:$0xff] %v2932_v52  ;;  %v2942_v29 = vld [vmem:[%s2921_s27 + $0x8] sm:$0xff]  ;;  %v2947_v28 = vld [vmem:[%s2921_s27] sm:$0xff]  ;;  %s2036_s5 = smov 1   ;;  %s2037_s30 = smov 45  }
 0x156   : > { %1837 = vmatpush1.msra.mxu1 %v643_v16  ;;  %678 = vmatprep.subr.mxu0 %v2926_v20  ;;  %4274 = vst [vmem:[#allocation163_spill] sm:$0xff] %v2937_v33  ;;  %4275 = vst [vmem:[#allocation164_spill] sm:$0xff] %v2942_v29  ;;  %v4280_v31 = vld [vmem:[#allocation37_spill] sm:$0xff]  ;;  %v4282_v4 = vld [vmem:[#allocation10_spill] sm:$0xff]  ;;  %s2038_s16 = smov 127   ;;  %s2039_s11 = smov 3  }
 0x157   : > { %1834 = vmatprep.subr.mxu1 %v2926_v20  ;;  %679 = vmatpush1.msra.mxu0 %v2929_v54  ;;  %4276 = vst [vmem:[#allocation165_spill] sm:$0xff] %v2947_v28  ;;  %v4283_v5 = vld [vmem:[#allocation11_spill] sm:$0xff]  ;;  %v4285_v6 = vld [vmem:[#allocation12_spill] sm:$0xff]  ;;  %v4286_v7 = vld [vmem:[#allocation13_spill] sm:$0xff]  ;;  %s2040_s10 = smov 113   ;;  %s2041_s17 = smov 125  }
 0x158   : > { %1838 = vmatpush1.msra.mxu1 %v2929_v54  ;;  %680 = vmatprep.subr.mxu0 %v2932_v52  ;;  %s2042_s12 = smov 112   ;;  %s2043_s18 = smov 83   ;;  %vm817_vm1 = vcmp.lt.s32.totalorder %v3147_v18, 17  ;;  %vm838_vm2 = vcmp.lt.s32.totalorder %v3147_v18, 16  ;;  %vm859_vm3 = vcmp.lt.s32.totalorder %v3147_v18, 15  ;;  %v4301_v55 = vld [vmem:[#allocation44_spill] sm:$0xff] }
 0x159   : > { %1835 = vmatprep.subr.mxu1 %v2932_v52  ;;  %681 = vmatpush1.msra.mxu0 %v2937_v33  ;;  %s2044_s19 = smov 111   ;;  %s2045_s8 = smov 80   ;;  %vm997_vm4 = vcmp.lt.s32.totalorder %v3147_v18, 51  ;;  %vm880_vm5 = vcmp.lt.s32.totalorder %v3147_v18, 1  ;;  %v4302_v32 = vld [vmem:[#allocation47_spill] sm:$0xff]  ;;  %vm901_vm6 = vcmp.lt.s32.totalorder %v3147_v18, 127 }
 0x15a   : > { %1839 = vmatpush1.msra.mxu1 %v2937_v33  ;;  %682 = vmatprep.subr.mxu0 %v2942_v29  ;;  %s2046_s20 = smov 77   ;;  %vm922_vm7 = vcmp.lt.s32.totalorder %v3147_v18, 113  ;;  %v4303_v12 = vld [vmem:[#allocation61_spill] sm:$0xff]  ;;  %vm1018_vm8 = vcmp.lt.s32.totalorder %v3147_v18, 48  ;;  %vm943_vm9 = vcmp.lt.s32.totalorder %v3147_v18, 112  ;;  %v4305_v1 = vld [vmem:[#allocation46_spill] sm:$0xff] }
 0x15b   : > { %1836 = vmatprep.subr.mxu1 %v2942_v29  ;;  %683 = vmatpush1.msra.mxu0 %v2947_v28  ;;  %v4304_v0 = vld [vmem:[#allocation45_spill] sm:$0xff]  ;;  %vm964_vm10 = vcmp.lt.s32.totalorder %v3147_v18, 111  ;;  %vm1039_vm11 = vcmp.lt.s32.totalorder %v3147_v18, 45  ;;  %v4315_v14 = vld [vmem:[#allocation78_spill] sm:$0xff]  ;;  %vm1060_vm12 = vcmp.lt.s32.totalorder %v3147_v18, 3  ;;  %vm1081_vm13 = vcmp.lt.s32.totalorder %v3147_v18, 125 }
 0x15c   : > { %1840 = vmatpush1.msra.mxu1 %v2947_v28  ;;  %1828 = vmatmul.mubr.msk.f32.vlgmr.msra.gmra.mxu0 %vm645_vm0, %v4277_v2  ;;  %vm1102_vm14 = vcmp.lt.s32.totalorder %v3147_v18, 83  ;;  %vm1123_vm15 = vcmp.lt.s32.totalorder %v3147_v18, 80  ;;  %s1787_s1 = scalar_lea.vmem [#allocation5], %s1831_s9  ;;  %s633_s7 = sadd.s32 1, %s2015_s7  }
 0x15d   : > { %1829 = vmatmul.mubr.msk.f32.vlgmr.msra.gmra.mxu1 %vm645_vm0, %v4278_v3  ;;  %800 = vperm.xlu1 %1911, %v4279_v30   ;;  %v4094_v30 = vmov 0   ;;  %vm1144_vm0 = vcmp.lt.s32.totalorder %v3147_v18, 77  ;;  %p630_p5 = scmp.ge.s32.totalorder %s633_s7, 4  }
 0x15e   :  { %s2047_s23 = smov (%p630_p5), [#allocation5]  }
 0x15f   :  { %s1801_s24 = sshll.u32 (%p630_p5), %s2047_s23, 4  ;;  %s1802_s24 = int_to_ptr.vmem [resolvable:$true] %s1801_s24 }
 0x160   :  { %s1985_s13 = scalar_lea.vmem (%p630_p5), %s1802_s24, 4096  ;;  %p1990_p7 = scmp.lt.s32.totalorder (%p630_p5), %s1802_s24, %s1802_s24 }
 0x161   :  { %p1986_p6 = scmp.ne.s32.totalorder (%p630_p5), %s1802_s24, %s1985_s13  ;;  %p1991_p8 = scmp.lt.s32.totalorder (%p630_p5), %s1985_s13, %s1985_s13 }
 0x163   :  { %p1992_p9 = por (%p630_p5), %p1991_p8, %p1990_p7 }
 0x165   :  { %p1993_p10 = pnand (%p630_p5), %p1992_p9, %p1986_p6 }
 0x1cf   : > { %v2967_v63 = vpop.permute.xlu1 %796 }
 0x21c   : > { %v718_v16 = vpop.f32.mrf.mxu0 }
 0x21d   : > { %v724_v11 = vpop.f32.mrf.mxu1  ;;  %v737_v43 = vmul.f32 %v718_v16, %v718_v16 }
 0x21e   : > { %v720_v44 = vpop.f32.mrf.mxu0  ;;  %v739_v61 = vmul.f32 %v724_v11, %v724_v11 }
 0x21f   : > { %v2958_v50 = vpop.f32.mrf.mxu1  ;;  %v738_v19 = vmul.f32 %v720_v44, %v720_v44  ;;  %v729_v51 = vadd.f32 %v720_v44, %v718_v16 }
 0x220   : > { %v740_v8 = vmul.f32 %v2958_v50, %v2958_v50  ;;  %v732_v2 = vadd.f32 %v2958_v50, %v724_v11 }
 0x221   : > { %730 = vadd.xlane.f32.xlu0 %v729_v51  ;;  %v741_v24 = vadd.f32 %v738_v19, %v737_v43  ;;  %v2969_v51 = vpop.permute.xlu1 %800 }
 0x222   : > { %v744_v3 = vadd.f32 %v740_v8, %v739_v61 }
 0x223   : > { %742 = vadd.xlane.f32.xlu1 %v741_v24 }
 0x225   : > { %733 = vadd.xlane.f32.xlu0 %v732_v2 }
 0x227   : > { %745 = vadd.xlane.f32.xlu1 %v744_v3 }
 0x238   : > { %978 = vperm.xlu1 %1911, %v4280_v31  }
 0x23b   : > { %982 = vperm.xlu0 %1912, %v4281_v35  }
 0x23c   : > { %1914 = vset.pattern.permute.xlu1 %v4094_v30 }
 0x23f   : > { %1913 = vset.pattern.permute.xlu0 %v4094_v30 }
 0x2aa   : > { %v731_v43 = vpop.xlane.xlu0 %730 }
 0x2ab   : > { %v735_v19 = vmul.f32 0.00390625, %v731_v43 }
 0x2ac   : > { %v743_v24 = vpop.xlane.xlu1 %742 }
 0x2ad   : > { %v749_v26 = vmul.f32 %v735_v19, %v735_v19  ;;  %v747_v2 = vmul.f32 0.00390625, %v743_v24  ;;  %v4284_v24 = vmov 4  }
 0x2ae   : > { %v734_v61 = vpop.xlane.xlu0 %733 }
 0x2af   : > { %v751_v3 = vsub.f32 %v747_v2, %v749_v26  ;;  %v736_v8 = vmul.f32 0.00390625, %v734_v61 }
 0x2b0   : > { %v746_v31 = vpop.xlane.xlu1 %745 }
 0x2b1   : > { %v753_v25 = vadd.f32 1e-05, %v751_v3  ;;  %v750_v35 = vmul.f32 %v736_v8, %v736_v8  ;;  %v748_v38 = vmul.f32 0.00390625, %v746_v31 }
 0x2b3   : > { %1919 = vrsqrt.f32 %v753_v25  ;;  %v752_v49 = vsub.f32 %v748_v38, %v750_v35 }
 0x2b5   : > { %v754_v42 = vadd.f32 1e-05, %v752_v49 }
 0x2b6   : > { %v2977_v35 = vpop.permute.xlu0 %982 }
 0x2b7   : > { %1921 = vrsqrt.f32 %v754_v42 }
 0x2c0   : > { %v1920_v30 = vpop.eup %1919 }
 0x2c1   : > { %v757_v21 = vmul.f32 %v1920_v30, %v4282_v4  ;;  %v2979_v30 = vpop.permute.xlu1 %978 }
 0x2c3   : > { %765 = vperm.xlu0 %1913, %v757_v21   ;;  %v759_v13 = vmul.f32 %v757_v21, %v735_v19 }
 0x2c4   : > { %v1922_v62 = vpop.eup %1921 }
 0x2c5   : > { %v758_v43 = vmul.f32 %v1922_v62, %v4283_v5  ;;  %v761_v26 = vsub.f32 %v4285_v6, %v759_v13 }
 0x2c7   : > { %770 = vperm.xlu1 %1914, %v758_v43   ;;  %1916 = vset.pattern.permute.xlu0 %v4284_v24  ;;  %v760_v2 = vmul.f32 %v758_v43, %v736_v8 }
 0x2c9   : > { %v762_v31 = vsub.f32 %v4286_v7, %v760_v2 }
 0x2cb   : > { %779 = vperm.xlu1 %1914, %v761_v26  }
 0x2cf   : > { %784 = vperm.xlu1 %1914, %v762_v31  }
 0x2d3   : > { %1915 = vset.pattern.permute.xlu1 %v4284_v24 }
 0x33e   : > { %v766_v42 = vpop.permute.xlu0 %765 }
 0x33f   : > { %v773_v62 = vmul.f32 %v766_v42, %v718_v16  ;;  %v774_v21 = vmul.f32 %v766_v42, %v720_v44 }
 0x342   : > { %v771_v49 = vpop.permute.xlu1 %770 }
 0x343   : > { %v775_v61 = vmul.f32 %v771_v49, %v724_v11  ;;  %v776_v43 = vmul.f32 %v771_v49, %v2958_v50 }
 0x346   : > { %v780_v38 = vpop.permute.xlu1 %779 }
 0x347   : > { %v787_v25 = vadd.f32 %v780_v38, %v773_v62  ;;  %v788_v19 = vadd.f32 %v780_v38, %v774_v21 }
 0x349   : > { %v2981_v13 = vmax.f32 %v787_v25, 0.0  ;;  %v2983_v3 = vmax.f32 %v788_v19, 0.0 }
 0x34a   : > { %v785_v8 = vpop.permute.xlu1 %784 }
 0x34b   : > { %v789_v24 = vadd.f32 %v785_v8, %v775_v61  ;;  %811 = vrot.lane.b32.xlu0 %v2983_v3, %s2031_s28  ;;  %807 = vrot.lane.b32.xlu1 %v2981_v13, %s2031_s28  ;;  %v790_v44 = vadd.f32 %v785_v8, %v776_v43 }
 0x34d   : > { %v2990_v16 = vmax.f32 %v789_v24, 0.0  ;;  %v2996_v11 = vmax.f32 %v790_v44, 0.0 }
 0x34f   : > { %834 = vrot.lane.b32.xlu0 %v2983_v3, %s2032_s4  ;;  %809 = vrot.lane.b32.xlu1 %v2990_v16, %s2031_s28 }
 0x353   : > { %989 = vrot.lane.b32.xlu0 %v2981_v13, %s2033_s3  ;;  %813 = vrot.lane.b32.xlu1 %v2996_v11, %s2031_s28 }
 0x357   : > { %851 = vrot.lane.b32.xlu0 %v2981_v13, %s2034_s29  ;;  %830 = vrot.lane.b32.xlu1 %v2981_v13, %s2032_s4 }
 0x35b   : > { %855 = vrot.lane.b32.xlu0 %v2983_v3, %s2034_s29  ;;  %832 = vrot.lane.b32.xlu1 %v2990_v16, %s2032_s4 }
 0x35f   : > { %991 = vrot.lane.b32.xlu0 %v2990_v16, %s2033_s3  ;;  %836 = vrot.lane.b32.xlu1 %v2996_v11, %s2032_s4 }
 0x363   : > { %1010 = vrot.lane.b32.xlu0 %v2981_v13, %s2035_s0  ;;  %993 = vrot.lane.b32.xlu1 %v2983_v3, %s2033_s3 }
 0x367   : > { %872 = vrot.lane.b32.xlu0 %v2981_v13, %s2036_s5  ;;  %853 = vrot.lane.b32.xlu1 %v2990_v16, %s2034_s29 }
 0x36b   : > { %876 = vrot.lane.b32.xlu0 %v2983_v3, %s2036_s5  ;;  %857 = vrot.lane.b32.xlu1 %v2996_v11, %s2034_s29 }
 0x36f   : > { %1012 = vrot.lane.b32.xlu0 %v2990_v16, %s2035_s0  ;;  %995 = vrot.lane.b32.xlu1 %v2996_v11, %s2033_s3 }
 0x373   : > { %1031 = vrot.lane.b32.xlu0 %v2981_v13, %s2037_s30  ;;  %1014 = vrot.lane.b32.xlu1 %v2983_v3, %s2035_s0 }
 0x377   : > { %893 = vrot.lane.b32.xlu0 %v2981_v13, %s2038_s16  ;;  %874 = vrot.lane.b32.xlu1 %v2990_v16, %s2036_s5 }
 0x37b   : > { %897 = vrot.lane.b32.xlu0 %v2983_v3, %s2038_s16  ;;  %878 = vrot.lane.b32.xlu1 %v2996_v11, %s2036_s5 }
 0x37f   : > { %1033 = vrot.lane.b32.xlu0 %v2990_v16, %s2037_s30  ;;  %1016 = vrot.lane.b32.xlu1 %v2996_v11, %s2035_s0 }
 0x383   : > { %1052 = vrot.lane.b32.xlu0 %v2981_v13, %s2039_s11  ;;  %1035 = vrot.lane.b32.xlu1 %v2983_v3, %s2037_s30 }
 0x387   : > { %914 = vrot.lane.b32.xlu0 %v2981_v13, %s2040_s10  ;;  %895 = vrot.lane.b32.xlu1 %v2990_v16, %s2038_s16 }
 0x38b   : > { %918 = vrot.lane.b32.xlu0 %v2983_v3, %s2040_s10  ;;  %899 = vrot.lane.b32.xlu1 %v2996_v11, %s2038_s16 }
 0x38f   : > { %1054 = vrot.lane.b32.xlu0 %v2990_v16, %s2039_s11  ;;  %1037 = vrot.lane.b32.xlu1 %v2996_v11, %s2037_s30 }
 0x393   : > { %1073 = vrot.lane.b32.xlu0 %v2981_v13, %s2041_s17  ;;  %1056 = vrot.lane.b32.xlu1 %v2983_v3, %s2039_s11 }
 0x397   : > { %935 = vrot.lane.b32.xlu0 %v2981_v13, %s2042_s12  ;;  %916 = vrot.lane.b32.xlu1 %v2990_v16, %s2040_s10 }
 0x39b   : > { %939 = vrot.lane.b32.xlu0 %v2983_v3, %s2042_s12  ;;  %920 = vrot.lane.b32.xlu1 %v2996_v11, %s2040_s10 }
 0x39f   : > { %1075 = vrot.lane.b32.xlu0 %v2990_v16, %s2041_s17  ;;  %1058 = vrot.lane.b32.xlu1 %v2996_v11, %s2039_s11 }
 0x3a3   : > { %1094 = vrot.lane.b32.xlu0 %v2981_v13, %s2043_s18  ;;  %1077 = vrot.lane.b32.xlu1 %v2983_v3, %s2041_s17 }
 0x3a7   : > { %956 = vrot.lane.b32.xlu0 %v2981_v13, %s2044_s19  ;;  %937 = vrot.lane.b32.xlu1 %v2990_v16, %s2042_s12 }
 0x3ab   : > { %960 = vrot.lane.b32.xlu0 %v2983_v3, %s2044_s19  ;;  %941 = vrot.lane.b32.xlu1 %v2996_v11, %s2042_s12 }
 0x3af   : > { %1096 = vrot.lane.b32.xlu0 %v2990_v16, %s2043_s18  ;;  %1079 = vrot.lane.b32.xlu1 %v2996_v11, %s2041_s17 }
 0x3b3   : > { %1115 = vrot.lane.b32.xlu0 %v2981_v13, %s2045_s8  ;;  %1098 = vrot.lane.b32.xlu1 %v2983_v3, %s2043_s18 }
 0x3b7   : > { %1117 = vrot.lane.b32.xlu0 %v2990_v16, %s2045_s8  ;;  %958 = vrot.lane.b32.xlu1 %v2990_v16, %s2044_s19 }
 0x3bb   : > { %1136 = vrot.lane.b32.xlu0 %v2981_v13, %s2046_s20  ;;  %962 = vrot.lane.b32.xlu1 %v2996_v11, %s2044_s19 }
 0x3bd   : > { %v812_v50 = vpop.permute.xlu0 %811  ;;  %v808_v26 = vpop.permute.xlu1 %807 }
 0x3be   : > { %v818_v10 = vsel %vm817_vm1, %v808_v26, %v812_v50 }
 0x3bf   : > { %1138 = vrot.lane.b32.xlu0 %v2990_v16, %s2046_s20  ;;  %1100 = vrot.lane.b32.xlu1 %v2996_v11, %s2043_s18 }
 0x3c1   : > { %v835_v2 = vpop.permute.xlu0 %834  ;;  %v3082_v31 = vpop.permute.xlu1 %809 }
 0x3c3   : > { %1119 = vrot.lane.b32.xlu1 %v2983_v3, %s2045_s8 }
 0x3c5   : > { %v3085_v42 = vpop.permute.xlu0 %989  ;;  %v3087_v49 = vpop.permute.xlu1 %813 }
 0x3c7   : > { %1121 = vrot.lane.b32.xlu1 %v2996_v11, %s2045_s8 }
 0x3c9   : > { %v3090_v62 = vpop.permute.xlu0 %851  ;;  %v831_v21 = vpop.permute.xlu1 %830 }
 0x3cb   : > { %1140 = vrot.lane.b32.xlu1 %v2983_v3, %s2046_s20 }
 0x3cd   : > { %v856_v38 = vpop.permute.xlu0 %855  ;;  %v3093_v25 = vpop.permute.xlu1 %832 }
 0x3cf   : > { %1142 = vrot.lane.b32.xlu1 %v2996_v11, %s2046_s20 }
 0x3d1   : > { %v3096_v19 = vpop.permute.xlu0 %991  ;;  %v3098_v61 = vpop.permute.xlu1 %836 }
 0x3d5   : > { %v3100_v8 = vpop.permute.xlu0 %1010  ;;  %v3102_v43 = vpop.permute.xlu1 %993 }
 0x3d9   : > { %v3104_v24 = vpop.permute.xlu0 %872  ;;  %v3106_v44 = vpop.permute.xlu1 %853 }
 0x3dd   : > { %v877_v4 = vpop.permute.xlu0 %876  ;;  %v3108_v5 = vpop.permute.xlu1 %857 }
 0x3e1   : > { %v3110_v6 = vpop.permute.xlu0 %1012  ;;  %v3112_v7 = vpop.permute.xlu1 %995 }
 0x3e2   : > { %4287 = vst [vmem:[#allocation166_spill] sm:$0xff] %v3110_v6 }
 0x3e5   : > { %v3114_v23 = vpop.permute.xlu0 %1031  ;;  %v3116_v47 = vpop.permute.xlu1 %1014 }
 0x3e6   : > { %4288 = vst [vmem:[#allocation167_spill] sm:$0xff] %v3114_v23 }
 0x3e9   : > { %v3118_v59 = vpop.permute.xlu0 %893  ;;  %v3120_v20 = vpop.permute.xlu1 %874 }
 0x3ed   : > { %v3122_v54 = vpop.permute.xlu0 %897  ;;  %v3124_v52 = vpop.permute.xlu1 %878 }
 0x3f1   : > { %v3126_v33 = vpop.permute.xlu0 %1033  ;;  %v3128_v27 = vpop.permute.xlu1 %1016 }
 0x3f2   : > { %4289 = vst [vmem:[#allocation168_spill] sm:$0xff] %v3126_v33  ;;  %4290 = vst [vmem:[#allocation169_spill] sm:$0xff] %v3128_v27  ;;  %v3176_v27 = vmul.f32 %v2979_v30, %v2981_v13 }
 0x3f5   : > { %v3130_v17 = vpop.permute.xlu0 %1052  ;;  %v3132_v9 = vpop.permute.xlu1 %1035 }
 0x3f6   : > { %4291 = vst [vmem:[#allocation170_spill] sm:$0xff] %v3130_v17  ;;  %4292 = vst [vmem:[#allocation171_spill] sm:$0xff] %v3132_v9 }
 0x3f9   : > { %v3134_v41 = vpop.permute.xlu0 %914  ;;  %v3136_v37 = vpop.permute.xlu1 %895 }
 0x3fa   : > { %4293 = vst [vmem:[#allocation172_spill] sm:$0xff] %v3136_v37 }
 0x3fd   : > { %v3138_v45 = vpop.permute.xlu0 %918  ;;  %v3140_v29 = vpop.permute.xlu1 %899 }
 0x401   : > { %v3142_v28 = vpop.permute.xlu0 %1054  ;;  %v3144_v46 = vpop.permute.xlu1 %1037 }
 0x402   : > { %4294 = vst [vmem:[#allocation173_spill] sm:$0xff] %v3142_v28  ;;  %4295 = vst [vmem:[#allocation174_spill] sm:$0xff] %v3144_v46  ;;  %v820_v28 = vsel %vm817_vm1, %v812_v50, %v808_v26  ;;  %v804_v46 = vmul.f32 %v2967_v63, %v2983_v3  ;;  %v805_v50 = vmul.f32 %v2969_v51, %v2990_v16 }
 0x403   : > { %v822_v6 = vmul.f32 %v820_v28, %v2423_v57  ;;  %v806_v26 = vmul.f32 %v2969_v51, %v2996_v11  ;;  %v862_v28 = vsel %vm859_vm3, %v856_v38, %v3090_v62  ;;  %v3197_v51 = vmul.f32 %v2977_v35, %v2990_v16 }
 0x405   : > { %v3149_v33 = vpop.permute.xlu0 %1073  ;;  %v3151_v17 = vpop.permute.xlu1 %1056 }
 0x406   : > { %4297 = vst [vmem:[#allocation175_spill] sm:$0xff] %v3149_v33  ;;  %4298 = vst [vmem:[#allocation176_spill] sm:$0xff] %v3151_v17  ;;  %v803_v33 = vmul.f32 %v2967_v63, %v2981_v13  ;;  %v841_v17 = vsel %vm838_vm2, %v835_v2, %v831_v21  ;;  %v821_v63 = vsel %vm817_vm1, %v3087_v49, %v3082_v31 }
 0x407   : > { %v843_v13 = vmul.f32 %v841_v17, %v4301_v55  ;;  %v819_v17 = vsel %vm817_vm1, %v3082_v31, %v3087_v49 }
 0x408   : > { %v826_v16 = vadd.f32 %v822_v6, %v803_v33  ;;  %v883_v6 = vsel %vm880_vm5, %v877_v4, %v3104_v24  ;;  %v825_v49 = vmul.f32 %v819_v17, %v2452_v53  ;;  %v4306_v17 = vld [vmem:[#allocation56_spill] sm:$0xff] }
 0x409   : > { %v3155_v23 = vpop.permute.xlu0 %935  ;;  %v3157_v9 = vpop.permute.xlu1 %916 }
 0x40a   : > { %4299 = vst [vmem:[#allocation177_spill] sm:$0xff] %v3157_v9  ;;  %v3172_v9 = vmul.f32 %v2979_v30, %v2983_v3  ;;  %v839_v30 = vsel %vm838_vm2, %v831_v21, %v835_v2  ;;  %v824_v2 = vmul.f32 %v821_v63, %v4302_v32  ;;  %v860_v21 = vsel %vm859_vm3, %v3090_v62, %v856_v38 }
 0x40b   : > { %v844_v55 = vmul.f32 %v839_v30, %v2420_v56  ;;  %v881_v62 = vsel %vm880_vm5, %v3104_v24, %v877_v4  ;;  %v847_v33 = vadd.f32 %v843_v13, %v826_v16  ;;  %v865_v31 = vmul.f32 %v860_v21, %v2571_v40 }
 0x40c   : > { %4300 = vst [vmem:[#allocation178_spill] sm:$0xff] %v3172_v9  ;;  %v823_v9 = vmul.f32 %v818_v10, %v2426_v58  ;;  %v3204_v10 = vmul.f32 %v2977_v35, %v2996_v11  ;;  %v864_v35 = vmul.f32 %v862_v28, %v4303_v12  ;;  %v828_v4 = vadd.f32 %v824_v2, %v805_v50  ;;  %v4416_v12 = vld [vmem:[#allocation85_spill] sm:$0xff] }
 0x40d   : > { %v940_v37 = vpop.permute.xlu0 %939  ;;  %v3187_v3 = vpop.permute.xlu1 %920  ;;  %v902_v38 = vsel %vm901_vm6, %v3118_v59, %v3122_v54  ;;  %v904_v24 = vsel %vm901_vm6, %v3122_v54, %v3118_v59  ;;  %v885_v13 = vmul.f32 %v883_v6, %v2506_v22  ;;  %v886_v21 = vmul.f32 %v881_v62, %v2509_v48 }
 0x40e   : > { %v827_v32 = vadd.f32 %v823_v9, %v804_v46  ;;  %v840_v46 = vsel %vm838_vm2, %v3093_v25, %v3098_v61  ;;  %v842_v9 = vsel %vm838_vm2, %v3098_v61, %v3093_v25  ;;  %v868_v28 = vadd.f32 %v864_v35, %v847_v33 }
 0x40f   : > { %v845_v50 = vmul.f32 %v842_v9, %v4304_v0  ;;  %v846_v2 = vmul.f32 %v840_v46, %v4305_v1  ;;  %v923_v16 = vsel %vm922_vm7, %v3134_v41, %v3138_v45  ;;  %v1000_v59 = vsel %vm997_vm4, %v3102_v43, %v3085_v42  ;;  %v4308_v0 = vld [vmem:[#allocation66_spill] sm:$0xff] }
 0x410   : > { %v848_v30 = vadd.f32 %v844_v55, %v827_v32  ;;  %v925_v55 = vsel %vm922_vm7, %v3138_v45, %v3134_v41  ;;  %v906_v54 = vmul.f32 %v902_v38, %v2534_v15  ;;  %v907_v35 = vmul.f32 %v904_v24, %v4306_v17 }
 0x411   : > { %v3218_v11 = vpop.permute.xlu0 %1075  ;;  %v3220_v63 = vpop.permute.xlu1 %1058  ;;  %v829_v62 = vadd.f32 %v825_v49, %v806_v26  ;;  %v998_v6 = vsel %vm997_vm4, %v3085_v42, %v3102_v43  ;;  %v944_v41 = vsel %vm943_vm9, %v3155_v23, %v940_v37  ;;  %v946_v45 = vsel %vm943_vm9, %v940_v37, %v3155_v23  ;;  %v4307_v42 = vld [vmem:[#allocation48_spill] sm:$0xff]  ;;  %v4309_v37 = vld [vmem:[#allocation67_spill] sm:$0xff] }
 0x412   : > { %v869_v32 = vadd.f32 %v865_v31, %v848_v30  ;;  %v889_v33 = vadd.f32 %v885_v13, %v868_v28  ;;  %v927_v46 = vmul.f32 %v923_v16, %v2703_v36  ;;  %v928_v9 = vmul.f32 %v925_v55, %v2706_v39  ;;  %v4310_v28 = vld [vmem:[#allocation49_spill] sm:$0xff] }
 0x413   : > { %v849_v38 = vadd.f32 %v845_v50, %v828_v4  ;;  %v850_v24 = vadd.f32 %v846_v2, %v829_v62  ;;  %v1002_v43 = vmul.f32 %v1000_v59, %v4307_v42  ;;  %v948_v1 = vmul.f32 %v944_v41, %v4308_v0  ;;  %v4311_v62 = vld [vmem:[#allocation70_spill] sm:$0xff]  ;;  %v4312_v41 = vld [vmem:[#allocation71_spill] sm:$0xff] }
 0x414   : > { %v890_v31 = vadd.f32 %v886_v21, %v869_v32  ;;  %v910_v30 = vadd.f32 %v906_v54, %v889_v33  ;;  %v949_v23 = vmul.f32 %v946_v45, %v4309_v37  ;;  %v1003_v13 = vmul.f32 %v998_v6, %v4310_v28  ;;  %v4314_v33 = vld [vmem:[#allocation51_spill] sm:$0xff] }
 0x415   : > { %v3250_v25 = vpop.permute.xlu0 %1094  ;;  %v3252_v61 = vpop.permute.xlu1 %1077  ;;  %v861_v21 = vsel %vm859_vm3, %v3106_v44, %v3108_v5  ;;  %v863_v4 = vsel %vm859_vm3, %v3108_v5, %v3106_v44  ;;  %v999_v50 = vsel %vm997_vm4, %v3096_v19, %v3112_v7  ;;  %v1001_v0 = vsel %vm997_vm4, %v3112_v7, %v3096_v19 }
 0x416   : > { %v911_v17 = vadd.f32 %v907_v35, %v890_v31  ;;  %v1019_v2 = vsel %vm1018_vm8, %v3100_v8, %v3116_v47  ;;  %v931_v16 = vadd.f32 %v927_v46, %v910_v30  ;;  %v1021_v5 = vsel %vm1018_vm8, %v3116_v47, %v3100_v8  ;;  %v4313_v47 = vld [vmem:[#allocation50_spill] sm:$0xff] }
 0x417   : > { %v884_v44 = vsel %vm880_vm5, %v3124_v52, %v3120_v20  ;;  %v866_v8 = vmul.f32 %v863_v4, %v4313_v47  ;;  %v867_v31 = vmul.f32 %v861_v21, %v4314_v33  ;;  %v1004_v46 = vmul.f32 %v1001_v0, %v4315_v14  ;;  %v4317_v21 = vld [vmem:[#allocation72_spill] sm:$0xff] }
 0x418   : > { %v932_v55 = vadd.f32 %v928_v9, %v911_v17  ;;  %v952_v54 = vadd.f32 %v948_v1, %v931_v16  ;;  %v882_v9 = vsel %vm880_vm5, %v3120_v20, %v3124_v52  ;;  %v1006_v1 = vadd.f32 %v1002_v43, %v3176_v27  ;;  %v4318_v0 = vld [vmem:[#allocation172_spill] sm:$0xff]  ;;  %v4319_v52 = vld [vmem:[#allocation73_spill] sm:$0xff] }
 0x419   : > { %v957_v26 = vpop.permute.xlu0 %956  ;;  %v3282_v49 = vpop.permute.xlu1 %937  ;;  %v1023_v37 = vmul.f32 %v1021_v5, %v2667_v34  ;;  %v887_v4 = vmul.f32 %v884_v44, %v4317_v21  ;;  %v903_v20 = vsel %vm901_vm6, %v4318_v0, %v3140_v29  ;;  %v888_v16 = vmul.f32 %v882_v9, %v4319_v52 }
 0x41a   : > { %v953_v35 = vadd.f32 %v949_v23, %v932_v55  ;;  %v4316_v23 = vld [vmem:[#allocation81_spill] sm:$0xff]  ;;  %v905_v27 = vsel %vm901_vm6, %v3140_v29, %v4318_v0  ;;  %v4320_v55 = vld [vmem:[#allocation178_spill] sm:$0xff]  ;;  %v870_v5 = vadd.f32 %v866_v8, %v849_v38  ;;  %v1008_v44 = vadd.f32 %v1004_v46, %v3197_v51  ;;  %v4324_v29 = vld [vmem:[#allocation60_spill] sm:$0xff] }
 0x41b   : > { %v1024_v28 = vmul.f32 %v1019_v2, %v4316_v23  ;;  %v871_v2 = vadd.f32 %v867_v31, %v850_v24  ;;  %v4326_v31 = vld [vmem:[#allocation54_spill] sm:$0xff] }
 0x41c   : > { %v891_v47 = vadd.f32 %v887_v4, %v870_v5  ;;  %v4335_v5 = vld [vmem:[#allocation98_spill] sm:$0xff] }
 0x41d   : > { %v961_v32 = vpop.permute.xlu0 %960  ;;  %v942_v59 = vpop.permute.xlu1 %941  ;;  %v892_v8 = vadd.f32 %v888_v16, %v871_v2 }
 0x41e   : > { %v965_v7 = vsel %vm964_vm10, %v957_v26, %v961_v32  ;;  %v967_v19 = vsel %vm964_vm10, %v961_v32, %v957_v26  ;;  %v1005_v26 = vmul.f32 %v999_v50, %v2652_v60  ;;  %v1007_v32 = vadd.f32 %v1003_v13, %v4320_v55  ;;  %v4325_v13 = vld [vmem:[#allocation177_spill] sm:$0xff] }
 0x41f   : > { %v969_v6 = vmul.f32 %v965_v7, %v4311_v62  ;;  %v970_v45 = vmul.f32 %v967_v19, %v4312_v41  ;;  %v4321_v19 = vld [vmem:[#allocation166_spill] sm:$0xff]  ;;  %v4323_v62 = vld [vmem:[#allocation59_spill] sm:$0xff]  ;;  %v924_v38 = vsel %vm922_vm7, %v4325_v13, %v3187_v3  ;;  %v926_v51 = vsel %vm922_vm7, %v3187_v3, %v4325_v13 }
 0x420   : > { %v1009_v7 = vadd.f32 %v1005_v26, %v3204_v10  ;;  %v1027_v10 = vadd.f32 %v1023_v37, %v1006_v1  ;;  %v1028_v24 = vadd.f32 %v1024_v28, %v1007_v32  ;;  %v945_v9 = vsel %vm943_vm9, %v3282_v49, %v942_v59  ;;  %v4327_v1 = vld [vmem:[#allocation171_spill] sm:$0xff]  ;;  %v4329_v37 = vld [vmem:[#allocation62_spill] sm:$0xff] }
 0x421   : > { %v973_v42 = vadd.f32 %v969_v6, %v952_v54  ;;  %v974_v30 = vadd.f32 %v970_v45, %v953_v35  ;;  %v3334_v17 = vpop.permute.xlu1 %1079  ;;  %v4322_v54 = vld [vmem:[#allocation169_spill] sm:$0xff]  ;;  %v908_v6 = vmul.f32 %v903_v20, %v4323_v62  ;;  %v909_v45 = vmul.f32 %v905_v27, %v4324_v29  ;;  %v4328_v26 = vld [vmem:[#allocation167_spill] sm:$0xff]  ;;  %v3389_v4 = vpop.permute.xlu0 %1096  ;;  %v4338_v29 = vld [vmem:[#allocation86_spill] sm:$0xff] }
 0x422   : > { %v1022_v35 = vsel %vm1018_vm8, %v4322_v54, %v4321_v19  ;;  %v1020_v33 = vsel %vm1018_vm8, %v4321_v19, %v4322_v54  ;;  %v947_v3 = vsel %vm943_vm9, %v942_v59, %v3282_v49  ;;  %v929_v23 = vmul.f32 %v924_v38, %v4329_v37  ;;  %v4330_v28 = vld [vmem:[#allocation63_spill] sm:$0xff]  ;;  %v4331_v49 = vld [vmem:[#allocation174_spill] sm:$0xff]  ;;  %v4332_v59 = vld [vmem:[#allocation168_spill] sm:$0xff] }
 0x423   : > { %v1157_v43 = vmul.f32 0.5, %v973_v42  ;;  %v1158_v50 = vmul.f32 0.5, %v974_v30  ;;  %v1025_v46 = vmul.f32 %v1022_v35, %v4326_v31  ;;  %v1040_v42 = vsel %vm1039_vm11, %v4328_v26, %v4327_v1  ;;  %v4336_v19 = vld [vmem:[#allocation99_spill] sm:$0xff] }
 0x424   : > { %v1042_v30 = vsel %vm1039_vm11, %v4327_v1, %v4328_v26  ;;  %v930_v21 = vmul.f32 %v926_v51, %v4330_v28  ;;  %v912_v20 = vadd.f32 %v908_v6, %v891_v47  ;;  %v913_v52 = vadd.f32 %v909_v45, %v892_v8  ;;  %v4337_v35 = vld [vmem:[#allocation55_spill] sm:$0xff]  ;;  %v4340_v51 = vld [vmem:[#allocation90_spill] sm:$0xff]  ;;  %v4342_v28 = vld [vmem:[#allocation76_spill] sm:$0xff] }
 0x425   : > { %1923 = vtanh.f32 %v1157_v43  ;;  %v3356_v41 = vpop.permute.xlu1 %1098  ;;  %v1041_v16 = vsel %vm1039_vm11, %v4332_v59, %v4331_v49  ;;  %v1043_v27 = vsel %vm1039_vm11, %v4331_v49, %v4332_v59  ;;  %v4333_v43 = vld [vmem:[#allocation176_spill] sm:$0xff]  ;;  %v950_v2 = vmul.f32 %v945_v9, %v4335_v5  ;;  %v4339_v13 = vld [vmem:[#allocation87_spill] sm:$0xff]  ;;  %v4343_v49 = vld [vmem:[#allocation77_spill] sm:$0xff] }
 0x426   : > { %1925 = vtanh.f32 %v1158_v50  ;;  %v4334_v50 = vld [vmem:[#allocation170_spill] sm:$0xff]  ;;  %v951_v54 = vmul.f32 %v947_v3, %v4336_v19  ;;  %v1026_v62 = vmul.f32 %v1020_v33, %v4337_v35  ;;  %v1029_v6 = vadd.f32 %v1025_v46, %v1008_v44  ;;  %v4341_v8 = vld [vmem:[#allocation91_spill] sm:$0xff] }
 0x427   : > { %v1061_v55 = vsel %vm1060_vm12, %v4334_v50, %v4333_v43  ;;  %v1063_v32 = vsel %vm1060_vm12, %v4333_v43, %v4334_v50  ;;  %v1044_v45 = vmul.f32 %v1042_v30, %v4338_v29  ;;  %v1045_v38 = vmul.f32 %v1040_v42, %v4339_v13  ;;  %v1116_v30 = vpop.permute.xlu0 %1115  ;;  %v4344_v59 = vld [vmem:[#allocation74_spill] sm:$0xff]  ;;  %v4345_v43 = vld [vmem:[#allocation75_spill] sm:$0xff]  ;;  %v4348_v29 = vld [vmem:[#allocation92_spill] sm:$0xff] }
 0x428   : > { %v1046_v47 = vmul.f32 %v1043_v27, %v4340_v51  ;;  %v1047_v31 = vmul.f32 %v1041_v16, %v4341_v8  ;;  %v933_v1 = vadd.f32 %v929_v23, %v912_v20  ;;  %v934_v26 = vadd.f32 %v930_v21, %v913_v52  ;;  %v4346_v52 = vld [vmem:[#allocation173_spill] sm:$0xff] }
 0x429   : > { %v959_v0 = vpop.permute.xlu1 %958  ;;  %v1065_v9 = vmul.f32 %v1063_v32, %v4342_v28  ;;  %v1066_v3 = vmul.f32 %v1061_v55, %v4343_v49  ;;  %v1030_v23 = vadd.f32 %v1026_v62, %v1009_v7  ;;  %v1048_v21 = vadd.f32 %v1044_v45, %v1027_v10  ;;  %v4347_v10 = vld [vmem:[#allocation175_spill] sm:$0xff]  ;;  %v4351_v49 = vld [vmem:[#allocation97_spill] sm:$0xff] }
 0x42a   : > { %v954_v46 = vadd.f32 %v950_v2, %v933_v1  ;;  %v955_v42 = vadd.f32 %v951_v54, %v934_v26  ;;  %v1049_v20 = vadd.f32 %v1045_v38, %v1028_v24  ;;  %v1064_v50 = vsel %vm1060_vm12, %v3220_v63, %v4346_v52  ;;  %v4349_v38 = vld [vmem:[#allocation93_spill] sm:$0xff]  ;;  %v4350_v1 = vld [vmem:[#allocation96_spill] sm:$0xff] }
 0x42b   : > { %v1050_v55 = vadd.f32 %v1046_v47, %v1029_v6  ;;  %v1051_v54 = vadd.f32 %v1047_v31, %v1030_v23  ;;  %v1069_v35 = vadd.f32 %v1065_v9, %v1048_v21  ;;  %v1082_v24 = vsel %vm1081_vm13, %v4347_v10, %v3252_v61  ;;  %v1118_v28 = vpop.permute.xlu0 %1117 }
 0x42c   : > { %v1070_v7 = vadd.f32 %v1066_v3, %v1049_v20  ;;  %v1067_v6 = vmul.f32 %v1064_v50, %v4348_v29  ;;  %v1083_v47 = vsel %vm1081_vm13, %v3218_v11, %v3334_v17  ;;  %v1086_v26 = vmul.f32 %v1082_v24, %v4350_v1  ;;  %v4355_v20 = vld [vmem:[#allocation165_spill] sm:$0xff]  ;;  %v4358_v24 = vld [vmem:[#allocation102_spill] sm:$0xff]  ;;  %v4362_v1 = vld [vmem:[#allocation108_spill] sm:$0xff] }
 0x42d   : > { %v963_v37 = vpop.permute.xlu1 %962 }
 0x42e   : > { %v966_v44 = vsel %vm964_vm10, %v959_v0, %v963_v37  ;;  %v968_v33 = vsel %vm964_vm10, %v963_v37, %v959_v0  ;;  %v1062_v0 = vsel %vm1060_vm12, %v4346_v52, %v3220_v63  ;;  %v1084_v63 = vsel %vm1081_vm13, %v3252_v61, %v4347_v10 }
 0x42f   : > { %v971_v27 = vmul.f32 %v966_v44, %v4344_v59  ;;  %v972_v16 = vmul.f32 %v968_v33, %v4345_v43  ;;  %v1068_v51 = vmul.f32 %v1062_v0, %v4349_v38  ;;  %v1085_v61 = vsel %vm1081_vm13, %v3334_v17, %v3218_v11  ;;  %v1137_v29 = vpop.permute.xlu0 %1136 }
 0x430   : > { %v1103_v37 = vsel %vm1102_vm14, %v3250_v25, %v3356_v41  ;;  %v1087_v3 = vmul.f32 %v1084_v63, %v4351_v49  ;;  %v1105_v44 = vsel %vm1102_vm14, %v3356_v41, %v3250_v25  ;;  %v4356_v25 = vld [vmem:[#allocation101_spill] sm:$0xff]  ;;  %v1090_v10 = vadd.f32 %v1086_v26, %v1069_v35 }
 0x431   : > { %v975_v32 = vadd.f32 %v971_v27, %v954_v46  ;;  %v976_v5 = vadd.f32 %v972_v16, %v955_v42  ;;  %v1101_v2 = vpop.permute.xlu1 %1100  ;;  %v1071_v46 = vadd.f32 %v1067_v6, %v1050_v55  ;;  %v4352_v42 = vld [vmem:[#allocation82_spill] sm:$0xff]  ;;  %v4353_v27 = vld [vmem:[#allocation83_spill] sm:$0xff]  ;;  %v4354_v16 = vld [vmem:[#allocation100_spill] sm:$0xff]  ;;  %v1108_v41 = vmul.f32 %v1105_v44, %v4356_v25 }
 0x432   : > { %v1924_v19 = vpop.eup %1923  ;;  %v1088_v11 = vmul.f32 %v1083_v47, %v4352_v42  ;;  %v1089_v43 = vmul.f32 %v1085_v61, %v4353_v27  ;;  %v1107_v23 = vmul.f32 %v1103_v37, %v4354_v16  ;;  %v1104_v50 = vsel %vm1102_vm14, %v3389_v4, %v1101_v2  ;;  %v4359_v6 = vld [vmem:[#allocation103_spill] sm:$0xff]  ;;  %v4361_v47 = vld [vmem:[#allocation105_spill] sm:$0xff]  ;;  %v4364_v44 = vld [vmem:[#allocation112_spill] sm:$0xff] }
 0x433   : > { %v1926_v62 = vpop.eup %1925  ;;  %v1159_v45 = vmul.f32 0.5, %v975_v32  ;;  %v1160_v13 = vmul.f32 0.5, %v976_v5  ;;  %v1173_v8 = vmul.f32 0.5, %v1924_v19  ;;  %v1106_v55 = vsel %vm1102_vm14, %v1101_v2, %v3389_v4  ;;  %v4357_v32 = vld [vmem:[#allocation164_spill] sm:$0xff]  ;;  %v4363_v61 = vld [vmem:[#allocation109_spill] sm:$0xff] }
 0x434   : > { %v1174_v31 = vmul.f32 0.5, %v1926_v62  ;;  %v1072_v19 = vadd.f32 %v1068_v51, %v1051_v54  ;;  %v4360_v2 = vld [vmem:[#allocation104_spill] sm:$0xff]  ;;  %v1110_v54 = vmul.f32 %v1106_v55, %v4361_v47  ;;  %v1092_v35 = vadd.f32 %v1088_v11, %v1071_v46  ;;  %v4365_v46 = vld [vmem:[#allocation113_spill] sm:$0xff]  ;;  %v4369_v47 = vld [vmem:[#allocation162_spill] sm:$0xff] }
 0x435   : > { %1927 = vtanh.f32 %v1159_v45  ;;  %v1120_v9 = vpop.permute.xlu1 %1119  ;;  %v1181_v33 = vadd.f32 0.5, %v1173_v8  ;;  %v1109_v38 = vmul.f32 %v1104_v50, %v4360_v2  ;;  %v1111_v51 = vadd.f32 %v1107_v23, %v1090_v10  ;;  %v4367_v10 = vld [vmem:[#allocation115_spill] sm:$0xff] }
 0x436   : > { %1929 = vtanh.f32 %v1160_v13  ;;  %v1124_v17 = vsel %vm1123_vm15, %v1116_v30, %v1120_v9  ;;  %v1182_v59 = vadd.f32 0.5, %v1174_v31  ;;  %v1126_v21 = vsel %vm1123_vm15, %v1120_v9, %v1116_v30  ;;  %v4368_v2 = vld [vmem:[#allocation163_spill] sm:$0xff] }
 0x437   : > { %v3469_v52 = vmul.f32 %v1181_v33, %v4355_v20  ;;  %v1091_v30 = vadd.f32 %v1087_v3, %v1070_v7  ;;  %v1128_v62 = vmul.f32 %v1124_v17, %v4358_v24  ;;  %v1129_v63 = vmul.f32 %v1126_v21, %v4359_v6 }
 0x438   : > { %v3479_v5 = vmul.f32 %v1182_v59, %v4357_v32  ;;  %v1093_v7 = vadd.f32 %v1089_v43, %v1072_v19  ;;  %v1113_v11 = vadd.f32 %v1109_v38, %v1092_v35  ;;  %v1139_v59 = vpop.permute.xlu0 %1138  ;;  %v4366_v32 = vld [vmem:[#allocation114_spill] sm:$0xff] }
 0x439   : > { %v1122_v0 = vpop.permute.xlu1 %1121  ;;  %v1112_v8 = vadd.f32 %v1108_v41, %v1091_v30  ;;  %v1132_v49 = vadd.f32 %v1128_v62, %v1111_v51 }
 0x43a   : > { %v1125_v45 = vsel %vm1123_vm15, %v1118_v28, %v1122_v0  ;;  %v1127_v13 = vsel %vm1123_vm15, %v1122_v0, %v1118_v28  ;;  %v1197_v4 = vadd.f32 %v3479_v5, %v3469_v52  ;;  %v1114_v17 = vadd.f32 %v1110_v54, %v1093_v7 }
 0x43b   : > { %v1130_v26 = vmul.f32 %v1125_v45, %v4362_v1  ;;  %v1131_v37 = vmul.f32 %v1127_v13, %v4363_v61  ;;  %v1133_v3 = vadd.f32 %v1129_v63, %v1112_v8 }
 0x43c   : > { %1198 = vadd.xlane.f32.xlu0 %v1197_v4 }
 0x43d   : > { %v1141_v31 = vpop.permute.xlu1 %1140  ;;  %v1134_v21 = vadd.f32 %v1130_v26, %v1113_v11  ;;  %v1135_v20 = vadd.f32 %v1131_v37, %v1114_v17 }
 0x43e   : > { %v1145_v28 = vsel %vm1144_vm0, %v1137_v29, %v1141_v31  ;;  %v1147_v9 = vsel %vm1144_vm0, %v1141_v31, %v1137_v29 }
 0x43f   : > { %v1149_v33 = vmul.f32 %v1145_v28, %v4364_v44  ;;  %v1150_v42 = vmul.f32 %v1147_v9, %v4365_v46  ;;  %v4371_v46 = vld [vmem:[#allocation160_spill] sm:$0xff] }
 0x441   : > { %v1153_v27 = vadd.f32 %v1149_v33, %v1132_v49  ;;  %v1154_v43 = vadd.f32 %v1150_v42, %v1133_v3  ;;  %v1143_v16 = vpop.permute.xlu1 %1142  ;;  %v4370_v3 = vld [vmem:[#allocation161_spill] sm:$0xff] }
 0x442   : > { %v1928_v23 = vpop.eup %1927  ;;  %v1146_v25 = vsel %vm1144_vm0, %v1139_v59, %v1143_v16  ;;  %v1148_v41 = vsel %vm1144_vm0, %v1143_v16, %v1139_v59 }
 0x443   : > { %v1930_v50 = vpop.eup %1929  ;;  %v1161_v55 = vmul.f32 0.5, %v1153_v27  ;;  %v1162_v0 = vmul.f32 0.5, %v1154_v43  ;;  %v1151_v19 = vmul.f32 %v1146_v25, %v4366_v32  ;;  %v1152_v30 = vmul.f32 %v1148_v41, %v4367_v10  ;;  %v1956_v25 = vld [vmem:[%s2921_s27 + $0x38] sm:$0xff] }
 0x444   : > { %v1175_v24 = vmul.f32 0.5, %v1928_v23  ;;  %v1176_v62 = vmul.f32 0.5, %v1930_v50  ;;  %v1955_v23 = vld [vmem:[%s2921_s27 + $0x30] sm:$0xff] }
 0x445   : > { %1931 = vtanh.f32 %v1161_v55  ;;  %v1155_v29 = vadd.f32 %v1151_v19, %v1134_v21  ;;  %v1156_v6 = vadd.f32 %v1152_v30, %v1135_v20  ;;  %v1213_v55 = vmul.f32 %v3469_v52, %v3469_v52 }
 0x446   : > { %1933 = vtanh.f32 %v1162_v0  ;;  %v1183_v63 = vadd.f32 0.5, %v1175_v24  ;;  %v1184_v45 = vadd.f32 0.5, %v1176_v62  ;;  %v1214_v0 = vmul.f32 %v3479_v5, %v3479_v5  ;;  %v4372_v24 = vld [vmem:[#allocation41_spill] sm:$0xff]  ;;  %v4373_v62 = vld [vmem:[#allocation40_spill] sm:$0xff] }
 0x447   : > { %v1163_v13 = vmul.f32 0.5, %v1155_v29  ;;  %v1164_v4 = vmul.f32 0.5, %v1156_v6  ;;  %v4374_v29 = vld [vmem:[#allocation42_spill] sm:$0xff]  ;;  %v4375_v6 = vmov 0  }
 0x448   : > { %v3506_v38 = vmul.f32 %v1183_v63, %v4368_v2  ;;  %v3509_v54 = vmul.f32 %v1184_v45, %v4369_v47  ;;  %v1221_v32 = vadd.f32 %v1214_v0, %v1213_v55  ;;  %v4376_v63 = vld [vmem:[#allocation38_spill] sm:$0xff] }
 0x449   : > { %1935 = vtanh.f32 %v1163_v13 }
 0x44a   : > { %1937 = vtanh.f32 %v1164_v4  ;;  %v1200_v35 = vadd.f32 %v3509_v54, %v3506_v38  ;;  %v1215_v7 = vmul.f32 %v3506_v38, %v3506_v38  ;;  %v1216_v51 = vmul.f32 %v3509_v54, %v3509_v54 }
 0x44c   : > { %1201 = vadd.xlane.f32.xlu1 %v1200_v35  ;;  %v1224_v8 = vadd.f32 %v1216_v51, %v1215_v7 }
 0x450   : > { %1225 = vadd.xlane.f32.xlu1 %v1224_v8 }
 0x452   : > { %v1932_v31 = vpop.eup %1931 }
 0x453   : > { %v1934_v1 = vpop.eup %1933  ;;  %v1177_v26 = vmul.f32 0.5, %v1932_v31 }
 0x454   : > { %v1178_v61 = vmul.f32 0.5, %v1934_v1 }
 0x455   : > { %v1185_v37 = vadd.f32 0.5, %v1177_v26 }
 0x456   : > { %v1936_v28 = vpop.eup %1935  ;;  %v1186_v9 = vadd.f32 0.5, %v1178_v61 }
 0x457   : > { %v1938_v49 = vpop.eup %1937  ;;  %v3518_v44 = vmul.f32 %v1185_v37, %v4370_v3  ;;  %v1179_v33 = vmul.f32 0.5, %v1936_v28 }
 0x458   : > { %v3521_v42 = vmul.f32 %v1186_v9, %v4371_v46  ;;  %v1180_v11 = vmul.f32 0.5, %v1938_v49 }
 0x459   : > { %v1217_v17 = vmul.f32 %v3518_v44, %v3518_v44  ;;  %v1187_v59 = vadd.f32 0.5, %v1179_v33 }
 0x45a   : > { %v1203_v27 = vadd.f32 %v3521_v42, %v3518_v44  ;;  %v1218_v43 = vmul.f32 %v3521_v42, %v3521_v42  ;;  %v1188_v16 = vadd.f32 0.5, %v1180_v11 }
 0x45b   : > { %v3530_v21 = vmul.f32 %v1955_v23, %v1187_v59 }
 0x45c   : > { %1204 = vadd.xlane.f32.xlu0 %v1203_v27  ;;  %v1227_v20 = vadd.f32 %v1218_v43, %v1217_v17  ;;  %v3533_v41 = vmul.f32 %v1956_v25, %v1188_v16  ;;  %v4377_v17 = vld [vmem:[#allocation15_spill] sm:$0xff] }
 0x45d   : > { %v1219_v19 = vmul.f32 %v3530_v21, %v3530_v21 }
 0x45e   : > { %1228 = vadd.xlane.f32.xlu1 %v1227_v20  ;;  %v1206_v50 = vadd.f32 %v3533_v41, %v3530_v21  ;;  %v1220_v10 = vmul.f32 %v3533_v41, %v3533_v41 }
 0x460   : > { %1207 = vadd.xlane.f32.xlu0 %v1206_v50  ;;  %v1230_v30 = vadd.f32 %v1220_v10, %v1219_v19 }
 0x464   : > { %1222 = vadd.xlane.f32.xlu0 %v1221_v32  ;;  %v4378_v32 = vld [vmem:[#allocation14_spill] sm:$0xff] }
 0x468   : > { %1231 = vadd.xlane.f32.xlu0 %v1230_v30  ;;  %v4379_v30 = vld [vmem:[#allocation16_spill] sm:$0xff] }
 0x46f   : > { %1330 = vperm.xlu1 %1915, %v4372_v24  }
 0x473   : > { %1334 = vperm.xlu1 %1915, %v4373_v62  }
 0x477   : > { %1342 = vperm.xlu1 %1915, %v4374_v29   ;;  %v4380_v29 = vld [vmem:[#allocation17_spill] sm:$0xff] }
 0x47b   : > { %1917 = vset.pattern.permute.xlu1 %v4375_v6 }
 0x47e   : > { %1338 = vperm.xlu0 %1916, %v4376_v63  }
 0x482   : > { %1918 = vset.pattern.permute.xlu0 %v4375_v6 }
 0x4c5   : > { %v1199_v51 = vpop.xlane.xlu0 %1198 }
 0x4c6   : > { %v1209_v26 = vmul.f32 0.00390625, %v1199_v51  ;;  %v4383_v51 = vld [vmem:[#allocation20_spill] sm:$0xff] }
 0x4c8   : > { %v1237_v49 = vmul.f32 %v1209_v26, %v1209_v26 }
 0x4d5   : > { %v1202_v45 = vpop.xlane.xlu1 %1201 }
 0x4d6   : > { %v1210_v13 = vmul.f32 0.00390625, %v1202_v45 }
 0x4d8   : > { %v1238_v2 = vmul.f32 %v1210_v13, %v1210_v13 }
 0x4d9   : > { %v1226_v4 = vpop.xlane.xlu1 %1225 }
 0x4da   : > { %v1234_v47 = vmul.f32 0.00390625, %v1226_v4  ;;  %v4381_v4 = vld [vmem:[#allocation18_spill] sm:$0xff] }
 0x4dc   : > { %v1242_v35 = vsub.f32 %v1234_v47, %v1238_v2  ;;  %v4382_v47 = vld [vmem:[#allocation19_spill] sm:$0xff] }
 0x4de   : > { %v1246_v7 = vadd.f32 1e-05, %v1242_v35 }
 0x4e0   : > { %1939 = vrsqrt.f32 %v1246_v7 }
 0x4e5   : > { %v1205_v8 = vpop.xlane.xlu0 %1204 }
 0x4e6   : > { %v1211_v31 = vmul.f32 0.00390625, %v1205_v8 }
 0x4e7   : > { %v1229_v1 = vpop.xlane.xlu1 %1228 }
 0x4e8   : > { %v1239_v37 = vmul.f32 %v1211_v31, %v1211_v31  ;;  %v1235_v28 = vmul.f32 0.00390625, %v1229_v1 }
 0x4e9   : > { %v1208_v61 = vpop.xlane.xlu0 %1207 }
 0x4ea   : > { %v1243_v33 = vsub.f32 %v1235_v28, %v1239_v37  ;;  %v1212_v46 = vmul.f32 0.00390625, %v1208_v61  ;;  %v4384_v61 = vld [vmem:[#allocation21_spill] sm:$0xff] }
 0x4eb   : > { %v3559_v28 = vpop.permute.xlu1 %1330 }
 0x4ec   : > { %v1247_v16 = vadd.f32 1e-05, %v1243_v33  ;;  %v1240_v23 = vmul.f32 %v1212_v46, %v1212_v46 }
 0x4ed   : > { %v1940_v9 = vpop.eup %1939  ;;  %v1223_v3 = vpop.xlane.xlu0 %1222 }
 0x4ee   : > { %v1233_v11 = vmul.f32 0.00390625, %v1223_v3  ;;  %v1254_v59 = vmul.f32 %v1940_v9, %v4377_v17 }
 0x4ef   : > { %v3561_v9 = vpop.permute.xlu1 %1334 }
 0x4f0   : > { %v1241_v27 = vsub.f32 %v1233_v11, %v1237_v49  ;;  %1272 = vperm.xlu0 %1918, %v1254_v59   ;;  %v1258_v45 = vmul.f32 %v1254_v59, %v1210_v13 }
 0x4f1   : > { %v1232_v43 = vpop.xlane.xlu0 %1231 }
 0x4f2   : > { %v1245_v20 = vadd.f32 1e-05, %v1241_v27  ;;  %v1236_v25 = vmul.f32 0.00390625, %v1232_v43  ;;  %v1262_v35 = vsub.f32 %v4382_v47, %v1258_v45 }
 0x4f4   : > { %1941 = vrsqrt.f32 %v1245_v20  ;;  %v1244_v50 = vsub.f32 %v1236_v25, %v1240_v23 }
 0x4f5   : > { %1943 = vrsqrt.f32 %v1247_v16 }
 0x4f6   : > { %v1248_v55 = vadd.f32 1e-05, %v1244_v50 }
 0x4f8   : > { %1945 = vrsqrt.f32 %v1248_v55 }
 0x4f9   : > { %v3565_v3 = vpop.permute.xlu0 %1338 }
 0x501   : > { %v1942_v0 = vpop.eup %1941 }
 0x502   : > { %v1253_v19 = vmul.f32 %v1942_v0, %v4378_v32  ;;  %v1944_v10 = vpop.eup %1943 }
 0x503   : > { %v1255_v24 = vmul.f32 %v1944_v10, %v4379_v30 }
 0x504   : > { %1267 = vperm.xlu1 %1917, %v1253_v19   ;;  %v1257_v63 = vmul.f32 %v1253_v19, %v1209_v26  ;;  %v3563_v26 = vpop.permute.xlu1 %1342 }
 0x505   : > { %v1946_v62 = vpop.eup %1945  ;;  %v1259_v7 = vmul.f32 %v1255_v24, %v1211_v31 }
 0x506   : > { %v1256_v6 = vmul.f32 %v1946_v62, %v4380_v29  ;;  %v1261_v2 = vsub.f32 %v4381_v4, %v1257_v63 }
 0x507   : > { %v1263_v8 = vsub.f32 %v4383_v51, %v1259_v7 }
 0x508   : > { %1277 = vperm.xlu1 %1917, %v1255_v24   ;;  %v1260_v1 = vmul.f32 %v1256_v6, %v1212_v46 }
 0x50a   : > { %v1264_v37 = vsub.f32 %v4384_v61, %v1260_v1  ;;  %v4385_v61 = vld [vmem:[#allocation116_spill] sm:$0xff] }
 0x50c   : > { %1282 = vperm.xlu1 %1917, %v1256_v6  }
 0x510   : > { %1295 = vperm.xlu1 %1917, %v1261_v2  }
 0x514   : > { %1300 = vperm.xlu1 %1917, %v1262_v35  }
 0x518   : > { %1305 = vperm.xlu1 %1917, %v1263_v8  }
 0x51c   : > { %1310 = vperm.xlu1 %1917, %v1264_v37  }
 0x56b   : > { %v1273_v11 = vpop.permute.xlu0 %1272 }
 0x56c   : > { %v1287_v27 = vmul.f32 %v1273_v11, %v3506_v38  ;;  %v1288_v20 = vmul.f32 %v1273_v11, %v3509_v54 }
 0x57f   : > { %v1268_v13 = vpop.permute.xlu1 %1267 }
 0x580   : > { %v1285_v31 = vmul.f32 %v1268_v13, %v3469_v52  ;;  %v1286_v46 = vmul.f32 %v1268_v13, %v3479_v5  ;;  %v4386_v13 = vld [vmem:[#allocation117_spill] sm:$0xff] }
 0x583   : > { %v1278_v49 = vpop.permute.xlu1 %1277 }
 0x584   : > { %v1289_v50 = vmul.f32 %v1278_v49, %v3518_v44  ;;  %v1290_v38 = vmul.f32 %v1278_v49, %v3521_v42 }
 0x587   : > { %v1283_v33 = vpop.permute.xlu1 %1282 }
 0x588   : > { %v1291_v30 = vmul.f32 %v1283_v33, %v3530_v21  ;;  %v1292_v62 = vmul.f32 %v1283_v33, %v3533_v41 }
 0x58b   : > { %v1296_v17 = vpop.permute.xlu1 %1295 }
 0x58c   : > { %v1313_v59 = vadd.f32 %v1296_v17, %v1285_v31  ;;  %v1314_v43 = vadd.f32 %v1296_v17, %v1286_v46  ;;  %v4387_v46 = vld [vmem:[#allocation52_spill] sm:$0xff] }
 0x58e   : > { %v3570_v16 = vmax.f32 %v1313_v59, 0.0  ;;  %v3576_v52 = vmax.f32 %v1314_v43, 0.0 }
 0x58f   : > { %v1301_v23 = vpop.permute.xlu1 %1300 }
 0x590   : > { %v1315_v25 = vadd.f32 %v1301_v23, %v1287_v27  ;;  %1353 = vrot.lane.b32.xlu1 %v3570_v16, %s2031_s28  ;;  %v1316_v55 = vadd.f32 %v1301_v23, %v1288_v20  ;;  %v4388_v27 = vld [vmem:[#allocation53_spill] sm:$0xff]  ;;  %v1345_v23 = vmul.f32 %v3559_v28, %v3570_v16  ;;  %v1346_v20 = vmul.f32 %v3559_v28, %v3576_v52 }
 0x592   : > { %v3578_v0 = vmax.f32 %v1315_v25, 0.0  ;;  %v3585_v54 = vmax.f32 %v1316_v55, 0.0 }
 0x593   : > { %v1306_v5 = vpop.permute.xlu1 %1305 }
 0x594   : > { %v1317_v32 = vadd.f32 %v1306_v5, %v1289_v50  ;;  %1361 = vrot.lane.b32.xlu1 %v3576_v52, %s2031_s28  ;;  %1355 = vrot.lane.b32.xlu0 %v3578_v0, %s2031_s28  ;;  %v1318_v19 = vadd.f32 %v1306_v5, %v1290_v38 }
 0x596   : > { %v3587_v10 = vmax.f32 %v1317_v32, 0.0  ;;  %v3593_v44 = vmax.f32 %v1318_v19, 0.0 }
 0x597   : > { %v1311_v42 = vpop.permute.xlu1 %1310 }
 0x598   : > { %1357 = vrot.lane.b32.xlu1 %v3587_v10, %s2031_s28  ;;  %1363 = vrot.lane.b32.xlu0 %v3585_v54, %s2031_s28  ;;  %v1319_v24 = vadd.f32 %v1311_v42, %v1291_v30  ;;  %v1320_v29 = vadd.f32 %v1311_v42, %v1292_v62  ;;  %v1349_v11 = vmul.f32 %v3565_v3, %v3587_v10  ;;  %v4390_v42 = vld [vmem:[#allocation121_spill] sm:$0xff] }
 0x599   : > { %v1350_v17 = vmul.f32 %v3565_v3, %v3593_v44  ;;  %v4392_v62 = vld [vmem:[#allocation125_spill] sm:$0xff] }
 0x59a   : > { %v3605_v6 = vmax.f32 %v1319_v24, 0.0  ;;  %v3611_v21 = vmax.f32 %v1320_v29, 0.0  ;;  %v1347_v29 = vmul.f32 %v3561_v9, %v3578_v0 }
 0x59c   : > { %1393 = vrot.lane.b32.xlu1 %v3570_v16, %s2032_s4  ;;  %1365 = vrot.lane.b32.xlu0 %v3593_v44, %s2031_s28 }
 0x5a0   : > { %1401 = vrot.lane.b32.xlu1 %v3576_v52, %s2032_s4  ;;  %1395 = vrot.lane.b32.xlu0 %v3578_v0, %s2032_s4 }
 0x5a4   : > { %1359 = vrot.lane.b32.xlu1 %v3605_v6, %s2031_s28  ;;  %1403 = vrot.lane.b32.xlu0 %v3585_v54, %s2032_s4 }
 0x5a8   : > { %1397 = vrot.lane.b32.xlu1 %v3587_v10, %s2032_s4  ;;  %1367 = vrot.lane.b32.xlu0 %v3611_v21, %s2031_s28 }
 0x5ac   : > { %1433 = vrot.lane.b32.xlu1 %v3570_v16, %s2034_s29  ;;  %1405 = vrot.lane.b32.xlu0 %v3593_v44, %s2032_s4 }
 0x5b0   : > { %1441 = vrot.lane.b32.xlu1 %v3576_v52, %s2034_s29  ;;  %1435 = vrot.lane.b32.xlu0 %v3578_v0, %s2034_s29 }
 0x5b4   : > { %1399 = vrot.lane.b32.xlu1 %v3605_v6, %s2032_s4  ;;  %1443 = vrot.lane.b32.xlu0 %v3585_v54, %s2034_s29 }
 0x5b8   : > { %1437 = vrot.lane.b32.xlu1 %v3587_v10, %s2034_s29  ;;  %1407 = vrot.lane.b32.xlu0 %v3611_v21, %s2032_s4 }
 0x5bc   : > { %1473 = vrot.lane.b32.xlu1 %v3570_v16, %s2036_s5  ;;  %1445 = vrot.lane.b32.xlu0 %v3593_v44, %s2034_s29 }
 0x5c0   : > { %1481 = vrot.lane.b32.xlu1 %v3576_v52, %s2036_s5  ;;  %1475 = vrot.lane.b32.xlu0 %v3578_v0, %s2036_s5 }
 0x5c4   : > { %1439 = vrot.lane.b32.xlu1 %v3605_v6, %s2034_s29  ;;  %1483 = vrot.lane.b32.xlu0 %v3585_v54, %s2036_s5 }
 0x5c8   : > { %1477 = vrot.lane.b32.xlu1 %v3587_v10, %s2036_s5  ;;  %1447 = vrot.lane.b32.xlu0 %v3611_v21, %s2034_s29 }
 0x5cc   : > { %1513 = vrot.lane.b32.xlu1 %v3570_v16, %s2038_s16  ;;  %1485 = vrot.lane.b32.xlu0 %v3593_v44, %s2036_s5 }
 0x5d0   : > { %1521 = vrot.lane.b32.xlu1 %v3576_v52, %s2038_s16  ;;  %1515 = vrot.lane.b32.xlu0 %v3578_v0, %s2038_s16 }
 0x5d4   : > { %1479 = vrot.lane.b32.xlu1 %v3605_v6, %s2036_s5  ;;  %1523 = vrot.lane.b32.xlu0 %v3585_v54, %s2038_s16 }
 0x5d8   : > { %1517 = vrot.lane.b32.xlu1 %v3587_v10, %s2038_s16  ;;  %1487 = vrot.lane.b32.xlu0 %v3611_v21, %s2036_s5 }
 0x5dc   : > { %1553 = vrot.lane.b32.xlu1 %v3570_v16, %s2040_s10  ;;  %1525 = vrot.lane.b32.xlu0 %v3593_v44, %s2038_s16 }
 0x5e0   : > { %1561 = vrot.lane.b32.xlu1 %v3576_v52, %s2040_s10  ;;  %1555 = vrot.lane.b32.xlu0 %v3578_v0, %s2040_s10 }
 0x5e4   : > { %1519 = vrot.lane.b32.xlu1 %v3605_v6, %s2038_s16  ;;  %1563 = vrot.lane.b32.xlu0 %v3585_v54, %s2040_s10 }
 0x5e8   : > { %1557 = vrot.lane.b32.xlu1 %v3587_v10, %s2040_s10  ;;  %1527 = vrot.lane.b32.xlu0 %v3611_v21, %s2038_s16 }
 0x5ec   : > { %1593 = vrot.lane.b32.xlu1 %v3570_v16, %s2042_s12  ;;  %1565 = vrot.lane.b32.xlu0 %v3593_v44, %s2040_s10 }
 0x5f0   : > { %1601 = vrot.lane.b32.xlu1 %v3576_v52, %s2042_s12  ;;  %1595 = vrot.lane.b32.xlu0 %v3578_v0, %s2042_s12 }
 0x5f4   : > { %1559 = vrot.lane.b32.xlu1 %v3605_v6, %s2040_s10  ;;  %1603 = vrot.lane.b32.xlu0 %v3585_v54, %s2042_s12 }
 0x5f8   : > { %1597 = vrot.lane.b32.xlu1 %v3587_v10, %s2042_s12  ;;  %1567 = vrot.lane.b32.xlu0 %v3611_v21, %s2040_s10 }
 0x5fc   : > { %1633 = vrot.lane.b32.xlu1 %v3570_v16, %s2044_s19  ;;  %1605 = vrot.lane.b32.xlu0 %v3593_v44, %s2042_s12  ;;  %v4391_v16 = vld [vmem:[#allocation124_spill] sm:$0xff] }
 0x600   : > { %1641 = vrot.lane.b32.xlu1 %v3576_v52, %s2044_s19  ;;  %1635 = vrot.lane.b32.xlu0 %v3578_v0, %s2044_s19  ;;  %v1348_v52 = vmul.f32 %v3561_v9, %v3585_v54 }
 0x602   : > { %v1354_v41 = vpop.permute.xlu1 %1353 }
 0x604   : > { %1599 = vrot.lane.b32.xlu1 %v3605_v6, %s2042_s12  ;;  %1643 = vrot.lane.b32.xlu0 %v3585_v54, %s2044_s19 }
 0x606   : > { %v1362_v63 = vpop.permute.xlu1 %1361  ;;  %v1356_v45 = vpop.permute.xlu0 %1355 }
 0x607   : > { %v1369_v4 = vsel %vm817_vm1, %v1354_v41, %v1362_v63  ;;  %v1373_v2 = vsel %vm817_vm1, %v1362_v63, %v1354_v41 }
 0x608   : > { %1637 = vrot.lane.b32.xlu1 %v3587_v10, %s2044_s19  ;;  %1607 = vrot.lane.b32.xlu0 %v3611_v21, %s2042_s12  ;;  %v1377_v37 = vmul.f32 %v1373_v2, %v4385_v61  ;;  %v1378_v49 = vmul.f32 %v1369_v4, %v4386_v13  ;;  %v4389_v10 = vld [vmem:[#allocation120_spill] sm:$0xff] }
 0x60a   : > { %v1358_v47 = vpop.permute.xlu1 %1357  ;;  %v1364_v35 = vpop.permute.xlu0 %1363  ;;  %v1385_v38 = vadd.f32 %v1377_v37, %v1345_v23  ;;  %v1386_v32 = vadd.f32 %v1378_v49, %v1346_v20 }
 0x60b   : > { %v1370_v7 = vsel %vm817_vm1, %v1356_v45, %v1364_v35  ;;  %v1374_v51 = vsel %vm817_vm1, %v1364_v35, %v1356_v45 }
 0x60c   : > { %1639 = vrot.lane.b32.xlu1 %v3605_v6, %s2044_s19  ;;  %1645 = vrot.lane.b32.xlu0 %v3593_v44, %s2044_s19  ;;  %v1379_v44 = vmul.f32 %v1374_v51, %v4389_v10  ;;  %v1380_v30 = vmul.f32 %v1370_v7, %v4390_v42  ;;  %v4393_v51 = vld [vmem:[#allocation57_spill] sm:$0xff] }
 0x60e   : > { %v1394_v8 = vpop.permute.xlu1 %1393  ;;  %v1366_v1 = vpop.permute.xlu0 %1365  ;;  %v1387_v35 = vadd.f32 %v1379_v44, %v1347_v29  ;;  %v1388_v7 = vadd.f32 %v1380_v30, %v1348_v52  ;;  %v4399_v30 = vld [vmem:[#allocation64_spill] sm:$0xff] }
 0x60f   : > { %v1371_v33 = vsel %vm817_vm1, %v1358_v47, %v1366_v1  ;;  %v1375_v31 = vsel %vm817_vm1, %v1366_v1, %v1358_v47  ;;  %v4394_v1 = vld [vmem:[#allocation58_spill] sm:$0xff] }
 0x610   : > { %v1381_v59 = vmul.f32 %v1375_v31, %v4387_v46  ;;  %v1382_v43 = vmul.f32 %v1371_v33, %v4388_v27  ;;  %1647 = vrot.lane.b32.xlu0 %v3611_v21, %s2044_s19  ;;  %v1351_v33 = vmul.f32 %v3563_v26, %v3605_v6  ;;  %v1352_v31 = vmul.f32 %v3563_v26, %v3611_v21  ;;  %v4396_v46 = vld [vmem:[#allocation123_spill] sm:$0xff] }
 0x611   : > { %v4398_v6 = vld [vmem:[#allocation127_spill] sm:$0xff] }
 0x612   : > { %v1389_v25 = vadd.f32 %v1381_v59, %v1349_v11  ;;  %v1390_v50 = vadd.f32 %v1382_v43, %v1350_v17  ;;  %v1402_v55 = vpop.permute.xlu1 %1401  ;;  %v1396_v5 = vpop.permute.xlu0 %1395  ;;  %v4395_v11 = vld [vmem:[#allocation122_spill] sm:$0xff] }
 0x613   : > { %v1409_v3 = vsel %vm838_vm2, %v1394_v8, %v1402_v55  ;;  %v1413_v19 = vsel %vm838_vm2, %v1402_v55, %v1394_v8 }
 0x614   : > { %v1417_v24 = vmul.f32 %v1413_v19, %v4391_v16  ;;  %v1418_v28 = vmul.f32 %v1409_v3, %v4392_v62 }
 0x616   : > { %v1425_v41 = vadd.f32 %v1417_v24, %v1385_v38  ;;  %v1426_v63 = vadd.f32 %v1418_v28, %v1386_v32  ;;  %v1360_v45 = vpop.permute.xlu1 %1359  ;;  %v1404_v4 = vpop.permute.xlu0 %1403  ;;  %v4397_v38 = vld [vmem:[#allocation126_spill] sm:$0xff]  ;;  %v4400_v24 = vld [vmem:[#allocation65_spill] sm:$0xff] }
 0x617   : > { %v1410_v2 = vsel %vm838_vm2, %v1396_v5, %v1404_v4  ;;  %v1414_v47 = vsel %vm838_vm2, %v1404_v4, %v1396_v5  ;;  %v4401_v4 = vld [vmem:[#allocation130_spill] sm:$0xff] }
 0x618   : > { %v1419_v8 = vmul.f32 %v1414_v47, %v4393_v51  ;;  %v1420_v61 = vmul.f32 %v1410_v2, %v4394_v1  ;;  %v4402_v47 = vld [vmem:[#allocation131_spill] sm:$0xff] }
 0x61a   : > { %v1427_v54 = vadd.f32 %v1419_v8, %v1387_v35  ;;  %v1428_v37 = vadd.f32 %v1420_v61, %v1388_v7  ;;  %v1398_v13 = vpop.permute.xlu1 %1397  ;;  %v1368_v9 = vpop.permute.xlu0 %1367  ;;  %v4403_v61 = vld [vmem:[#allocation128_spill] sm:$0xff] }
 0x61b   : > { %v1372_v0 = vsel %vm817_vm1, %v1360_v45, %v1368_v9  ;;  %v1376_v49 = vsel %vm817_vm1, %v1368_v9, %v1360_v45  ;;  %v4404_v9 = vld [vmem:[#allocation129_spill] sm:$0xff]  ;;  %vm1694_vm1 = vcmask 15360  }
 0x61c   : > { %v1383_v17 = vmul.f32 %v1376_v49, %v4395_v11  ;;  %v1384_v59 = vmul.f32 %v1372_v0, %v4396_v46 }
 0x61e   : > { %v1391_v27 = vadd.f32 %v1383_v17, %v1351_v33  ;;  %v1392_v43 = vadd.f32 %v1384_v59, %v1352_v31  ;;  %v1434_v23 = vpop.permute.xlu1 %1433  ;;  %v1406_v20 = vpop.permute.xlu0 %1405  ;;  %v4405_v17 = vld [vmem:[#allocation132_spill] sm:$0xff]  ;;  %v4406_v59 = vld [vmem:[#allocation133_spill] sm:$0xff] }
 0x61f   : > { %v1411_v55 = vsel %vm838_vm2, %v1398_v13, %v1406_v20  ;;  %v1415_v5 = vsel %vm838_vm2, %v1406_v20, %v1398_v13 }
 0x620   : > { %v1421_v32 = vmul.f32 %v1415_v5, %v4397_v38  ;;  %v1422_v3 = vmul.f32 %v1411_v55, %v4398_v6 }
 0x622   : > { %v1429_v19 = vadd.f32 %v1421_v32, %v1389_v25  ;;  %v1430_v26 = vadd.f32 %v1422_v3, %v1390_v50  ;;  %v1442_v21 = vpop.permute.xlu1 %1441  ;;  %v1436_v10 = vpop.permute.xlu0 %1435 }
 0x623   : > { %v1449_v44 = vsel %vm859_vm3, %v1434_v23, %v1442_v21  ;;  %v1453_v42 = vsel %vm859_vm3, %v1442_v21, %v1434_v23 }
 0x624   : > { %v1457_v16 = vmul.f32 %v1453_v42, %v4399_v30  ;;  %v1458_v62 = vmul.f32 %v1449_v44, %v4400_v24  ;;  %v4408_v42 = vld [vmem:[#allocation69_spill] sm:$0xff] }
 0x626   : > { %v3783_v28 = vadd.f32 %v1457_v16, %v1425_v41  ;;  %v3785_v52 = vadd.f32 %v1458_v62, %v1426_v63  ;;  %v1400_v29 = vpop.permute.xlu1 %1399  ;;  %v1444_v45 = vpop.permute.xlu0 %1443 }
 0x627   : > { %v1450_v25 = vsel %vm859_vm3, %v1436_v10, %v1444_v45  ;;  %v1454_v50 = vsel %vm859_vm3, %v1444_v45, %v1436_v10  ;;  %v4407_v10 = vld [vmem:[#allocation68_spill] sm:$0xff] }
 0x628   : > { %v1459_v2 = vmul.f32 %v1454_v50, %v4401_v4  ;;  %v1460_v35 = vmul.f32 %v1450_v25, %v4402_v47 }
 0x62a   : > { %v3793_v7 = vadd.f32 %v1459_v2, %v1427_v54  ;;  %v3795_v51 = vadd.f32 %v1460_v35, %v1428_v37  ;;  %v1438_v41 = vpop.permute.xlu1 %1437  ;;  %v1408_v8 = vpop.permute.xlu0 %1407 }
 0x62b   : > { %v1412_v63 = vsel %vm838_vm2, %v1400_v29, %v1408_v8  ;;  %v1416_v1 = vsel %vm838_vm2, %v1408_v8, %v1400_v29 }
 0x62c   : > { %v1423_v13 = vmul.f32 %v1416_v1, %v4403_v61  ;;  %v1424_v0 = vmul.f32 %v1412_v63, %v4404_v9 }
 0x62e   : > { %v1431_v49 = vadd.f32 %v1423_v13, %v1391_v27  ;;  %v1432_v33 = vadd.f32 %v1424_v0, %v1392_v43  ;;  %v1474_v31 = vpop.permute.xlu1 %1473  ;;  %v1446_v11 = vpop.permute.xlu0 %1445 }
 0x62f   : > { %v1451_v54 = vsel %vm859_vm3, %v1438_v41, %v1446_v11  ;;  %v1455_v37 = vsel %vm859_vm3, %v1446_v11, %v1438_v41 }
 0x630   : > { %v1461_v46 = vmul.f32 %v1455_v37, %v4405_v17  ;;  %v1462_v23 = vmul.f32 %v1451_v54, %v4406_v59  ;;  %v4409_v59 = vld [vmem:[#allocation134_spill] sm:$0xff] }
 0x632   : > { %v3809_v20 = vadd.f32 %v1461_v46, %v1429_v19  ;;  %v3811_v55 = vadd.f32 %v1462_v23, %v1430_v26  ;;  %v1482_v5 = vpop.permute.xlu1 %1481  ;;  %v1476_v38 = vpop.permute.xlu0 %1475 }
 0x633   : > { %v1493_v0 = vsel %vm880_vm5, %v1482_v5, %v1474_v31  ;;  %v1489_v11 = vsel %vm880_vm5, %v1474_v31, %v1482_v5  ;;  %v4410_v5 = vld [vmem:[#allocation135_spill] sm:$0xff] }
 0x634   : > { %v1497_v23 = vmul.f32 %v1493_v0, %v4409_v59  ;;  %v4415_v0 = vld [vmem:[#allocation84_spill] sm:$0xff] }
 0x636   : > { %v1440_v27 = vpop.permute.xlu1 %1439  ;;  %v1484_v43 = vpop.permute.xlu0 %1483 }
 0x637   : > { %v1490_v54 = vsel %vm880_vm5, %v1476_v38, %v1484_v43  ;;  %v1494_v37 = vsel %vm880_vm5, %v1484_v43, %v1476_v38 }
 0x63a   : > { %v1478_v32 = vpop.permute.xlu1 %1477  ;;  %v1448_v6 = vpop.permute.xlu0 %1447 }
 0x63b   : > { %v1452_v3 = vsel %vm859_vm3, %v1440_v27, %v1448_v6  ;;  %v1456_v21 = vsel %vm859_vm3, %v1448_v6, %v1440_v27  ;;  %v1498_v6 = vmul.f32 %v1489_v11, %v4410_v5  ;;  %v1505_v11 = vadd.f32 %v1497_v23, %v3783_v28 }
 0x63c   : > { %v1463_v44 = vmul.f32 %v1456_v21, %v4407_v10  ;;  %v1464_v30 = vmul.f32 %v1452_v3, %v4408_v42  ;;  %v4411_v3 = vld [vmem:[#allocation79_spill] sm:$0xff]  ;;  %v4412_v10 = vld [vmem:[#allocation80_spill] sm:$0xff] }
 0x63d   : > { %v1499_v21 = vmul.f32 %v1494_v37, %v4411_v3  ;;  %v1500_v38 = vmul.f32 %v1490_v54, %v4412_v10  ;;  %v4413_v42 = vld [vmem:[#allocation136_spill] sm:$0xff]  ;;  %v1506_v54 = vadd.f32 %v1498_v6, %v3785_v52  ;;  %v4418_v3 = vld [vmem:[#allocation141_spill] sm:$0xff]  ;;  %v4419_v6 = vld [vmem:[#allocation138_spill] sm:$0xff] }
 0x63e   : > { %v3819_v19 = vadd.f32 %v1463_v44, %v1431_v49  ;;  %v3821_v26 = vadd.f32 %v1464_v30, %v1432_v33  ;;  %v1514_v16 = vpop.permute.xlu1 %1513  ;;  %v1486_v24 = vpop.permute.xlu0 %1485 }
 0x63f   : > { %v1491_v17 = vsel %vm880_vm5, %v1478_v32, %v1486_v24  ;;  %v1495_v46 = vsel %vm880_vm5, %v1486_v24, %v1478_v32  ;;  %v4414_v32 = vld [vmem:[#allocation137_spill] sm:$0xff]  ;;  %v1507_v37 = vadd.f32 %v1499_v21, %v3793_v7 }
 0x640   : > { %v1501_v30 = vmul.f32 %v1495_v46, %v4413_v42  ;;  %v1502_v24 = vmul.f32 %v1491_v17, %v4414_v32  ;;  %v1508_v46 = vadd.f32 %v1500_v38, %v3795_v51 }
 0x642   : > { %v1522_v62 = vpop.permute.xlu1 %1521  ;;  %v1516_v29 = vpop.permute.xlu0 %1515  ;;  %v3880_v7 = vadd.f32 %v1501_v30, %v3809_v20  ;;  %v3883_v51 = vadd.f32 %v1502_v24, %v3811_v55  ;;  %v4421_v20 = vld [vmem:[#allocation145_spill] sm:$0xff] }
 0x643   : > { %v1529_v27 = vsel %vm901_vm6, %v1514_v16, %v1522_v62  ;;  %v1533_v31 = vsel %vm901_vm6, %v1522_v62, %v1514_v16 }
 0x644   : > { %v1537_v59 = vmul.f32 %v1529_v27, %v4415_v0  ;;  %v1538_v14 = vmul.f32 %v1533_v31, %v4416_v12  ;;  %v4417_v31 = vld [vmem:[#allocation140_spill] sm:$0xff] }
 0x646   : > { %v1480_v45 = vpop.permute.xlu1 %1479  ;;  %v1524_v25 = vpop.permute.xlu0 %1523 }
 0x647   : > { %v1530_v16 = vsel %vm901_vm6, %v1516_v29, %v1524_v25  ;;  %v1534_v62 = vsel %vm901_vm6, %v1524_v25, %v1516_v29  ;;  %v1545_v29 = vadd.f32 %v1537_v59, %v1505_v11  ;;  %v1546_v25 = vadd.f32 %v1538_v14, %v1506_v54 }
 0x648   : > { %v1539_v5 = vmul.f32 %v1530_v16, %v4417_v31  ;;  %v1540_v10 = vmul.f32 %v1534_v62, %v4418_v3  ;;  %v4423_v16 = vld [vmem:[#allocation107_spill] sm:$0xff]  ;;  %v4427_v3 = vld [vmem:[#allocation142_spill] sm:$0xff] }
 0x649   : > { %v4426_v31 = vld [vmem:[#allocation95_spill] sm:$0xff] }
 0x64a   : > { %v3823_v50 = vpop.permute.xlu1 %1517  ;;  %v1488_v4 = vpop.permute.xlu0 %1487  ;;  %v1548_v24 = vadd.f32 %v1540_v10, %v1508_v46  ;;  %v4425_v46 = vld [vmem:[#allocation94_spill] sm:$0xff] }
 0x64b   : > { %v1496_v17 = vsel %vm880_vm5, %v1488_v4, %v1480_v45  ;;  %v1492_v23 = vsel %vm880_vm5, %v1480_v45, %v1488_v4  ;;  %v1547_v4 = vadd.f32 %v1539_v5, %v1507_v37 }
 0x64c   : > { %v1503_v21 = vmul.f32 %v1496_v17, %v4419_v6 }
 0x64e   : > { %v1554_v2 = vpop.permute.xlu1 %1553  ;;  %v1526_v47 = vpop.permute.xlu0 %1525  ;;  %v1511_v37 = vadd.f32 %v1503_v21, %v3819_v19 }
 0x64f   : > { %v1531_v0 = vsel %vm901_vm6, %v3823_v50, %v1526_v47 }
 0x652   : > { %v1562_v35 = vpop.permute.xlu1 %1561  ;;  %v1556_v41 = vpop.permute.xlu0 %1555 }
 0x653   : > { %v1569_v28 = vsel %vm922_vm7, %v1554_v2, %v1562_v35  ;;  %v1573_v52 = vsel %vm922_vm7, %v1562_v35, %v1554_v2  ;;  %v4420_v2 = vld [vmem:[#allocation144_spill] sm:$0xff] }
 0x654   : > { %v1577_v35 = vmul.f32 %v1569_v28, %v4420_v2  ;;  %v1578_v30 = vmul.f32 %v1573_v52, %v4421_v20  ;;  %v4430_v20 = vld [vmem:[#allocation151_spill] sm:$0xff] }
 0x656   : > { %v3825_v8 = vpop.permute.xlu1 %1519  ;;  %v1564_v63 = vpop.permute.xlu0 %1563  ;;  %v1585_v28 = vadd.f32 %v1577_v35, %v1545_v29  ;;  %v1586_v52 = vadd.f32 %v1578_v30, %v1546_v25 }
 0x657   : > { %v1570_v55 = vsel %vm922_vm7, %v1556_v41, %v1564_v63  ;;  %v1574_v14 = vsel %vm922_vm7, %v1564_v63, %v1556_v41  ;;  %v4424_v63 = vld [vmem:[#allocation139_spill] sm:$0xff] }
 0x658   : > { %v1504_v54 = vmul.f32 %v1492_v23, %v4424_v63  ;;  %v1579_v17 = vmul.f32 %v1570_v55, %v4425_v46  ;;  %v1580_v5 = vmul.f32 %v1574_v14, %v4426_v31  ;;  %v4431_v55 = vld [vmem:[#allocation154_spill] sm:$0xff]  ;;  %v4435_v31 = vld [vmem:[#allocation88_spill] sm:$0xff] }
 0x659   : > { %v4433_v63 = vld [vmem:[#allocation118_spill] sm:$0xff] }
 0x65a   : > { %v3827_v1 = vpop.permute.xlu1 %1557  ;;  %v3829_v61 = vpop.permute.xlu0 %1527  ;;  %v1587_v29 = vadd.f32 %v1579_v17, %v1547_v4  ;;  %v1588_v25 = vadd.f32 %v1580_v5, %v1548_v24 }
 0x65b   : > { %v1532_v35 = vsel %vm901_vm6, %v3825_v8, %v3829_v61  ;;  %v1536_v30 = vsel %vm901_vm6, %v3829_v61, %v3825_v8 }
 0x65c   : > { %v1543_v5 = vmul.f32 %v1532_v35, %v4435_v31 }
 0x65e   : > { %v1594_v13 = vpop.permute.xlu1 %1593  ;;  %v3831_v9 = vpop.permute.xlu0 %1565 }
 0x65f   : > { %v1575_v4 = vsel %vm922_vm7, %v3831_v9, %v3827_v1 }
 0x662   : > { %v1602_v49 = vpop.permute.xlu1 %1601  ;;  %v1596_v33 = vpop.permute.xlu0 %1595 }
 0x663   : > { %v1609_v38 = vsel %vm943_vm9, %v1594_v13, %v1602_v49  ;;  %v1613_v42 = vsel %vm943_vm9, %v1602_v49, %v1594_v13  ;;  %v1535_v13 = vsel %vm901_vm6, %v1526_v47, %v3823_v50  ;;  %v4422_v49 = vld [vmem:[#allocation106_spill] sm:$0xff]  ;;  %v1541_v50 = vmul.f32 %v1531_v0, %v4427_v3  ;;  %v4428_v47 = vld [vmem:[#allocation143_spill] sm:$0xff]  ;;  %v4436_v3 = vld [vmem:[#allocation89_spill] sm:$0xff] }
 0x664   : > { %v1617_v59 = vmul.f32 %v1609_v38, %v4422_v49  ;;  %v1618_v62 = vmul.f32 %v1613_v42, %v4423_v16  ;;  %v1542_v10 = vmul.f32 %v1535_v13, %v4428_v47  ;;  %v4429_v42 = vld [vmem:[#allocation150_spill] sm:$0xff]  ;;  %v4432_v0 = vld [vmem:[#allocation155_spill] sm:$0xff]  ;;  %v1544_v47 = vmul.f32 %v1536_v30, %v4436_v3  ;;  %v4442_v30 = vld [vmem:[#allocation149_spill] sm:$0xff] }
 0x666   : > { %v3853_v43 = vpop.permute.xlu1 %1559  ;;  %v1604_v44 = vpop.permute.xlu0 %1603  ;;  %v1625_v23 = vadd.f32 %v1617_v59, %v1585_v28  ;;  %v1626_v21 = vadd.f32 %v1618_v62, %v1586_v52  ;;  %v4437_v28 = vld [vmem:[#allocation146_spill] sm:$0xff] }
 0x667   : > { %v1610_v11 = vsel %vm943_vm9, %v1596_v33, %v1604_v44  ;;  %v1614_v41 = vsel %vm943_vm9, %v1604_v44, %v1596_v33 }
 0x668   : > { %v1619_v2 = vmul.f32 %v1610_v11, %v4429_v42  ;;  %v1620_v33 = vmul.f32 %v1614_v41, %v4430_v20 }
 0x66a   : > { %v3869_v27 = vpop.permute.xlu1 %1597  ;;  %v3871_v12 = vpop.permute.xlu0 %1567  ;;  %v1627_v62 = vadd.f32 %v1619_v2, %v1587_v29  ;;  %v1628_v11 = vadd.f32 %v1620_v33, %v1588_v25 }
 0x66b   : > { %v1572_v2 = vsel %vm922_vm7, %v3853_v43, %v3871_v12 }
 0x66e   : > { %v1634_v32 = vpop.permute.xlu1 %1633  ;;  %v1606_v45 = vpop.permute.xlu0 %1605 }
 0x66f   : > { %v1611_v41 = vsel %vm943_vm9, %v3869_v27, %v1606_v45 }
 0x672   : > { %v1642_v6 = vpop.permute.xlu1 %1641  ;;  %v1636_v38 = vpop.permute.xlu0 %1635 }
 0x673   : > { %v1649_v44 = vsel %vm964_vm10, %v1634_v32, %v1642_v6  ;;  %v1653_v19 = vsel %vm964_vm10, %v1642_v6, %v1634_v32  ;;  %v1571_v32 = vsel %vm922_vm7, %v3827_v1, %v3831_v9  ;;  %v4434_v9 = vld [vmem:[#allocation119_spill] sm:$0xff]  ;;  %v1615_v6 = vsel %vm943_vm9, %v1606_v45, %v3869_v27  ;;  %v4439_v45 = vld [vmem:[#allocation152_spill] sm:$0xff] }
 0x674   : > { %v1657_v14 = vmul.f32 %v1649_v44, %v4431_v55  ;;  %v1658_v13 = vmul.f32 %v1653_v19, %v4432_v0  ;;  %v1581_v52 = vmul.f32 %v1571_v32, %v4437_v28  ;;  %v1512_v19 = vadd.f32 %v1504_v54, %v3821_v26 }
 0x675   : > { %v1576_v27 = vsel %vm922_vm7, %v3871_v12, %v3853_v43  ;;  %v1550_v55 = vadd.f32 %v1542_v10, %v3883_v51  ;;  %v1551_v43 = vadd.f32 %v1543_v5, %v1511_v37 }
 0x676   : > { %v3940_v24 = vadd.f32 %v1657_v14, %v1625_v23  ;;  %v3942_v49 = vadd.f32 %v1658_v13, %v1626_v21  ;;  %v1600_v59 = vpop.permute.xlu1 %1599  ;;  %v1644_v16 = vpop.permute.xlu0 %1643  ;;  %v1549_v23 = vadd.f32 %v1541_v50, %v3880_v7  ;;  %v1621_v21 = vmul.f32 %v1611_v41, %v4439_v45  ;;  %v4440_v14 = vld [vmem:[#allocation153_spill] sm:$0xff]  ;;  %v4441_v7 = vld [vmem:[#allocation148_spill] sm:$0xff] }
 0x677   : > { %v1650_v8 = vsel %vm964_vm10, %v1636_v38, %v1644_v16  ;;  %v1654_v61 = vsel %vm964_vm10, %v1644_v16, %v1636_v38  ;;  %v4438_v38 = vld [vmem:[#allocation147_spill] sm:$0xff]  ;;  %v1622_v0 = vmul.f32 %v1615_v6, %v4440_v14  ;;  %v1583_v50 = vmul.f32 %v1572_v2, %v4441_v7 }
 0x678   : > { %v1659_v1 = vmul.f32 %v1650_v8, %v4433_v63  ;;  %v1660_v46 = vmul.f32 %v1654_v61, %v4434_v9  ;;  %v1673_v17 = vadd.f32 %v3942_v49, %v3940_v24  ;;  %v1582_v42 = vmul.f32 %v1575_v4, %v4438_v38  ;;  %v4443_v4 = vld [vmem:[#allocation110_spill] sm:$0xff]  ;;  %v4444_v61 = vld [vmem:[#allocation111_spill] sm:$0xff]  ;;  %v4446_v63 = vld [vmem:[#allocation157_spill] sm:$0xff] }
 0x679   : > { %v1589_v54 = vadd.f32 %v1581_v52, %v1549_v23  ;;  %v1552_v12 = vadd.f32 %v1544_v47, %v1512_v19  ;;  %v1584_v51 = vmul.f32 %v1576_v27, %v4442_v30  ;;  %v1591_v9 = vadd.f32 %v1583_v50, %v1551_v43  ;;  %v4447_v38 = vld [vmem:[#allocation158_spill] sm:$0xff]  ;;  %v4448_v2 = vld [vmem:[#allocation159_spill] sm:$0xff] }
 0x67a   : > { %v3966_v20 = vadd.f32 %v1659_v1, %v1627_v62  ;;  %v3968_v33 = vadd.f32 %v1660_v46, %v1628_v11  ;;  %1674 = vadd.xlane.f32.xlu1 %v1673_v17  ;;  %v1608_v44 = vpop.permute.xlu0 %1607  ;;  %v1638_v13 = vpop.permute.xlu1 %1637  ;;  %v1590_v35 = vadd.f32 %v1582_v42, %v1550_v55 }
 0x67b   : > { %v1612_v29 = vsel %vm943_vm9, %v1600_v59, %v1608_v44  ;;  %v1616_v25 = vsel %vm943_vm9, %v1608_v44, %v1600_v59  ;;  %v1629_v32 = vadd.f32 %v1621_v21, %v1589_v54  ;;  %v4445_v59 = vld [vmem:[#allocation156_spill] sm:$0xff]  ;;  %v1592_v46 = vadd.f32 %v1584_v51, %v1552_v12 }
 0x67c   : > { %v1676_v26 = vadd.f32 %v3968_v33, %v3966_v20  ;;  %v1623_v16 = vmul.f32 %v1612_v29, %v4443_v4  ;;  %v1630_v8 = vadd.f32 %v1622_v0, %v1590_v35  ;;  %v1624_v41 = vmul.f32 %v1616_v25, %v4444_v61  ;;  %v4449_v0 = vld [vmem:[#allocation23_spill] sm:$0xff]  ;;  %v4451_v25 = vld [vmem:[#allocation24_spill] sm:$0xff] }
 0x67e   : > { %v1646_v10 = vpop.permute.xlu0 %1645  ;;  %1677 = vadd.xlane.f32.xlu0 %v1676_v26  ;;  %v1640_v17 = vpop.permute.xlu1 %1639  ;;  %v1631_v47 = vadd.f32 %v1623_v16, %v1591_v9  ;;  %v1632_v6 = vadd.f32 %v1624_v41, %v1592_v46  ;;  %v4450_v26 = vld [vmem:[#allocation22_spill] sm:$0xff] }
 0x67f   : > { %v1651_v62 = vsel %vm964_vm10, %v1638_v13, %v1646_v10  ;;  %v1655_v11 = vsel %vm964_vm10, %v1646_v10, %v1638_v13 }
 0x680   : > { %v1661_v37 = vmul.f32 %v1651_v62, %v4445_v59  ;;  %v1662_v1 = vmul.f32 %v1655_v11, %v4446_v63 }
 0x682   : > { %v3995_v31 = vadd.f32 %v1661_v37, %v1629_v32  ;;  %v3997_v5 = vadd.f32 %v1662_v1, %v1630_v8  ;;  %v1648_v3 = vpop.permute.xlu0 %1647  ;;  %v4452_v32 = vld [vmem:[#allocation25_spill] sm:$0xff]  ;;  %v4453_v1 = vld [vmem:[#allocation26_spill] sm:$0xff] }
 0x683   : > { %v1652_v28 = vsel %vm964_vm10, %v1640_v17, %v1648_v3  ;;  %v1656_v52 = vsel %vm964_vm10, %v1648_v3, %v1640_v17  ;;  %v4454_v17 = vld [vmem:[#allocation43_spill] sm:$0xff] }
 0x684   : > { %v1663_v42 = vmul.f32 %v1652_v28, %v4447_v38  ;;  %v1664_v44 = vmul.f32 %v1656_v52, %v4448_v2  ;;  %v1679_v19 = vadd.f32 %v3997_v5, %v3995_v31  ;;  %v4456_v52 = vld [vmem:[#allocation27_spill] sm:$0xff]  ;;  %v4457_v2 = vld [vmem:[#allocation30_spill] sm:$0xff] }
 0x686   : > { %v4007_v23 = vadd.f32 %v1663_v42, %v1631_v47  ;;  %v4009_v27 = vadd.f32 %v1664_v44, %v1632_v6  ;;  %1680 = vadd.xlane.f32.xlu0 %v1679_v19  ;;  %v4455_v47 = vld [vmem:[#allocation28_spill] sm:$0xff]  ;;  %v4458_v19 = vld [vmem:[#allocation29_spill] sm:$0xff] }
 0x688   : > { %v1682_v45 = vadd.f32 %v4009_v27, %v4007_v23 }
 0x68a   : > { %1683 = vadd.xlane.f32.xlu0 %v1682_v45 }
 0x703   : > { %v1675_v18 = vpop.xlane.xlu1 %1674 }
 0x704   : > { %v1686_v14 = vmul.f32 0.00390625, %v1675_v18 }
 0x706   : > { %v1690_v54 = vmul.f32 %v1686_v14, %v4450_v26 }
 0x707   : > { %v1678_v21 = vpop.xlane.xlu0 %1677 }
 0x708   : > { %v1687_v55 = vmul.f32 0.00390625, %v1678_v21  ;;  %v1695_v35 = vsel %vm1694_vm1, %v1690_v54, 0.0 }
 0x70a   : > { %v1691_v13 = vmul.f32 %v1687_v55, %v4449_v0  ;;  %v4459_v0 = vld [vmem:[#allocation32_spill] sm:$0xff] }
 0x70c   : > { %v1696_v50 = vsel %vm1694_vm1, %v1691_v13, 0.0 }
 0x70d   : > { %v1697_v10 = vadd.f32 %v1696_v50, %v1695_v35  ;;  %v4462_v35 = vld [vmem:[#allocation33_spill] sm:$0xff] }
 0x70f   : > { %v1681_v29 = vpop.xlane.xlu0 %1680 }
 0x710   : > { %v1688_v7 = vmul.f32 0.00390625, %v1681_v29  ;;  %v4460_v29 = vld [vmem:[#allocation31_spill] sm:$0xff] }
 0x712   : > { %v1692_v43 = vmul.f32 %v1688_v7, %v4451_v25 }
 0x713   : > { %v1684_v12 = vpop.xlane.xlu0 %1683 }
 0x714   : > { %v1698_v30 = vsel %vm1694_vm1, %v1692_v43, 0.0  ;;  %v1689_v51 = vmul.f32 0.00390625, %v1684_v12  ;;  %v4461_v43 = vld [vmem:[#allocation34_spill] sm:$0xff] }
 0x715   : > { %v1699_v16 = vadd.f32 %v1698_v30, %v1697_v10 }
 0x716   : > { %v1693_v4 = vmul.f32 %v1689_v51, %v4452_v32 }
 0x718   : > { %v1700_v62 = vsel %vm1694_vm1, %v1693_v4, 0.0 }
 0x719   : > { %v1701_v11 = vadd.f32 %v1700_v62, %v1699_v16 }
 0x71b   : > { %v1702_v8 = vrot.slane %v1701_v11, 4 }
 0x71d   : > { %v1703_v61 = vadd.f32 %v1702_v8, %v1701_v11 }
 0x71f   : > { %v1704_v41 = vrot.slane %v1703_v61, 2 }
 0x721   : > { %v1705_v59 = vadd.f32 %v1704_v41, %v1703_v61 }
 0x723   : > { %v1706_v37 = vrot.slane %v1705_v59, 1 }
 0x725   : > { %v1707_v63 = vadd.f32 %v1706_v37, %v1705_v59 }
 0x727   : > { %v1708_v9 = vadd.f32 %v1707_v63, %v4453_v1 }
 0x729   : > { %v1709_v46 = vmax.f32 %v1708_v9, 0.0 }
 0x72b   : > { %v1713_v3 = vrot.slane %v1709_v46, %v4454_v17 }
 0x72d   : > { %v1715_v28 = vmul.f32 %v1713_v3, %v4455_v47  ;;  %v1714_v6 = vmul.f32 %v1713_v3, %v4456_v52  ;;  %v1717_v44 = vmul.f32 %v1713_v3, %v4457_v2  ;;  %v1716_v45 = vmul.f32 %v1713_v3, %v4458_v19  ;;  %v1957_v52 = vld [vmem:[%s2921_s27 + $0x10] sm:$0xff]  ;;  %v1959_v2 = vld [vmem:[%s2921_s27] sm:$0xff]  ;;  %v1960_v19 = vld [vmem:[%s2921_s27 + $0x8] sm:$0xff] }
 0x72f   : > { %v1721_v38 = vsel %vm1694_vm1, %v1715_v28, 0.0  ;;  %v1718_v42 = vsel %vm1694_vm1, %v1714_v6, 0.0  ;;  %v1727_v21 = vsel %vm1694_vm1, %v1717_v44, 0.0  ;;  %v1724_v18 = vsel %vm1694_vm1, %v1716_v45, 0.0 }
 0x730   : > { %1722 = vadd.xlane.f32.xlu0 %v1721_v38  ;;  %1719 = vadd.xlane.f32.xlu1 %v1718_v42  ;;  %v1958_v38 = vld [vmem:[%s2921_s27 + $0x18] sm:$0xff] }
 0x734   : > { %1728 = vadd.xlane.f32.xlu0 %v1727_v21  ;;  %1725 = vadd.xlane.f32.xlu1 %v1724_v18  ;;  %v1962_v18 = vld [vmem:[%s2921_s27 + $0x28] sm:$0xff] }
 0x7b9   : > { %v1723_v55 = vpop.xlane.xlu0 %1722  ;;  %v1720_v14 = vpop.xlane.xlu1 %1719 }
 0x7ba   : > { %v1731_v13 = vadd.f32 %v1723_v55, %v4459_v0  ;;  %v1730_v26 = vadd.f32 %v1720_v14, %v4460_v29  ;;  %v1963_v29 = vld [vmem:[%s2921_s27 + $0x30] sm:$0xff] }
 0x7bc   : > { %v1735_v54 = vmul.f32 0.5, %v1731_v13  ;;  %v1734_v7 = vmul.f32 0.5, %v1730_v26 }
 0x7bd   : > { %v1729_v50 = vpop.xlane.xlu0 %1728  ;;  %v1726_v25 = vpop.xlane.xlu1 %1725 }
 0x7be   : > { %1947 = vtanh.f32 %v1735_v54  ;;  %v1733_v12 = vadd.f32 %v1729_v50, %v4461_v43  ;;  %v1732_v30 = vadd.f32 %v1726_v25, %v4462_v35  ;;  %v1964_v54 = vld [vmem:[%s2921_s27 + $0x38] sm:$0xff] }
 0x7bf   : > { %1949 = vtanh.f32 %v1734_v7 }
 0x7c0   : > { %v1737_v51 = vmul.f32 0.5, %v1733_v12  ;;  %v1736_v10 = vmul.f32 0.5, %v1732_v30 }
 0x7c2   : > { %1951 = vtanh.f32 %v1737_v51 }
 0x7c3   : > { %1953 = vtanh.f32 %v1736_v10 }
 0x7cb   : > { %v1948_v32 = vpop.eup %1947 }
 0x7cc   : > { %v1950_v4 = vpop.eup %1949  ;;  %v1743_v16 = vmul.f32 0.5, %v1948_v32 }
 0x7cd   : > { %v1742_v62 = vmul.f32 0.5, %v1950_v4 }
 0x7ce   : > { %v1747_v11 = vadd.f32 0.5, %v1743_v16 }
 0x7cf   : > { %v1952_v8 = vpop.eup %1951  ;;  %v1746_v61 = vadd.f32 0.5, %v1742_v62 }
 0x7d0   : > { %v1954_v41 = vpop.eup %1953  ;;  %1757 = vperm.xlu0 %1918, %v1747_v11   ;;  %v1745_v37 = vmul.f32 0.5, %v1952_v8 }
 0x7d1   : > { %v1744_v59 = vmul.f32 0.5, %v1954_v41  ;;  %1752 = vperm.xlu1 %1917, %v1746_v61  }
 0x7d2   : > { %v1749_v1 = vadd.f32 0.5, %v1745_v37 }
 0x7d3   : > { %v1748_v63 = vadd.f32 0.5, %v1744_v59 }
 0x7d5   : > { %1762 = vperm.xlu1 %1917, %v1748_v63  }
 0x7d9   : > { %1767 = vperm.xlu1 %1917, %v1749_v1  }
 0x84b   : > { %v1758_v9 = vpop.permute.xlu0 %1757 }
 0x84c   : > { %v1772_v46 = vmul.f32 %v1758_v9, %v3966_v20  ;;  %v1773_v17 = vmul.f32 %v1758_v9, %v3968_v33  ;;  %v1753_v3 = vpop.permute.xlu1 %1752  ;;  %v1961_v33 = vld [vmem:[%s2921_s27 + $0x20] sm:$0xff] }
 0x84d   : > { %v1770_v47 = vmul.f32 %v1753_v3, %v3940_v24  ;;  %v1771_v28 = vmul.f32 %v1753_v3, %v3942_v49 }
 0x84e   : > { %v1780_v6 = vadd.f32 %v1957_v52, %v1772_v46  ;;  %v1781_v42 = vadd.f32 %v1958_v38, %v1773_v17 }
 0x84f   : > { %v1778_v44 = vadd.f32 %v1959_v2, %v1770_v47  ;;  %v1779_v45 = vadd.f32 %v1960_v19, %v1771_v28 }
 0x850   : > { %1790 = vst [vmem:[%s1787_s1 + $0x10] sm:$0xff] %v1780_v6  ;;  %1791 = vst [vmem:[%s1787_s1 + $0x18] sm:$0xff] %v1781_v42  ;;  %v1763_v20 = vpop.permute.xlu1 %1762 }
 0x851   : > { %1788 = vst [vmem:[%s1787_s1] sm:$0xff] %v1778_v44  ;;  %1789 = vst [vmem:[%s1787_s1 + $0x8] sm:$0xff] %v1779_v45  ;;  %v1774_v24 = vmul.f32 %v1763_v20, %v3995_v31  ;;  %v1775_v49 = vmul.f32 %v1763_v20, %v3997_v5 }
 0x853   : > { %v1782_v21 = vadd.f32 %v1961_v33, %v1774_v24  ;;  %v1783_v55 = vadd.f32 %v1962_v18, %v1775_v49 }
 0x854   : > { %v1768_v14 = vpop.permute.xlu1 %1767 }
 0x855   : > { %1792 = vst [vmem:[%s1787_s1 + $0x20] sm:$0xff] %v1782_v21  ;;  %1793 = vst [vmem:[%s1787_s1 + $0x28] sm:$0xff] %v1783_v55  ;;  %v1776_v0 = vmul.f32 %v1768_v14, %v4007_v23  ;;  %v1777_v13 = vmul.f32 %v1768_v14, %v4009_v27  ;;  %632 = sbr.rel (!%p630_p5) target bundleno = 337 (0x151), region = 93 }
 0x857   : > { %v1784_v26 = vadd.f32 %v1963_v29, %v1776_v0  ;;  %v1785_v7 = vadd.f32 %v1964_v54, %v1777_v13 }
 0x859   : > { %1794 = vst [vmem:[%s1787_s1 + $0x30] sm:$0xff] %v1784_v26  ;;  %1795 = vst [vmem:[%s1787_s1 + $0x38] sm:$0xff] %v1785_v7 }
 0x85a   :  { %1996 = shalt.err (!%p1993_p10)
}
 0x85b   :  { %1807 = dma.vmem_to_hbm [thread:$0]  %s1802_s24, 4096, %s4077_s15, [#allocation4], %s2018_s21, %s2018_s21, %s2019_s22  }
 0x85c   :  { %2011 = dma.done.wait [#allocation4], 4096  }
 0x85d   :  { %2012 = vsyncadd [#allocation4], 4294963200 }
 0x85e   :  { %1811 = vsyncpa [#allocation3], 1 }
 0x85f   :  { %1812 = vsyncpa [#allocation4], 1 }

</bundles_post_ra>
